<compile_context>
chip_gen: v7x
topology: tpu7x:2x2x1
jax: 0.10.0
libtpu: 0.0.40
codegen_flags: <defaults>
</compile_context>

<pallas_src>
from collections import defaultdict

import jax
import jax.numpy as jnp
from jax import lax
from jax.experimental import pallas as pl
from jax.experimental.pallas import tpu as pltpu

# ----------------------------- model dimensions -----------------------------
N_AGENTS   = 4
T_OBS      = 8
T_PRED     = 4
F_IN       = 4            # (pos_x, pos_y, vel_x, vel_y)
D_MODEL    = 32
N_HEADS    = 4
HEAD_DIM   = D_MODEL // N_HEADS
D_FF       = 64           # note: D_FF == 2 * D_MODEL (used by aux packing)
N_LAYERS   = 2
N_Z        = 8            # latent dim per sample
DEC_H      = 64
L_TOKENS   = T_OBS * N_AGENTS
TRAJ_SCALE = 2.0

_VMEM = pl.BlockSpec(memory_space=pltpu.MemorySpace.VMEM)


# ----------------------------- in-kernel helpers -----------------------------
def _mm(a, b):
    """MXU matmul, f32 operands, f32 accumulation."""
    return jnp.dot(a, b, preferred_element_type=jnp.float32)


def _layer_norm(x, g, b):
    mu = jnp.mean(x, axis=-1, keepdims=True)
    var = jnp.mean((x - mu) ** 2, axis=-1, keepdims=True)
    return (x - mu) * lax.rsqrt(var + 1e-5) * g + b


# =============================================================================
# Fused kernel: agent-aware transformer context encoder + sampling decoder.
#
# Encoder:
#   - input embedding (matmul) + positional encoding (bias folded in)
#   - N_LAYERS x [agent-aware MHA, LN, FFN, LN]
#   Agent-aware attention (AgentFormer's signature op): scores use the "self"
#   Q/K projections for same-agent token pairs and the "other" Q/K projections
#   for different-agent pairs.  All five projections + wo + wff1 live in one
#   [D_MODEL, 8*D_MODEL] weight slab per layer (one operand DMA).
#
# Decoder (all K latent samples in the same invocation):
#   rows = K * N_AGENTS, built in-kernel with static concats
#   h   = relu([ctx | z] @ W1 + b1)                       [K*N, DEC_H]
#   pos = h @ W2' + b2' + last_rep                        [K*N, 2*T_PRED]
#   where W2' = W2 @ M, b2' = b2 @ M with M = kron(upper_tri, I2) folded
#   offline (velocity -> cumulative-sum trajectory).
# =============================================================================
def agentformer_fused_kernel(x_in_ref, pe_ref, w_in_ref,
                             enc_w_ref, wff2_ref, aux_ref,
                             dec_w1_ref, dec_w2_ref, dec_b_ref,
                             z_ref, last_ref,
                             ctx_ref, dec_ref):
    # ---------------- context encoder ----------------
    x = _mm(x_in_ref[...], w_in_ref[...]) + pe_ref[...]        # [L, D]

    # agent-same mask generated in-kernel (token index = t*N_AGENTS + n),
    # hoisted out of the layer loop and pre-broadcast over heads.
    row_agent = lax.broadcasted_iota(
        jnp.int32, (L_TOKENS, L_TOKENS), 0) % N_AGENTS
    col_agent = lax.broadcasted_iota(
        jnp.int32, (L_TOKENS, L_TOKENS), 1) % N_AGENTS
    same = jnp.broadcast_to((row_agent == col_agent)[None],
                            (N_HEADS, L_TOKENS, L_TOKENS))     # [H, L, L]

    scale = 1.0 / (HEAD_DIM ** 0.5)

    def split_heads(t):                                        # [L, D] -> [H, L, hd]
        return jnp.stack(
            [t[:, h * HEAD_DIM:(h + 1) * HEAD_DIM] for h in range(N_HEADS)],
            axis=0)

    for l in range(N_LAYERS):                                  # static unroll
        w_l = enc_w_ref[l]                                     # [D, 8*D]
        aux = aux_ref[l]                                       # [4, D_FF]

        # one fused projection matmul per layer: [L,32] @ [32,160]
        qkv = _mm(x, w_l[:, :5 * D_MODEL])                     # [L, 5*D]
        q_s = split_heads(qkv[:, 0 * D_MODEL:1 * D_MODEL])
        k_s = split_heads(qkv[:, 1 * D_MODEL:2 * D_MODEL])
        q_o = split_heads(qkv[:, 2 * D_MODEL:3 * D_MODEL])
        k_o = split_heads(qkv[:, 3 * D_MODEL:4 * D_MODEL])
        v   = split_heads(qkv[:, 4 * D_MODEL:5 * D_MODEL])

        # head-batched scores / softmax / weighted sum (single issue per op)
        s_self  = jnp.einsum('hqd,hkd->hqk', q_s, k_s,
                             preferred_element_type=jnp.float32)   # [H, L, L]
        s_other = jnp.einsum('hqd,hkd->hqk', q_o, k_o,
                             preferred_element_type=jnp.float32)
        s = jnp.where(same, s_self, s_other) * scale
        s = s - jnp.max(s, axis=-1, keepdims=True)
        p = jnp.exp(s)
        p = p * pl.reciprocal(jnp.sum(p, axis=-1, keepdims=True), approx=True)
        o = jnp.einsum('hqk,hkd->hqd', p, v,
                       preferred_element_type=jnp.float32)          # [H, L, hd]

        # merge heads into one [L, D] slab, single output projection
        attn = jnp.concatenate([o[h] for h in range(N_HEADS)], axis=-1)
        attn = _mm(attn, w_l[:, 5 * D_MODEL:6 * D_MODEL])

        # residual + LN1  (aux row 1 = [ln1g | ln1b])
        x = _layer_norm(x + attn, aux[1:2, :D_MODEL], aux[1:2, D_MODEL:])
        # FFN  (aux row 0 = bff1, row 3[:D] = bff2)
        hid = jnp.maximum(_mm(x, w_l[:, 6 * D_MODEL:]) + aux[0:1, :], 0.0)
        x = _layer_norm(x + _mm(hid, wff2_ref[l]) + aux[3:4, :D_MODEL],
                        aux[2:3, :D_MODEL], aux[2:3, D_MODEL:])

    ctx_ref[...] = x

    # ---------------- sampling decoder (all K samples) ----------------
    n_samples = z_ref.shape[0]                                 # static at trace
    ctx_agent = x[(T_OBS - 1) * N_AGENTS:, :]                  # [N, D] last-obs tokens
    z = z_ref[...]                                             # [K, N_Z]

    cz_rows = []
    for k in range(n_samples):                                 # static unroll
        zk = jnp.broadcast_to(z[k:k + 1, :], (N_AGENTS, N_Z))
        cz_rows.append(jnp.concatenate([ctx_agent, zk], axis=-1))
    cz = jnp.concatenate(cz_rows, axis=0)                      # [K*N, D+N_Z]

    h = jnp.maximum(_mm(cz, dec_w1_ref[...]) + dec_b_ref[0:1, :], 0.0)
    pos = _mm(h, dec_w2_ref[...]) + dec_b_ref[1:2, :2 * T_PRED]
    last_rep = jnp.concatenate([last_ref[...]] * n_samples, axis=0)  # [K*N, 2T]
    dec_ref[...] = pos + last_rep


@jax.jit
def _fused_forward_infer(params, x_in, pe_b, last_tiled, z):
    """One pallas_call: context encoder + K-sample decoder, plus output glue."""
    n_samples = z.shape[0]
    ctx, dec = pl.pallas_call(
        agentformer_fused_kernel,
        out_shape=(
            jax.ShapeDtypeStruct((L_TOKENS, D_MODEL), jnp.float32),
            jax.ShapeDtypeStruct((n_samples * N_AGENTS, 2 * T_PRED),
                                 jnp.float32),
        ),
        in_specs=[_VMEM] * 11,
        out_specs=(_VMEM, _VMEM),
    )(x_in, pe_b, params['w_in'],
      params['enc_w'], params['wff2'], params['aux'],
      params['dec_w1'], params['dec_w2'], params['dec_b'],
      z, last_tiled)
    pos = dec.reshape(n_samples, N_AGENTS, T_PRED, 2) * TRAJ_SCALE
    infer_dec_motion = jnp.transpose(pos, (1, 0, 2, 3))        # [N, K, T, 2]
    return ctx, infer_dec_motion


# =============================================================================
# Parameter construction (deterministic, synthetic) + offline packing
# =============================================================================
def init_params(key):
    ks = jax.random.split(key, 8)

    def dense(k, shape):
        fan_in = shape[-2]
        return (jax.random.normal(k, shape, jnp.float32)
                / jnp.sqrt(jnp.float32(fan_in)))

    # encoder raw weights
    w_in  = dense(ks[0], (F_IN, D_MODEL))
    b_in  = jnp.zeros((1, D_MODEL), jnp.float32)
    w_qkv = dense(ks[1], (N_LAYERS, D_MODEL, 5 * D_MODEL))   # [qs|ks|qo|ko|v]
    wo    = dense(ks[2], (N_LAYERS, D_MODEL, D_MODEL))
    wff1  = dense(ks[3], (N_LAYERS, D_MODEL, D_FF))
    wff2  = dense(ks[4], (N_LAYERS, D_FF, D_MODEL))
    ln1g  = jnp.ones((N_LAYERS, D_MODEL), jnp.float32)
    ln1b  = jnp.zeros((N_LAYERS, D_MODEL), jnp.float32)
    ln2g  = jnp.ones((N_LAYERS, D_MODEL), jnp.float32)
    ln2b  = jnp.zeros((N_LAYERS, D_MODEL), jnp.float32)
    bff1  = jnp.zeros((N_LAYERS, D_FF), jnp.float32)
    bff2  = jnp.zeros((N_LAYERS, D_MODEL), jnp.float32)

    # pack per-layer weights sharing the [D_MODEL, .] leading dim
    enc_w = jnp.concatenate([w_qkv, wo, wff1], axis=-1)      # [L, 32, 256]

    # pack LN / FFN biases into one [L, 4, D_FF] aux slab (D_FF == 2*D_MODEL)
    aux = jnp.zeros((N_LAYERS, 4, D_FF), jnp.float32)
    aux = aux.at[:, 0, :].set(bff1)
    aux = aux.at[:, 1, :D_MODEL].set(ln1g)
    aux = aux.at[:, 1, D_MODEL:].set(ln1b)
    aux = aux.at[:, 2, :D_MODEL].set(ln2g)
    aux = aux.at[:, 2, D_MODEL:].set(ln2b)
    aux = aux.at[:, 3, :D_MODEL].set(bff2)

    # decoder raw weights
    w1c = dense(ks[5], (D_MODEL, DEC_H))
    w1z = dense(ks[6], (N_Z, DEC_H))
    b1  = jnp.zeros((1, DEC_H), jnp.float32)
    w2  = dense(ks[7], (DEC_H, T_PRED * 2))
    b2  = jnp.zeros((1, T_PRED * 2), jnp.float32)

    # fold the cumulative-sum (velocity -> position) matrix into W2 / b2
    causal = (jnp.arange(T_PRED)[:, None] <=
              jnp.arange(T_PRED)[None, :]).astype(jnp.float32)
    cumsum_mat = jnp.kron(causal, jnp.eye(2, dtype=jnp.float32))
    dec_w2 = w2 @ cumsum_mat                                 # [DEC_H, 2T]
    dec_b2 = b2 @ cumsum_mat                                 # [1, 2T]

    dec_w1 = jnp.concatenate([w1c, w1z], axis=0)             # [D_MODEL+N_Z, DEC_H]
    dec_b = jnp.concatenate(
        [b1, jnp.pad(dec_b2, ((0, 0), (0, DEC_H - 2 * T_PRED)))], axis=0)

    return {
        'w_in': w_in, 'b_in': b_in,
        'enc_w': enc_w, 'wff2': wff2, 'aux': aux,
        'dec_w1': dec_w1, 'dec_w2': dec_w2, 'dec_b': dec_b,
    }


def sinusoidal_pe(T, D):
    t = jnp.arange(T, dtype=jnp.float32)[:, None]
    i = jnp.arange(D // 2, dtype=jnp.float32)[None, :]
    ang = t / jnp.power(10000.0, 2.0 * i / D)
    pe = jnp.zeros((T, D), jnp.float32)
    pe = pe.at[:, 0::2].set(jnp.sin(ang))
    pe = pe.at[:, 1::2].set(jnp.cos(ang))
    return pe


# =============================================================================
# Wrapper mirroring OrigModelWrapper
# =============================================================================
class OrigModelWrapperPallas:
    def __init__(self, key):
        self.traj_scale = TRAJ_SCALE
        self.T_obs = T_OBS
        self.T_pred = T_PRED
        self.future_timesteps = jnp.arange(self.T_pred) + 1
        self._default_sample_num = 4

        k_param, self._rng = jax.random.split(key)
        p = init_params(k_param)
        pe_time = sinusoidal_pe(T_OBS, D_MODEL)                # [T_obs, D]
        pe = jnp.repeat(pe_time, N_AGENTS, axis=0)             # [L, D] time-major
        self.pe_b = pe + p.pop('b_in')                         # fold input bias
        self.params = p

        self.data = defaultdict(lambda: None)
        self.context = None
        self._pending = None                                   # (K, dec_motion)

    def set_data(self, data):
        trajs = jnp.squeeze(data['trajectories'], axis=0)      # [N, T_obs+T_pred, 2]
        pre_motion = trajs[:, :self.T_obs, :] / self.traj_scale
        vel = jnp.concatenate(
            [jnp.zeros((N_AGENTS, 1, 2), jnp.float32),
             pre_motion[:, 1:, :] - pre_motion[:, :-1, :]], axis=1)
        feats = jnp.concatenate([pre_motion, vel], axis=-1)    # [N, T_obs, 4]
        # time-major token flattening: token = t * N + n
        self.x_in = jnp.transpose(feats, (1, 0, 2)).reshape(L_TOKENS, F_IN)
        # last observed (scaled) position tiled along the trajectory lanes
        self.last_tiled = jnp.tile(pre_motion[:, -1, :], (1, self.T_pred))
        self.data = defaultdict(lambda: None)
        self.data['valid_id'] = data['identities']
        self.data['last_obs_positions'] = data['last_obs_positions']
        self.data['last_obs_timesteps'] = data['last_obs_timesteps']
        self.context = None
        self._pending = None

    def _run(self, sample_num):
        # fresh latent per run (no hard-coded key)
        self._rng, k_z = jax.random.split(self._rng)
        z = jax.random.normal(k_z, (sample_num, N_Z), jnp.float32)
        ctx, motion = _fused_forward_infer(
            self.params, self.x_in, self.pe_b, self.last_tiled, z)
        self.context = ctx
        self.data['context_enc'] = ctx
        self._pending = (sample_num, motion)

    def forward(self):
        # single fused pallas_call computes context + decoded samples
        self._run(self._default_sample_num)
        return self.data

    def inference(self, mode='infer', sample_num=4, need_weights=False):
        if self._pending is None or self._pending[0] != sample_num:
            self._run(sample_num)
        _, infer_dec_motion = self._pending                    # [N, K, T, 2]
        self._pending = None

        # --- mirror OrigModelWrapper.inference post-processing exactly ---
        dec_timesteps = jnp.vstack(
            [self.future_timesteps] * self.data['valid_id'].shape[-1]
        ).reshape(-1)
        dec_agents = jnp.hstack(
            [self.data['valid_id'][0, ...][:, None]] * self.T_pred)
        dec_motion = infer_dec_motion
        if mode != 'infer':
            dec_motion = dec_motion[:, None]
        dec_motion = jnp.swapaxes(dec_motion, 0, 1)
        dec_agents = jnp.vstack([dec_agents.reshape(-1)] * sample_num)
        dec_motion = dec_motion.reshape(sample_num, -1, 2)
        dec_past_mask = jnp.zeros_like(dec_timesteps)

        self.data[f'{mode}_dec_motion'] = dec_motion
        self.data[f'{mode}_dec_agents'] = dec_agents
        self.data[f'{mode}_dec_past_mask'] = dec_past_mask
        self.data[f'{mode}_dec_timesteps'] = dec_timesteps
        return self.data[f'{mode}_dec_motion'], self.data


# =============================================================================
if __name__ == "__main__":
    key = jax.random.PRNGKey(0)
    k_traj, k_param = jax.random.split(key)

    trajectories = jax.random.normal(
        k_traj, (1, N_AGENTS, T_OBS + T_PRED, 2), jnp.float32) * 3.0
    data = {
        'trajectories': trajectories,
        'identities': jnp.arange(N_AGENTS, dtype=jnp.int32)[None, :],
        'last_obs_positions': trajectories[0, :, T_OBS - 1, :],
        'last_obs_timesteps': jnp.full((N_AGENTS,), T_OBS, jnp.int32),
        'pred_position_sequence': trajectories[0, :, T_OBS:, :].reshape(-1, 2),
        'pred_velocity_sequence': jnp.zeros((N_AGENTS * T_PRED, 2), jnp.float32),
        'pred_timestep_sequence': jnp.tile(jnp.arange(T_PRED) + 1, N_AGENTS),
        'pred_identity_sequence': jnp.repeat(jnp.arange(N_AGENTS), T_PRED),
    }

    model = OrigModelWrapperPallas(k_param)
    model.set_data(data)
    _ = model.forward()
    dec_motion, out_data = model.inference(mode='infer', sample_num=4)
    dec_motion = jax.block_until_ready(dec_motion)

    assert dec_motion.shape == (4, N_AGENTS * T_PRED, 2), dec_motion.shape
    assert out_data['infer_dec_agents'].shape == (4, N_AGENTS * T_PRED)
    assert out_data['infer_dec_timesteps'].shape == (N_AGENTS * T_PRED,)
    assert bool(jnp.all(jnp.isfinite(dec_motion)))
    assert bool(jnp.all(jnp.isfinite(out_data['context_enc'])))
    print("KERNEL_OK")
</pallas_src>

<mosaic_0001>
module attributes {stable_mosaic.version = 11 : i64} {
  func.func @agentformer_fused_kernel(%arg0: memref<32x4xf32, #tpu.memory_space<vmem>>, %arg1: memref<32x32xf32, #tpu.memory_space<vmem>>, %arg2: memref<4x32xf32, #tpu.memory_space<vmem>>, %arg3: memref<2x32x256xf32, #tpu.memory_space<vmem>>, %arg4: memref<2x64x32xf32, #tpu.memory_space<vmem>>, %arg5: memref<2x4x64xf32, #tpu.memory_space<vmem>>, %arg6: memref<40x64xf32, #tpu.memory_space<vmem>>, %arg7: memref<64x8xf32, #tpu.memory_space<vmem>>, %arg8: memref<2x64xf32, #tpu.memory_space<vmem>>, %arg9: memref<4x8xf32, #tpu.memory_space<vmem>>, %arg10: memref<4x8xf32, #tpu.memory_space<vmem>>, %arg11: memref<32x32xf32, #tpu.memory_space<vmem>>, %arg12: memref<16x8xf32, #tpu.memory_space<vmem>>) attributes {dimension_semantics = [], scalar_prefetch = 0 : i64, scratch_operands = 0 : i64, tpu.core_type = #tpu.core_type<tc>} {
    %c0 = arith.constant 0 : index
    %c0_0 = arith.constant 0 : index
    %0 = vector.load %arg0[%c0, %c0_0] : memref<32x4xf32, #tpu.memory_space<vmem>>, vector<32x4xf32>
    %c0_1 = arith.constant 0 : index
    %c0_2 = arith.constant 0 : index
    %1 = vector.load %arg2[%c0_1, %c0_2] : memref<4x32xf32, #tpu.memory_space<vmem>>, vector<4x32xf32>
    %cst = arith.constant dense<0.000000e+00> : vector<32x32xf32>
    %2 = tpu.matmul %0, %1, %cst {dimension_numbers = #tpu.dot_dimension_numbers<[1], [0], [0], [1], [0, 0, 1, 1], [], []>} : vector<32x4xf32>, vector<4x32xf32>, vector<32x32xf32> -> vector<32x32xf32>
    %c0_3 = arith.constant 0 : index
    %c0_4 = arith.constant 0 : index
    %3 = vector.load %arg1[%c0_3, %c0_4] : memref<32x32xf32, #tpu.memory_space<vmem>>, vector<32x32xf32>
    %4 = arith.addf %2, %3 : vector<32x32xf32>
    %5 = tpu.iota {dimensions = array<i32: 0>} : vector<32x32xi32>
    %c4_i32 = arith.constant 4 : i32
    %c0_i32 = arith.constant 0 : i32
    %6 = arith.cmpi eq, %c4_i32, %c0_i32 : i32
    %c1_i32 = arith.constant 1 : i32
    %7 = arith.select %6, %c1_i32, %c4_i32 : i32
    %8 = vector.broadcast %7 : i32 to vector<32x32xi32>
    %9 = arith.remsi %5, %8 : vector<32x32xi32>
    %c0_i32_5 = arith.constant 0 : i32
    %10 = vector.broadcast %c0_i32_5 : i32 to vector<32x32xi32>
    %11 = arith.cmpi ne, %9, %10 : vector<32x32xi32>
    %c0_i32_6 = arith.constant 0 : i32
    %12 = vector.broadcast %c0_i32_6 : i32 to vector<32x32xi32>
    %13 = arith.cmpi slt, %9, %12 : vector<32x32xi32>
    %c0_i32_7 = arith.constant 0 : i32
    %14 = arith.cmpi slt, %7, %c0_i32_7 : i32
    %15 = vector.broadcast %14 : i1 to vector<32x32xi1>
    %16 = vector.broadcast %15 : vector<32x32xi1> to vector<32x32xi1>
    %17 = arith.xori %13, %16 : vector<32x32xi1>
    %18 = arith.andi %17, %11 : vector<32x32xi1>
    %19 = vector.broadcast %7 : i32 to vector<32x32xi32>
    %20 = arith.addi %9, %19 : vector<32x32xi32>
    %21 = arith.select %18, %20, %9 : vector<32x32xi1>, vector<32x32xi32>
    %22 = tpu.iota {dimensions = array<i32: 1>} : vector<32x32xi32>
    %c4_i32_8 = arith.constant 4 : i32
    %c0_i32_9 = arith.constant 0 : i32
    %23 = arith.cmpi eq, %c4_i32_8, %c0_i32_9 : i32
    %c1_i32_10 = arith.constant 1 : i32
    %24 = arith.select %23, %c1_i32_10, %c4_i32_8 : i32
    %25 = vector.broadcast %24 : i32 to vector<32x32xi32>
    %26 = arith.remsi %22, %25 : vector<32x32xi32>
    %c0_i32_11 = arith.constant 0 : i32
    %27 = vector.broadcast %c0_i32_11 : i32 to vector<32x32xi32>
    %28 = arith.cmpi ne, %26, %27 : vector<32x32xi32>
    %c0_i32_12 = arith.constant 0 : i32
    %29 = vector.broadcast %c0_i32_12 : i32 to vector<32x32xi32>
    %30 = arith.cmpi slt, %26, %29 : vector<32x32xi32>
    %c0_i32_13 = arith.constant 0 : i32
    %31 = arith.cmpi slt, %24, %c0_i32_13 : i32
    %32 = vector.broadcast %31 : i1 to vector<32x32xi1>
    %33 = vector.broadcast %32 : vector<32x32xi1> to vector<32x32xi1>
    %34 = arith.xori %30, %33 : vector<32x32xi1>
    %35 = arith.andi %34, %28 : vector<32x32xi1>
    %36 = vector.broadcast %24 : i32 to vector<32x32xi32>
    %37 = arith.addi %26, %36 : vector<32x32xi32>
    %38 = arith.select %35, %37, %26 : vector<32x32xi1>, vector<32x32xi32>
    %39 = arith.cmpi eq, %21, %38 : vector<32x32xi32>
    %40 = vector.shape_cast %39 : vector<32x32xi1> to vector<1x32x32xi1>
    %41 = vector.shape_cast %40 : vector<1x32x32xi1> to vector<1x32x32xi1>
    %42 = vector.broadcast %41 : vector<1x32x32xi1> to vector<4x32x32xi1>
    %c0_14 = arith.constant 0 : index
    %c0_15 = arith.constant 0 : index
    %c0_16 = arith.constant 0 : index
    %43 = vector.load %arg3[%c0_14, %c0_15, %c0_16] : memref<2x32x256xf32, #tpu.memory_space<vmem>>, vector<1x32x256xf32>
    %44 = vector.shape_cast %43 : vector<1x32x256xf32> to vector<32x256xf32>
    %c0_17 = arith.constant 0 : index
    %c0_18 = arith.constant 0 : index
    %c0_19 = arith.constant 0 : index
    %45 = vector.load %arg5[%c0_17, %c0_18, %c0_19] : memref<2x4x64xf32, #tpu.memory_space<vmem>>, vector<1x4x64xf32>
    %46 = vector.shape_cast %45 : vector<1x4x64xf32> to vector<4x64xf32>
    %47 = vector.extract_strided_slice %44 {offsets = [0, 0], sizes = [32, 160], strides = [1, 1]} : vector<32x256xf32> to vector<32x160xf32>
    %cst_20 = arith.constant dense<0.000000e+00> : vector<32x160xf32>
    %48 = tpu.matmul %4, %47, %cst_20 {dimension_numbers = #tpu.dot_dimension_numbers<[1], [0], [0], [1], [0, 0, 1, 1], [], []>} : vector<32x32xf32>, vector<32x160xf32>, vector<32x160xf32> -> vector<32x160xf32>
    %49 = vector.extract_strided_slice %48 {offsets = [0, 0], sizes = [32, 32], strides = [1, 1]} : vector<32x160xf32> to vector<32x32xf32>
    %50 = vector.extract_strided_slice %49 {offsets = [0, 0], sizes = [32, 8], strides = [1, 1]} : vector<32x32xf32> to vector<32x8xf32>
    %51 = vector.extract_strided_slice %49 {offsets = [0, 8], sizes = [32, 8], strides = [1, 1]} : vector<32x32xf32> to vector<32x8xf32>
    %52 = vector.extract_strided_slice %49 {offsets = [0, 16], sizes = [32, 8], strides = [1, 1]} : vector<32x32xf32> to vector<32x8xf32>
    %53 = vector.extract_strided_slice %49 {offsets = [0, 24], sizes = [32, 8], strides = [1, 1]} : vector<32x32xf32> to vector<32x8xf32>
    %54 = vector.shape_cast %50 : vector<32x8xf32> to vector<1x32x8xf32>
    %55 = vector.shape_cast %51 : vector<32x8xf32> to vector<1x32x8xf32>
    %56 = vector.shape_cast %52 : vector<32x8xf32> to vector<1x32x8xf32>
    %57 = vector.shape_cast %53 : vector<32x8xf32> to vector<1x32x8xf32>
    %58 = tpu.concatenate %54, %55, %56, %57 in 0 : vector<1x32x8xf32>, vector<1x32x8xf32>, vector<1x32x8xf32>, vector<1x32x8xf32> -> vector<4x32x8xf32>
    %59 = vector.extract_strided_slice %48 {offsets = [0, 32], sizes = [32, 32], strides = [1, 1]} : vector<32x160xf32> to vector<32x32xf32>
    %60 = vector.extract_strided_slice %59 {offsets = [0, 0], sizes = [32, 8], strides = [1, 1]} : vector<32x32xf32> to vector<32x8xf32>
    %61 = vector.extract_strided_slice %59 {offsets = [0, 8], sizes = [32, 8], strides = [1, 1]} : vector<32x32xf32> to vector<32x8xf32>
    %62 = vector.extract_strided_slice %59 {offsets = [0, 16], sizes = [32, 8], strides = [1, 1]} : vector<32x32xf32> to vector<32x8xf32>
    %63 = vector.extract_strided_slice %59 {offsets = [0, 24], sizes = [32, 8], strides = [1, 1]} : vector<32x32xf32> to vector<32x8xf32>
    %64 = vector.shape_cast %60 : vector<32x8xf32> to vector<1x32x8xf32>
    %65 = vector.shape_cast %61 : vector<32x8xf32> to vector<1x32x8xf32>
    %66 = vector.shape_cast %62 : vector<32x8xf32> to vector<1x32x8xf32>
    %67 = vector.shape_cast %63 : vector<32x8xf32> to vector<1x32x8xf32>
    %68 = tpu.concatenate %64, %65, %66, %67 in 0 : vector<1x32x8xf32>, vector<1x32x8xf32>, vector<1x32x8xf32>, vector<1x32x8xf32> -> vector<4x32x8xf32>
    %69 = vector.extract_strided_slice %48 {offsets = [0, 64], sizes = [32, 32], strides = [1, 1]} : vector<32x160xf32> to vector<32x32xf32>
    %70 = vector.extract_strided_slice %69 {offsets = [0, 0], sizes = [32, 8], strides = [1, 1]} : vector<32x32xf32> to vector<32x8xf32>
    %71 = vector.extract_strided_slice %69 {offsets = [0, 8], sizes = [32, 8], strides = [1, 1]} : vector<32x32xf32> to vector<32x8xf32>
    %72 = vector.extract_strided_slice %69 {offsets = [0, 16], sizes = [32, 8], strides = [1, 1]} : vector<32x32xf32> to vector<32x8xf32>
    %73 = vector.extract_strided_slice %69 {offsets = [0, 24], sizes = [32, 8], strides = [1, 1]} : vector<32x32xf32> to vector<32x8xf32>
    %74 = vector.shape_cast %70 : vector<32x8xf32> to vector<1x32x8xf32>
    %75 = vector.shape_cast %71 : vector<32x8xf32> to vector<1x32x8xf32>
    %76 = vector.shape_cast %72 : vector<32x8xf32> to vector<1x32x8xf32>
    %77 = vector.shape_cast %73 : vector<32x8xf32> to vector<1x32x8xf32>
    %78 = tpu.concatenate %74, %75, %76, %77 in 0 : vector<1x32x8xf32>, vector<1x32x8xf32>, vector<1x32x8xf32>, vector<1x32x8xf32> -> vector<4x32x8xf32>
    %79 = vector.extract_strided_slice %48 {offsets = [0, 96], sizes = [32, 32], strides = [1, 1]} : vector<32x160xf32> to vector<32x32xf32>
    %80 = vector.extract_strided_slice %79 {offsets = [0, 0], sizes = [32, 8], strides = [1, 1]} : vector<32x32xf32> to vector<32x8xf32>
    %81 = vector.extract_strided_slice %79 {offsets = [0, 8], sizes = [32, 8], strides = [1, 1]} : vector<32x32xf32> to vector<32x8xf32>
    %82 = vector.extract_strided_slice %79 {offsets = [0, 16], sizes = [32, 8], strides = [1, 1]} : vector<32x32xf32> to vector<32x8xf32>
    %83 = vector.extract_strided_slice %79 {offsets = [0, 24], sizes = [32, 8], strides = [1, 1]} : vector<32x32xf32> to vector<32x8xf32>
    %84 = vector.shape_cast %80 : vector<32x8xf32> to vector<1x32x8xf32>
    %85 = vector.shape_cast %81 : vector<32x8xf32> to vector<1x32x8xf32>
    %86 = vector.shape_cast %82 : vector<32x8xf32> to vector<1x32x8xf32>
    %87 = vector.shape_cast %83 : vector<32x8xf32> to vector<1x32x8xf32>
    %88 = tpu.concatenate %84, %85, %86, %87 in 0 : vector<1x32x8xf32>, vector<1x32x8xf32>, vector<1x32x8xf32>, vector<1x32x8xf32> -> vector<4x32x8xf32>
    %89 = vector.extract_strided_slice %48 {offsets = [0, 128], sizes = [32, 32], strides = [1, 1]} : vector<32x160xf32> to vector<32x32xf32>
    %90 = vector.extract_strided_slice %89 {offsets = [0, 0], sizes = [32, 8], strides = [1, 1]} : vector<32x32xf32> to vector<32x8xf32>
    %91 = vector.extract_strided_slice %89 {offsets = [0, 8], sizes = [32, 8], strides = [1, 1]} : vector<32x32xf32> to vector<32x8xf32>
    %92 = vector.extract_strided_slice %89 {offsets = [0, 16], sizes = [32, 8], strides = [1, 1]} : vector<32x32xf32> to vector<32x8xf32>
    %93 = vector.extract_strided_slice %89 {offsets = [0, 24], sizes = [32, 8], strides = [1, 1]} : vector<32x32xf32> to vector<32x8xf32>
    %94 = vector.shape_cast %90 : vector<32x8xf32> to vector<1x32x8xf32>
    %95 = vector.shape_cast %91 : vector<32x8xf32> to vector<1x32x8xf32>
    %96 = vector.shape_cast %92 : vector<32x8xf32> to vector<1x32x8xf32>
    %97 = vector.shape_cast %93 : vector<32x8xf32> to vector<1x32x8xf32>
    %98 = tpu.concatenate %94, %95, %96, %97 in 0 : vector<1x32x8xf32>, vector<1x32x8xf32>, vector<1x32x8xf32>, vector<1x32x8xf32> -> vector<4x32x8xf32>
    "tpu.trace_start"() <{level = 10 : i32, message = "hqd,hkd->hqk"}> : () -> ()
    %cst_21 = arith.constant dense<0.000000e+00> : vector<4x32x32xf32>
    %99 = tpu.matmul %58, %68, %cst_21 {dimension_numbers = #tpu.dot_dimension_numbers<[2], [2], [1], [1], [0, 0, 0, 1, 1, 1], [0], [0]>} : vector<4x32x8xf32>, vector<4x32x8xf32>, vector<4x32x32xf32> -> vector<4x32x32xf32>
    %cst_22 = arith.constant dense<0.000000e+00> : vector<4x32x32xf32>
    %100 = tpu.matmul %78, %88, %cst_22 {dimension_numbers = #tpu.dot_dimension_numbers<[2], [2], [1], [1], [0, 0, 0, 1, 1, 1], [0], [0]>} : vector<4x32x8xf32>, vector<4x32x8xf32>, vector<4x32x32xf32> -> vector<4x32x32xf32>
    "tpu.trace_stop"() : () -> ()
    %101 = arith.select %42, %99, %100 : vector<4x32x32xi1>, vector<4x32x32xf32>
    %cst_23 = arith.constant 0.353553385 : f32
    %102 = vector.broadcast %cst_23 : f32 to vector<4x32x32xf32>
    %103 = arith.mulf %101, %102 : vector<4x32x32xf32>
    %cst_24 = arith.constant dense<0xFF800000> : vector<4x32xf32>
    %104 = vector.multi_reduction <maximumf>, %103, %cst_24 [2] : vector<4x32x32xf32> to vector<4x32xf32>
    %105 = vector.shape_cast %104 : vector<4x32xf32> to vector<4x32x1xf32>
    %106 = vector.broadcast %105 : vector<4x32x1xf32> to vector<4x32x32xf32>
    %107 = arith.subf %103, %106 : vector<4x32x32xf32>
    %108 = math.exp %107 : vector<4x32x32xf32>
    %cst_25 = arith.constant dense<0.000000e+00> : vector<4x32xf32>
    %109 = vector.multi_reduction <add>, %108, %cst_25 [2] : vector<4x32x32xf32> to vector<4x32xf32>
    %110 = vector.shape_cast %109 : vector<4x32xf32> to vector<4x32x1xf32>
    %111 = tpu.reciprocal %110 {approx = true} : vector<4x32x1xf32> -> vector<4x32x1xf32>
    %112 = vector.broadcast %111 : vector<4x32x1xf32> to vector<4x32x32xf32>
    %113 = arith.mulf %108, %112 : vector<4x32x32xf32>
    "tpu.trace_start"() <{level = 10 : i32, message = "hqk,hkd->hqd"}> : () -> ()
    %cst_26 = arith.constant dense<0.000000e+00> : vector<4x32x8xf32>
    %114 = tpu.matmul %113, %98, %cst_26 {dimension_numbers = #tpu.dot_dimension_numbers<[2], [1], [1], [2], [0, 0, 0, 1, 1, 2], [0], [0]>} : vector<4x32x32xf32>, vector<4x32x8xf32>, vector<4x32x8xf32> -> vector<4x32x8xf32>
    "tpu.trace_stop"() : () -> ()
    %115 = vector.extract_strided_slice %114 {offsets = [0, 0, 0], sizes = [1, 32, 8], strides = [1, 1, 1]} : vector<4x32x8xf32> to vector<1x32x8xf32>
    %116 = vector.shape_cast %115 : vector<1x32x8xf32> to vector<32x8xf32>
    %117 = vector.extract_strided_slice %114 {offsets = [1, 0, 0], sizes = [1, 32, 8], strides = [1, 1, 1]} : vector<4x32x8xf32> to vector<1x32x8xf32>
    %118 = vector.shape_cast %117 : vector<1x32x8xf32> to vector<32x8xf32>
    %119 = vector.extract_strided_slice %114 {offsets = [2, 0, 0], sizes = [1, 32, 8], strides = [1, 1, 1]} : vector<4x32x8xf32> to vector<1x32x8xf32>
    %120 = vector.shape_cast %119 : vector<1x32x8xf32> to vector<32x8xf32>
    %121 = vector.extract_strided_slice %114 {offsets = [3, 0, 0], sizes = [1, 32, 8], strides = [1, 1, 1]} : vector<4x32x8xf32> to vector<1x32x8xf32>
    %122 = vector.shape_cast %121 : vector<1x32x8xf32> to vector<32x8xf32>
    %123 = tpu.concatenate %116, %118, %120, %122 in 1 : vector<32x8xf32>, vector<32x8xf32>, vector<32x8xf32>, vector<32x8xf32> -> vector<32x32xf32>
    %124 = vector.extract_strided_slice %44 {offsets = [0, 160], sizes = [32, 32], strides = [1, 1]} : vector<32x256xf32> to vector<32x32xf32>
    %cst_27 = arith.constant dense<0.000000e+00> : vector<32x32xf32>
    %125 = tpu.matmul %123, %124, %cst_27 {dimension_numbers = #tpu.dot_dimension_numbers<[1], [0], [0], [1], [0, 0, 1, 1], [], []>} : vector<32x32xf32>, vector<32x32xf32>, vector<32x32xf32> -> vector<32x32xf32>
    %126 = arith.addf %4, %125 : vector<32x32xf32>
    %127 = vector.extract_strided_slice %46 {offsets = [1, 0], sizes = [1, 32], strides = [1, 1]} : vector<4x64xf32> to vector<1x32xf32>
    %128 = vector.extract_strided_slice %46 {offsets = [1, 32], sizes = [1, 32], strides = [1, 1]} : vector<4x64xf32> to vector<1x32xf32>
    %cst_28 = arith.constant dense<0.000000e+00> : vector<32xf32>
    %129 = vector.multi_reduction <add>, %126, %cst_28 [1] : vector<32x32xf32> to vector<32xf32>
    %130 = vector.shape_cast %129 : vector<32xf32> to vector<32x1xf32>
    %cst_29 = arith.constant 3.200000e+01 : f32
    %131 = vector.broadcast %cst_29 : f32 to vector<32x1xf32>
    %132 = arith.divf %130, %131 : vector<32x1xf32>
    %133 = vector.broadcast %132 : vector<32x1xf32> to vector<32x32xf32>
    %134 = arith.subf %126, %133 : vector<32x32xf32>
    %135 = arith.mulf %134, %134 : vector<32x32xf32>
    %cst_30 = arith.constant dense<0.000000e+00> : vector<32xf32>
    %136 = vector.multi_reduction <add>, %135, %cst_30 [1] : vector<32x32xf32> to vector<32xf32>
    %137 = vector.shape_cast %136 : vector<32xf32> to vector<32x1xf32>
    %cst_31 = arith.constant 3.200000e+01 : f32
    %138 = vector.broadcast %cst_31 : f32 to vector<32x1xf32>
    %139 = arith.divf %137, %138 : vector<32x1xf32>
    %140 = vector.broadcast %132 : vector<32x1xf32> to vector<32x32xf32>
    %141 = arith.subf %126, %140 : vector<32x32xf32>
    %cst_32 = arith.constant 9.99999974E-6 : f32
    %142 = vector.broadcast %cst_32 : f32 to vector<32x1xf32>
    %143 = arith.addf %139, %142 : vector<32x1xf32>
    %144 = math.rsqrt %143 : vector<32x1xf32>
    %145 = vector.broadcast %144 : vector<32x1xf32> to vector<32x32xf32>
    %146 = arith.mulf %141, %145 : vector<32x32xf32>
    %147 = vector.broadcast %127 : vector<1x32xf32> to vector<32x32xf32>
    %148 = arith.mulf %146, %147 : vector<32x32xf32>
    %149 = vector.broadcast %128 : vector<1x32xf32> to vector<32x32xf32>
    %150 = arith.addf %148, %149 : vector<32x32xf32>
    %151 = vector.extract_strided_slice %44 {offsets = [0, 192], sizes = [32, 64], strides = [1, 1]} : vector<32x256xf32> to vector<32x64xf32>
    %cst_33 = arith.constant dense<0.000000e+00> : vector<32x64xf32>
    %152 = tpu.matmul %150, %151, %cst_33 {dimension_numbers = #tpu.dot_dimension_numbers<[1], [0], [0], [1], [0, 0, 1, 1], [], []>} : vector<32x32xf32>, vector<32x64xf32>, vector<32x64xf32> -> vector<32x64xf32>
    %153 = vector.extract_strided_slice %46 {offsets = [0, 0], sizes = [1, 64], strides = [1, 1]} : vector<4x64xf32> to vector<1x64xf32>
    %154 = vector.broadcast %153 : vector<1x64xf32> to vector<32x64xf32>
    %155 = arith.addf %152, %154 : vector<32x64xf32>
    %cst_34 = arith.constant 0.000000e+00 : f32
    %156 = vector.broadcast %cst_34 : f32 to vector<32x64xf32>
    %157 = arith.maximumf %155, %156 : vector<32x64xf32>
    %c0_35 = arith.constant 0 : index
    %c0_36 = arith.constant 0 : index
    %c0_37 = arith.constant 0 : index
    %158 = vector.load %arg4[%c0_35, %c0_36, %c0_37] : memref<2x64x32xf32, #tpu.memory_space<vmem>>, vector<1x64x32xf32>
    %159 = vector.shape_cast %158 : vector<1x64x32xf32> to vector<64x32xf32>
    %cst_38 = arith.constant dense<0.000000e+00> : vector<32x32xf32>
    %160 = tpu.matmul %157, %159, %cst_38 {dimension_numbers = #tpu.dot_dimension_numbers<[1], [0], [0], [1], [0, 0, 1, 1], [], []>} : vector<32x64xf32>, vector<64x32xf32>, vector<32x32xf32> -> vector<32x32xf32>
    %161 = arith.addf %150, %160 : vector<32x32xf32>
    %162 = vector.extract_strided_slice %46 {offsets = [3, 0], sizes = [1, 32], strides = [1, 1]} : vector<4x64xf32> to vector<1x32xf32>
    %163 = vector.broadcast %162 : vector<1x32xf32> to vector<32x32xf32>
    %164 = arith.addf %161, %163 : vector<32x32xf32>
    %165 = vector.extract_strided_slice %46 {offsets = [2, 0], sizes = [1, 32], strides = [1, 1]} : vector<4x64xf32> to vector<1x32xf32>
    %166 = vector.extract_strided_slice %46 {offsets = [2, 32], sizes = [1, 32], strides = [1, 1]} : vector<4x64xf32> to vector<1x32xf32>
    %cst_39 = arith.constant dense<0.000000e+00> : vector<32xf32>
    %167 = vector.multi_reduction <add>, %164, %cst_39 [1] : vector<32x32xf32> to vector<32xf32>
    %168 = vector.shape_cast %167 : vector<32xf32> to vector<32x1xf32>
    %cst_40 = arith.constant 3.200000e+01 : f32
    %169 = vector.broadcast %cst_40 : f32 to vector<32x1xf32>
    %170 = arith.divf %168, %169 : vector<32x1xf32>
    %171 = vector.broadcast %170 : vector<32x1xf32> to vector<32x32xf32>
    %172 = arith.subf %164, %171 : vector<32x32xf32>
    %173 = arith.mulf %172, %172 : vector<32x32xf32>
    %cst_41 = arith.constant dense<0.000000e+00> : vector<32xf32>
    %174 = vector.multi_reduction <add>, %173, %cst_41 [1] : vector<32x32xf32> to vector<32xf32>
    %175 = vector.shape_cast %174 : vector<32xf32> to vector<32x1xf32>
    %cst_42 = arith.constant 3.200000e+01 : f32
    %176 = vector.broadcast %cst_42 : f32 to vector<32x1xf32>
    %177 = arith.divf %175, %176 : vector<32x1xf32>
    %178 = vector.broadcast %170 : vector<32x1xf32> to vector<32x32xf32>
    %179 = arith.subf %164, %178 : vector<32x32xf32>
    %cst_43 = arith.constant 9.99999974E-6 : f32
    %180 = vector.broadcast %cst_43 : f32 to vector<32x1xf32>
    %181 = arith.addf %177, %180 : vector<32x1xf32>
    %182 = math.rsqrt %181 : vector<32x1xf32>
    %183 = vector.broadcast %182 : vector<32x1xf32> to vector<32x32xf32>
    %184 = arith.mulf %179, %183 : vector<32x32xf32>
    %185 = vector.broadcast %165 : vector<1x32xf32> to vector<32x32xf32>
    %186 = arith.mulf %184, %185 : vector<32x32xf32>
    %187 = vector.broadcast %166 : vector<1x32xf32> to vector<32x32xf32>
    %188 = arith.addf %186, %187 : vector<32x32xf32>
    %c1 = arith.constant 1 : index
    %c0_44 = arith.constant 0 : index
    %c0_45 = arith.constant 0 : index
    %189 = vector.load %arg3[%c1, %c0_44, %c0_45] : memref<2x32x256xf32, #tpu.memory_space<vmem>>, vector<1x32x256xf32>
    %190 = vector.shape_cast %189 : vector<1x32x256xf32> to vector<32x256xf32>
    %c1_46 = arith.constant 1 : index
    %c0_47 = arith.constant 0 : index
    %c0_48 = arith.constant 0 : index
    %191 = vector.load %arg5[%c1_46, %c0_47, %c0_48] : memref<2x4x64xf32, #tpu.memory_space<vmem>>, vector<1x4x64xf32>
    %192 = vector.shape_cast %191 : vector<1x4x64xf32> to vector<4x64xf32>
    %193 = vector.extract_strided_slice %190 {offsets = [0, 0], sizes = [32, 160], strides = [1, 1]} : vector<32x256xf32> to vector<32x160xf32>
    %cst_49 = arith.constant dense<0.000000e+00> : vector<32x160xf32>
    %194 = tpu.matmul %188, %193, %cst_49 {dimension_numbers = #tpu.dot_dimension_numbers<[1], [0], [0], [1], [0, 0, 1, 1], [], []>} : vector<32x32xf32>, vector<32x160xf32>, vector<32x160xf32> -> vector<32x160xf32>
    %195 = vector.extract_strided_slice %194 {offsets = [0, 0], sizes = [32, 32], strides = [1, 1]} : vector<32x160xf32> to vector<32x32xf32>
    %196 = vector.extract_strided_slice %195 {offsets = [0, 0], sizes = [32, 8], strides = [1, 1]} : vector<32x32xf32> to vector<32x8xf32>
    %197 = vector.extract_strided_slice %195 {offsets = [0, 8], sizes = [32, 8], strides = [1, 1]} : vector<32x32xf32> to vector<32x8xf32>
    %198 = vector.extract_strided_slice %195 {offsets = [0, 16], sizes = [32, 8], strides = [1, 1]} : vector<32x32xf32> to vector<32x8xf32>
    %199 = vector.extract_strided_slice %195 {offsets = [0, 24], sizes = [32, 8], strides = [1, 1]} : vector<32x32xf32> to vector<32x8xf32>
    %200 = vector.shape_cast %196 : vector<32x8xf32> to vector<1x32x8xf32>
    %201 = vector.shape_cast %197 : vector<32x8xf32> to vector<1x32x8xf32>
    %202 = vector.shape_cast %198 : vector<32x8xf32> to vector<1x32x8xf32>
    %203 = vector.shape_cast %199 : vector<32x8xf32> to vector<1x32x8xf32>
    %204 = tpu.concatenate %200, %201, %202, %203 in 0 : vector<1x32x8xf32>, vector<1x32x8xf32>, vector<1x32x8xf32>, vector<1x32x8xf32> -> vector<4x32x8xf32>
    %205 = vector.extract_strided_slice %194 {offsets = [0, 32], sizes = [32, 32], strides = [1, 1]} : vector<32x160xf32> to vector<32x32xf32>
    %206 = vector.extract_strided_slice %205 {offsets = [0, 0], sizes = [32, 8], strides = [1, 1]} : vector<32x32xf32> to vector<32x8xf32>
    %207 = vector.extract_strided_slice %205 {offsets = [0, 8], sizes = [32, 8], strides = [1, 1]} : vector<32x32xf32> to vector<32x8xf32>
    %208 = vector.extract_strided_slice %205 {offsets = [0, 16], sizes = [32, 8], strides = [1, 1]} : vector<32x32xf32> to vector<32x8xf32>
    %209 = vector.extract_strided_slice %205 {offsets = [0, 24], sizes = [32, 8], strides = [1, 1]} : vector<32x32xf32> to vector<32x8xf32>
    %210 = vector.shape_cast %206 : vector<32x8xf32> to vector<1x32x8xf32>
    %211 = vector.shape_cast %207 : vector<32x8xf32> to vector<1x32x8xf32>
    %212 = vector.shape_cast %208 : vector<32x8xf32> to vector<1x32x8xf32>
    %213 = vector.shape_cast %209 : vector<32x8xf32> to vector<1x32x8xf32>
    %214 = tpu.concatenate %210, %211, %212, %213 in 0 : vector<1x32x8xf32>, vector<1x32x8xf32>, vector<1x32x8xf32>, vector<1x32x8xf32> -> vector<4x32x8xf32>
    %215 = vector.extract_strided_slice %194 {offsets = [0, 64], sizes = [32, 32], strides = [1, 1]} : vector<32x160xf32> to vector<32x32xf32>
    %216 = vector.extract_strided_slice %215 {offsets = [0, 0], sizes = [32, 8], strides = [1, 1]} : vector<32x32xf32> to vector<32x8xf32>
    %217 = vector.extract_strided_slice %215 {offsets = [0, 8], sizes = [32, 8], strides = [1, 1]} : vector<32x32xf32> to vector<32x8xf32>
    %218 = vector.extract_strided_slice %215 {offsets = [0, 16], sizes = [32, 8], strides = [1, 1]} : vector<32x32xf32> to vector<32x8xf32>
    %219 = vector.extract_strided_slice %215 {offsets = [0, 24], sizes = [32, 8], strides = [1, 1]} : vector<32x32xf32> to vector<32x8xf32>
    %220 = vector.shape_cast %216 : vector<32x8xf32> to vector<1x32x8xf32>
    %221 = vector.shape_cast %217 : vector<32x8xf32> to vector<1x32x8xf32>
    %222 = vector.shape_cast %218 : vector<32x8xf32> to vector<1x32x8xf32>
    %223 = vector.shape_cast %219 : vector<32x8xf32> to vector<1x32x8xf32>
    %224 = tpu.concatenate %220, %221, %222, %223 in 0 : vector<1x32x8xf32>, vector<1x32x8xf32>, vector<1x32x8xf32>, vector<1x32x8xf32> -> vector<4x32x8xf32>
    %225 = vector.extract_strided_slice %194 {offsets = [0, 96], sizes = [32, 32], strides = [1, 1]} : vector<32x160xf32> to vector<32x32xf32>
    %226 = vector.extract_strided_slice %225 {offsets = [0, 0], sizes = [32, 8], strides = [1, 1]} : vector<32x32xf32> to vector<32x8xf32>
    %227 = vector.extract_strided_slice %225 {offsets = [0, 8], sizes = [32, 8], strides = [1, 1]} : vector<32x32xf32> to vector<32x8xf32>
    %228 = vector.extract_strided_slice %225 {offsets = [0, 16], sizes = [32, 8], strides = [1, 1]} : vector<32x32xf32> to vector<32x8xf32>
    %229 = vector.extract_strided_slice %225 {offsets = [0, 24], sizes = [32, 8], strides = [1, 1]} : vector<32x32xf32> to vector<32x8xf32>
    %230 = vector.shape_cast %226 : vector<32x8xf32> to vector<1x32x8xf32>
    %231 = vector.shape_cast %227 : vector<32x8xf32> to vector<1x32x8xf32>
    %232 = vector.shape_cast %228 : vector<32x8xf32> to vector<1x32x8xf32>
    %233 = vector.shape_cast %229 : vector<32x8xf32> to vector<1x32x8xf32>
    %234 = tpu.concatenate %230, %231, %232, %233 in 0 : vector<1x32x8xf32>, vector<1x32x8xf32>, vector<1x32x8xf32>, vector<1x32x8xf32> -> vector<4x32x8xf32>
    %235 = vector.extract_strided_slice %194 {offsets = [0, 128], sizes = [32, 32], strides = [1, 1]} : vector<32x160xf32> to vector<32x32xf32>
    %236 = vector.extract_strided_slice %235 {offsets = [0, 0], sizes = [32, 8], strides = [1, 1]} : vector<32x32xf32> to vector<32x8xf32>
    %237 = vector.extract_strided_slice %235 {offsets = [0, 8], sizes = [32, 8], strides = [1, 1]} : vector<32x32xf32> to vector<32x8xf32>
    %238 = vector.extract_strided_slice %235 {offsets = [0, 16], sizes = [32, 8], strides = [1, 1]} : vector<32x32xf32> to vector<32x8xf32>
    %239 = vector.extract_strided_slice %235 {offsets = [0, 24], sizes = [32, 8], strides = [1, 1]} : vector<32x32xf32> to vector<32x8xf32>
    %240 = vector.shape_cast %236 : vector<32x8xf32> to vector<1x32x8xf32>
    %241 = vector.shape_cast %237 : vector<32x8xf32> to vector<1x32x8xf32>
    %242 = vector.shape_cast %238 : vector<32x8xf32> to vector<1x32x8xf32>
    %243 = vector.shape_cast %239 : vector<32x8xf32> to vector<1x32x8xf32>
    %244 = tpu.concatenate %240, %241, %242, %243 in 0 : vector<1x32x8xf32>, vector<1x32x8xf32>, vector<1x32x8xf32>, vector<1x32x8xf32> -> vector<4x32x8xf32>
    "tpu.trace_start"() <{level = 10 : i32, message = "hqd,hkd->hqk"}> : () -> ()
    %cst_50 = arith.constant dense<0.000000e+00> : vector<4x32x32xf32>
    %245 = tpu.matmul %204, %214, %cst_50 {dimension_numbers = #tpu.dot_dimension_numbers<[2], [2], [1], [1], [0, 0, 0, 1, 1, 1], [0], [0]>} : vector<4x32x8xf32>, vector<4x32x8xf32>, vector<4x32x32xf32> -> vector<4x32x32xf32>
    %cst_51 = arith.constant dense<0.000000e+00> : vector<4x32x32xf32>
    %246 = tpu.matmul %224, %234, %cst_51 {dimension_numbers = #tpu.dot_dimension_numbers<[2], [2], [1], [1], [0, 0, 0, 1, 1, 1], [0], [0]>} : vector<4x32x8xf32>, vector<4x32x8xf32>, vector<4x32x32xf32> -> vector<4x32x32xf32>
    "tpu.trace_stop"() : () -> ()
    %247 = arith.select %42, %245, %246 : vector<4x32x32xi1>, vector<4x32x32xf32>
    %cst_52 = arith.constant 0.353553385 : f32
    %248 = vector.broadcast %cst_52 : f32 to vector<4x32x32xf32>
    %249 = arith.mulf %247, %248 : vector<4x32x32xf32>
    %cst_53 = arith.constant dense<0xFF800000> : vector<4x32xf32>
    %250 = vector.multi_reduction <maximumf>, %249, %cst_53 [2] : vector<4x32x32xf32> to vector<4x32xf32>
    %251 = vector.shape_cast %250 : vector<4x32xf32> to vector<4x32x1xf32>
    %252 = vector.broadcast %251 : vector<4x32x1xf32> to vector<4x32x32xf32>
    %253 = arith.subf %249, %252 : vector<4x32x32xf32>
    %254 = math.exp %253 : vector<4x32x32xf32>
    %cst_54 = arith.constant dense<0.000000e+00> : vector<4x32xf32>
    %255 = vector.multi_reduction <add>, %254, %cst_54 [2] : vector<4x32x32xf32> to vector<4x32xf32>
    %256 = vector.shape_cast %255 : vector<4x32xf32> to vector<4x32x1xf32>
    %257 = tpu.reciprocal %256 {approx = true} : vector<4x32x1xf32> -> vector<4x32x1xf32>
    %258 = vector.broadcast %257 : vector<4x32x1xf32> to vector<4x32x32xf32>
    %259 = arith.mulf %254, %258 : vector<4x32x32xf32>
    "tpu.trace_start"() <{level = 10 : i32, message = "hqk,hkd->hqd"}> : () -> ()
    %cst_55 = arith.constant dense<0.000000e+00> : vector<4x32x8xf32>
    %260 = tpu.matmul %259, %244, %cst_55 {dimension_numbers = #tpu.dot_dimension_numbers<[2], [1], [1], [2], [0, 0, 0, 1, 1, 2], [0], [0]>} : vector<4x32x32xf32>, vector<4x32x8xf32>, vector<4x32x8xf32> -> vector<4x32x8xf32>
    "tpu.trace_stop"() : () -> ()
    %261 = vector.extract_strided_slice %260 {offsets = [0, 0, 0], sizes = [1, 32, 8], strides = [1, 1, 1]} : vector<4x32x8xf32> to vector<1x32x8xf32>
    %262 = vector.shape_cast %261 : vector<1x32x8xf32> to vector<32x8xf32>
    %263 = vector.extract_strided_slice %260 {offsets = [1, 0, 0], sizes = [1, 32, 8], strides = [1, 1, 1]} : vector<4x32x8xf32> to vector<1x32x8xf32>
    %264 = vector.shape_cast %263 : vector<1x32x8xf32> to vector<32x8xf32>
    %265 = vector.extract_strided_slice %260 {offsets = [2, 0, 0], sizes = [1, 32, 8], strides = [1, 1, 1]} : vector<4x32x8xf32> to vector<1x32x8xf32>
    %266 = vector.shape_cast %265 : vector<1x32x8xf32> to vector<32x8xf32>
    %267 = vector.extract_strided_slice %260 {offsets = [3, 0, 0], sizes = [1, 32, 8], strides = [1, 1, 1]} : vector<4x32x8xf32> to vector<1x32x8xf32>
    %268 = vector.shape_cast %267 : vector<1x32x8xf32> to vector<32x8xf32>
    %269 = tpu.concatenate %262, %264, %266, %268 in 1 : vector<32x8xf32>, vector<32x8xf32>, vector<32x8xf32>, vector<32x8xf32> -> vector<32x32xf32>
    %270 = vector.extract_strided_slice %190 {offsets = [0, 160], sizes = [32, 32], strides = [1, 1]} : vector<32x256xf32> to vector<32x32xf32>
    %cst_56 = arith.constant dense<0.000000e+00> : vector<32x32xf32>
    %271 = tpu.matmul %269, %270, %cst_56 {dimension_numbers = #tpu.dot_dimension_numbers<[1], [0], [0], [1], [0, 0, 1, 1], [], []>} : vector<32x32xf32>, vector<32x32xf32>, vector<32x32xf32> -> vector<32x32xf32>
    %272 = arith.addf %188, %271 : vector<32x32xf32>
    %273 = vector.extract_strided_slice %192 {offsets = [1, 0], sizes = [1, 32], strides = [1, 1]} : vector<4x64xf32> to vector<1x32xf32>
    %274 = vector.extract_strided_slice %192 {offsets = [1, 32], sizes = [1, 32], strides = [1, 1]} : vector<4x64xf32> to vector<1x32xf32>
    %cst_57 = arith.constant dense<0.000000e+00> : vector<32xf32>
    %275 = vector.multi_reduction <add>, %272, %cst_57 [1] : vector<32x32xf32> to vector<32xf32>
    %276 = vector.shape_cast %275 : vector<32xf32> to vector<32x1xf32>
    %cst_58 = arith.constant 3.200000e+01 : f32
    %277 = vector.broadcast %cst_58 : f32 to vector<32x1xf32>
    %278 = arith.divf %276, %277 : vector<32x1xf32>
    %279 = vector.broadcast %278 : vector<32x1xf32> to vector<32x32xf32>
    %280 = arith.subf %272, %279 : vector<32x32xf32>
    %281 = arith.mulf %280, %280 : vector<32x32xf32>
    %cst_59 = arith.constant dense<0.000000e+00> : vector<32xf32>
    %282 = vector.multi_reduction <add>, %281, %cst_59 [1] : vector<32x32xf32> to vector<32xf32>
    %283 = vector.shape_cast %282 : vector<32xf32> to vector<32x1xf32>
    %cst_60 = arith.constant 3.200000e+01 : f32
    %284 = vector.broadcast %cst_60 : f32 to vector<32x1xf32>
    %285 = arith.divf %283, %284 : vector<32x1xf32>
    %286 = vector.broadcast %278 : vector<32x1xf32> to vector<32x32xf32>
    %287 = arith.subf %272, %286 : vector<32x32xf32>
    %cst_61 = arith.constant 9.99999974E-6 : f32
    %288 = vector.broadcast %cst_61 : f32 to vector<32x1xf32>
    %289 = arith.addf %285, %288 : vector<32x1xf32>
    %290 = math.rsqrt %289 : vector<32x1xf32>
    %291 = vector.broadcast %290 : vector<32x1xf32> to vector<32x32xf32>
    %292 = arith.mulf %287, %291 : vector<32x32xf32>
    %293 = vector.broadcast %273 : vector<1x32xf32> to vector<32x32xf32>
    %294 = arith.mulf %292, %293 : vector<32x32xf32>
    %295 = vector.broadcast %274 : vector<1x32xf32> to vector<32x32xf32>
    %296 = arith.addf %294, %295 : vector<32x32xf32>
    %297 = vector.extract_strided_slice %190 {offsets = [0, 192], sizes = [32, 64], strides = [1, 1]} : vector<32x256xf32> to vector<32x64xf32>
    %cst_62 = arith.constant dense<0.000000e+00> : vector<32x64xf32>
    %298 = tpu.matmul %296, %297, %cst_62 {dimension_numbers = #tpu.dot_dimension_numbers<[1], [0], [0], [1], [0, 0, 1, 1], [], []>} : vector<32x32xf32>, vector<32x64xf32>, vector<32x64xf32> -> vector<32x64xf32>
    %299 = vector.extract_strided_slice %192 {offsets = [0, 0], sizes = [1, 64], strides = [1, 1]} : vector<4x64xf32> to vector<1x64xf32>
    %300 = vector.broadcast %299 : vector<1x64xf32> to vector<32x64xf32>
    %301 = arith.addf %298, %300 : vector<32x64xf32>
    %cst_63 = arith.constant 0.000000e+00 : f32
    %302 = vector.broadcast %cst_63 : f32 to vector<32x64xf32>
    %303 = arith.maximumf %301, %302 : vector<32x64xf32>
    %c1_64 = arith.constant 1 : index
    %c0_65 = arith.constant 0 : index
    %c0_66 = arith.constant 0 : index
    %304 = vector.load %arg4[%c1_64, %c0_65, %c0_66] : memref<2x64x32xf32, #tpu.memory_space<vmem>>, vector<1x64x32xf32>
    %305 = vector.shape_cast %304 : vector<1x64x32xf32> to vector<64x32xf32>
    %cst_67 = arith.constant dense<0.000000e+00> : vector<32x32xf32>
    %306 = tpu.matmul %303, %305, %cst_67 {dimension_numbers = #tpu.dot_dimension_numbers<[1], [0], [0], [1], [0, 0, 1, 1], [], []>} : vector<32x64xf32>, vector<64x32xf32>, vector<32x32xf32> -> vector<32x32xf32>
    %307 = arith.addf %296, %306 : vector<32x32xf32>
    %308 = vector.extract_strided_slice %192 {offsets = [3, 0], sizes = [1, 32], strides = [1, 1]} : vector<4x64xf32> to vector<1x32xf32>
    %309 = vector.broadcast %308 : vector<1x32xf32> to vector<32x32xf32>
    %310 = arith.addf %307, %309 : vector<32x32xf32>
    %311 = vector.extract_strided_slice %192 {offsets = [2, 0], sizes = [1, 32], strides = [1, 1]} : vector<4x64xf32> to vector<1x32xf32>
    %312 = vector.extract_strided_slice %192 {offsets = [2, 32], sizes = [1, 32], strides = [1, 1]} : vector<4x64xf32> to vector<1x32xf32>
    %cst_68 = arith.constant dense<0.000000e+00> : vector<32xf32>
    %313 = vector.multi_reduction <add>, %310, %cst_68 [1] : vector<32x32xf32> to vector<32xf32>
    %314 = vector.shape_cast %313 : vector<32xf32> to vector<32x1xf32>
    %cst_69 = arith.constant 3.200000e+01 : f32
    %315 = vector.broadcast %cst_69 : f32 to vector<32x1xf32>
    %316 = arith.divf %314, %315 : vector<32x1xf32>
    %317 = vector.broadcast %316 : vector<32x1xf32> to vector<32x32xf32>
    %318 = arith.subf %310, %317 : vector<32x32xf32>
    %319 = arith.mulf %318, %318 : vector<32x32xf32>
    %cst_70 = arith.constant dense<0.000000e+00> : vector<32xf32>
    %320 = vector.multi_reduction <add>, %319, %cst_70 [1] : vector<32x32xf32> to vector<32xf32>
    %321 = vector.shape_cast %320 : vector<32xf32> to vector<32x1xf32>
    %cst_71 = arith.constant 3.200000e+01 : f32
    %322 = vector.broadcast %cst_71 : f32 to vector<32x1xf32>
    %323 = arith.divf %321, %322 : vector<32x1xf32>
    %324 = vector.broadcast %316 : vector<32x1xf32> to vector<32x32xf32>
    %325 = arith.subf %310, %324 : vector<32x32xf32>
    %cst_72 = arith.constant 9.99999974E-6 : f32
    %326 = vector.broadcast %cst_72 : f32 to vector<32x1xf32>
    %327 = arith.addf %323, %326 : vector<32x1xf32>
    %328 = math.rsqrt %327 : vector<32x1xf32>
    %329 = vector.broadcast %328 : vector<32x1xf32> to vector<32x32xf32>
    %330 = arith.mulf %325, %329 : vector<32x32xf32>
    %331 = vector.broadcast %311 : vector<1x32xf32> to vector<32x32xf32>
    %332 = arith.mulf %330, %331 : vector<32x32xf32>
    %333 = vector.broadcast %312 : vector<1x32xf32> to vector<32x32xf32>
    %334 = arith.addf %332, %333 : vector<32x32xf32>
    %c0_73 = arith.constant 0 : index
    %c0_74 = arith.constant 0 : index
    %335 = vector.load %arg11[%c0_73, %c0_74] : memref<32x32xf32, #tpu.memory_space<vmem>>, vector<32x32xf32>
    tpu.vector_store %arg11[%c0_73, %c0_74], %334 {strides = array<i32>} : memref<32x32xf32, #tpu.memory_space<vmem>>, vector<32x32xf32>,
    %336 = vector.extract_strided_slice %334 {offsets = [28, 0], sizes = [4, 32], strides = [1, 1]} : vector<32x32xf32> to vector<4x32xf32>
    %c0_75 = arith.constant 0 : index
    %c0_76 = arith.constant 0 : index
    %337 = vector.load %arg9[%c0_75, %c0_76] : memref<4x8xf32, #tpu.memory_space<vmem>>, vector<4x8xf32>
    %338 = vector.extract_strided_slice %337 {offsets = [0, 0], sizes = [1, 8], strides = [1, 1]} : vector<4x8xf32> to vector<1x8xf32>
    %339 = vector.shape_cast %338 : vector<1x8xf32> to vector<1x8xf32>
    %340 = vector.broadcast %339 : vector<1x8xf32> to vector<4x8xf32>
    %341 = tpu.concatenate %336, %340 in 1 : vector<4x32xf32>, vector<4x8xf32> -> vector<4x40xf32>
    %342 = vector.extract_strided_slice %337 {offsets = [1, 0], sizes = [1, 8], strides = [1, 1]} : vector<4x8xf32> to vector<1x8xf32>
    %343 = vector.shape_cast %342 : vector<1x8xf32> to vector<1x8xf32>
    %344 = vector.broadcast %343 : vector<1x8xf32> to vector<4x8xf32>
    %345 = tpu.concatenate %336, %344 in 1 : vector<4x32xf32>, vector<4x8xf32> -> vector<4x40xf32>
    %346 = vector.extract_strided_slice %337 {offsets = [2, 0], sizes = [1, 8], strides = [1, 1]} : vector<4x8xf32> to vector<1x8xf32>
    %347 = vector.shape_cast %346 : vector<1x8xf32> to vector<1x8xf32>
    %348 = vector.broadcast %347 : vector<1x8xf32> to vector<4x8xf32>
    %349 = tpu.concatenate %336, %348 in 1 : vector<4x32xf32>, vector<4x8xf32> -> vector<4x40xf32>
    %350 = vector.extract_strided_slice %337 {offsets = [3, 0], sizes = [1, 8], strides = [1, 1]} : vector<4x8xf32> to vector<1x8xf32>
    %351 = vector.shape_cast %350 : vector<1x8xf32> to vector<1x8xf32>
    %352 = vector.broadcast %351 : vector<1x8xf32> to vector<4x8xf32>
    %353 = tpu.concatenate %336, %352 in 1 : vector<4x32xf32>, vector<4x8xf32> -> vector<4x40xf32>
    %354 = tpu.concatenate %341, %345, %349, %353 in 0 : vector<4x40xf32>, vector<4x40xf32>, vector<4x40xf32>, vector<4x40xf32> -> vector<16x40xf32>
    %c0_77 = arith.constant 0 : index
    %c0_78 = arith.constant 0 : index
    %355 = vector.load %arg6[%c0_77, %c0_78] : memref<40x64xf32, #tpu.memory_space<vmem>>, vector<40x64xf32>
    %cst_79 = arith.constant dense<0.000000e+00> : vector<16x64xf32>
    %356 = tpu.matmul %354, %355, %cst_79 {dimension_numbers = #tpu.dot_dimension_numbers<[1], [0], [0], [1], [0, 0, 1, 1], [], []>} : vector<16x40xf32>, vector<40x64xf32>, vector<16x64xf32> -> vector<16x64xf32>
    %c0_80 = arith.constant 0 : index
    %c0_81 = arith.constant 0 : index
    %357 = vector.load %arg8[%c0_80, %c0_81] : memref<2x64xf32, #tpu.memory_space<vmem>>, vector<1x64xf32>
    %358 = vector.broadcast %357 : vector<1x64xf32> to vector<16x64xf32>
    %359 = arith.addf %356, %358 : vector<16x64xf32>
    %cst_82 = arith.constant 0.000000e+00 : f32
    %360 = vector.broadcast %cst_82 : f32 to vector<16x64xf32>
    %361 = arith.maximumf %359, %360 : vector<16x64xf32>
    %c0_83 = arith.constant 0 : index
    %c0_84 = arith.constant 0 : index
    %362 = vector.load %arg7[%c0_83, %c0_84] : memref<64x8xf32, #tpu.memory_space<vmem>>, vector<64x8xf32>
    %cst_85 = arith.constant dense<0.000000e+00> : vector<16x8xf32>
    %363 = tpu.matmul %361, %362, %cst_85 {dimension_numbers = #tpu.dot_dimension_numbers<[1], [0], [0], [1], [0, 0, 1, 1], [], []>} : vector<16x64xf32>, vector<64x8xf32>, vector<16x8xf32> -> vector<16x8xf32>
    %c1_86 = arith.constant 1 : index
    %c0_87 = arith.constant 0 : index
    %364 = vector.load %arg8[%c1_86, %c0_87] : memref<2x64xf32, #tpu.memory_space<vmem>>, vector<1x8xf32>
    %365 = vector.broadcast %364 : vector<1x8xf32> to vector<16x8xf32>
    %366 = arith.addf %363, %365 : vector<16x8xf32>
    %c0_88 = arith.constant 0 : index
    %c0_89 = arith.constant 0 : index
    %367 = vector.load %arg10[%c0_88, %c0_89] : memref<4x8xf32, #tpu.memory_space<vmem>>, vector<4x8xf32>
    %368 = tpu.concatenate %367, %367, %367, %367 in 0 : vector<4x8xf32>, vector<4x8xf32>, vector<4x8xf32>, vector<4x8xf32> -> vector<16x8xf32>
    %369 = arith.addf %366, %368 : vector<16x8xf32>
    %c0_90 = arith.constant 0 : index
    %c0_91 = arith.constant 0 : index
    %370 = vector.load %arg12[%c0_90, %c0_91] : memref<16x8xf32, #tpu.memory_space<vmem>>, vector<16x8xf32>
    tpu.vector_store %arg12[%c0_90, %c0_91], %369 {strides = array<i32>} : memref<16x8xf32, #tpu.memory_space<vmem>>, vector<16x8xf32>,
    return
  }
}

</mosaic_0001>

<bundles_post_ra>
// kernel: _fused_forward_infer.1
= control target key start
LH: loop header
LB: loop body
LE: loop exit
PB: predicated region body
PF: predicated region fallthrough
CT: control target
= control target key end

     0   :  { %vm63_vm0 = vcmask 1043456   ;;  %vm50_vm1 = vcmask 31744   ;;  %s8332_s0 = inlined_call_operand.vmem [shape: f32[32,4], index: 0, kind: input, shape index: {}]   ;;  %s8333_s1 = inlined_call_operand.vmem [shape: f32[32,32], index: 1, kind: input, shape index: {}]   ;;  %s8334_s2 = inlined_call_operand.vmem [shape: f32[4,32], index: 2, kind: input, shape index: {}]   ;;  %s8335_s3 = inlined_call_operand.vmem [shape: f32[2,32,256], index: 3, kind: input, shape index: {}]   ;;  %s8336_s4 = inlined_call_operand.vmem [shape: f32[2,64,32], index: 4, kind: input, shape index: {}]   ;;  %s8337_s5 = inlined_call_operand.vmem [shape: f32[2,4,64], index: 5, kind: input, shape index: {}]   ;;  %s8338_s6 = inlined_call_operand.vmem [shape: f32[40,64], index: 6, kind: input, shape index: {}]   ;;  %s8339_s7 = inlined_call_operand.vmem [shape: f32[64,8], index: 7, kind: input, shape index: {}]   ;;  %s8340_s8 = inlined_call_operand.vmem [shape: f32[2,64], index: 8, kind: input, shape index: {}]   ;;  %s8341_s9 = inlined_call_operand.vmem [shape: f32[4,8], index: 9, kind: input, shape index: {}]   ;;  %s8342_s10 = inlined_call_operand.vmem [shape: f32[4,8], index: 10, kind: input, shape index: {}]   ;;  %s8343_s11 = inlined_call_operand.hbm [shape: f32[32,32], index: 11, kind: output, shape index: {0}]   ;;  %s8344_s12 = inlined_call_operand.vmem [shape: f32[16,8], index: 12, kind: output, shape index: {1}]  }
   0x1   :  { %v45_v0 = vld [vmem:[%s8334_s2] sm:$0xf]  ;;  %v42_v2 = vld [vmem:[%s8332_s0 + $0x8] sm:$0xff]  ;;  %v43_v3 = vld [vmem:[%s8332_s0 + $0x10] sm:$0xff] }
   0x2   :  { %v41_v1 = vld [vmem:[%s8332_s0] sm:$0xff]  ;;  %5446 = vmatprep.subr.msk.mxu1 %vm63_vm0, %v45_v0  ;;  %v232_v4 = vld [vmem:[%s8335_s3 + $0x8] sm:$0xff]  ;;  %v234_v5 = vld [vmem:[%s8335_s3 + $0x18] sm:$0xff] }
   0x3   :  { %5448 = vmatprep.mubr.msk.f32.mxu1 %vm50_vm1, %v41_v1  ;;  %5447 = vmatpush3.msk.msra.mxu1 %vm63_vm0, %v45_v0  ;;  %v231_v6 = vld [vmem:[%s8335_s3] sm:$0xff]  ;;  %v233_v7 = vld [vmem:[%s8335_s3 + $0x10] sm:$0xff]  ;;  %v5922_v8 = vpack.c.bf16 %v234_v5, %v232_v4 }
   0x4   :  { %5449 = vmatmul.mubr.msk.f32.vlgmr.msra.gmra.mrb[0].mxu1 %vm50_vm1, %v42_v2  ;;  %v5924_v9 = vpack.c.bf16 %v233_v7, %v231_v6 }
   0x5   :  { %18 = vsyncpa [#allocation3], 0  ;;  %5451 = vmatprep.mubr.msk.f32.mxu1 %vm50_vm1, %v43_v3  ;;  %v44_v10 = vld [vmem:[%s8332_s0 + $0x18] sm:$0xff]  ;;  %5923 = vmatprep.subr.bf16.mxu1 %v5922_v8  ;;  %v236_v11 = vld [vmem:[%s8335_s3 + $0x28] sm:$0xff]  ;;  %v6746_v17 = vmov 0.0   ;;  %vm240_vm2 = vcmask 261120  }
   0x6   :  { %5925 = vmatpush1.bf16.msra.mxu1 %v5924_v9  ;;  %v238_v12 = vld [vmem:[%s8335_s3 + $0x38] sm:$0xff]  ;;  %v235_v14 = vld [vmem:[%s8335_s3 + $0x20] sm:$0xff]  ;;  %v237_v15 = vld [vmem:[%s8335_s3 + $0x30] sm:$0xff]  ;;  %vm418_vm3 = vcmask 64512   ;;  %s6747_s16 = smov 120   ;;  %s6749_s17 = smov 104  }
   0x7   :  { %v5926_v13 = vpack.c.bf16 %v238_v12, %v236_v11  ;;  %v5928_v16 = vpack.c.bf16 %v237_v15, %v235_v14  ;;  %v46_v18 = vld [vmem:[%s8333_s1] sm:$0xff]  ;;  %v47_v22 = vld [vmem:[%s8333_s1 + $0x8] sm:$0xff]  ;;  %v48_v25 = vld [vmem:[%s8333_s1 + $0x10] sm:$0xff]  ;;  %s6750_s18 = smov 96   ;;  %s6751_s19 = smov 32   ;;  %vm1963_vm9 = vcmask 130048  }
   0x8   :  { %5452 = vmatmul.mubr.msk.f32.gmra.mrb[2].mxu1 %vm50_vm1, %v44_v10  ;;  %v49_v28 = vld [vmem:[%s8333_s1 + $0x18] sm:$0xff]  ;;  %s6748_s1 = smov 112   ;;  %vm6981_vm4 = vmpackc.low %vm418_vm3, %vm418_vm3  ;;  %s6752_s20 = smov 64   ;;  %vm1968_vm10 = vcmask 195584   ;;  %vm2284_vm11 = vcmask 523264   ;;  %vm4749_vm12 = vcmask 326656  }
   0x9   :  { %5927 = vmatprep.subr.bf16.mxu1 %v5926_v13  ;;  %317 = vmatprep.mubr.f32.mxu1 %v6746_v17  ;;  %s6753_s28 = smov 8   ;;  %s6754_s29 = smov 16  }
   0xa   :  { %5929 = vmatpush1.bf16.msra.mxu1 %v5928_v16  ;;  %s6755_s2 = smov 24  }
  0xd7   :  { %v5450_v19 = vpop.f32.mrb[0].mxu1 }
  0xd8   :  { %v133_v20 = vpop.f32.mrb[1].mxu1  ;;  %v6883_v26 = vadd.f32 %v5450_v19, %v47_v22 }
  0xd9   :  { %v6872_v21 = vadd.f32 %v133_v20, %v46_v18 }
  0xdb   :  { %4961 = vmatmul.mubr.msk.f32.vlgmr.msra.gmra.mrb[4].mxu1 %vm240_vm2, %v6872_v21  ;;  %v5453_v23 = vpop.f32.mrb[2].mxu1 }
  0xdc   :  { %323 = vmatprep.mubr.f32.mxu1 %v6746_v17  ;;  %v143_v24 = vpop.f32.mrb[3].mxu1  ;;  %v6896_v29 = vadd.f32 %v5453_v23, %v49_v28 }
  0xdd   :  { %v6885_v27 = vadd.f32 %v143_v24, %v48_v25 }
  0xdf   :  { %4962 = vmatmul.mubr.msk.f32.gmra.mrb[6].mxu1 %vm240_vm2, %v6883_v26 }
  0xe0   :  { %329 = vmatprep.mubr.f32.mxu1 %v6746_v17 }
  0xe3   :  { %4963 = vmatmul.mubr.msk.f32.gmra.mrb[8].mxu1 %vm240_vm2, %v6885_v27 }
  0xe4   :  { %335 = vmatprep.mubr.f32.mxu1 %v6746_v17 }
  0xe7   :  { %4964 = vmatmul.mubr.msk.f32.gmra.mrb[10].mxu1 %vm240_vm2, %v6896_v29 }
 0x1ae   :  { %v6900_v30 = vpop.f32.mrb[4].mxu1 }
 0x1af   :  { %346 = vrot.lane.b32.xlu0 %v6900_v30, %s6747_s16  ;;  %v321_v31 = vpop.f32.mrb[5].mxu1  ;;  %5462 = vmatprep.mubr.msk.f32.mxu0 %vm418_vm3, %v6900_v30 }
 0x1b2   :  { %v6906_v32 = vpop.f32.mrb[6].mxu1 }
 0x1b3   :  { %348 = vrot.lane.b32.xlu0 %v6906_v32, %s6747_s16  ;;  %v327_v33 = vpop.f32.mrb[7].mxu1  ;;  %v6294_v34 = vpack.i.bf16 %v6906_v32, %v6900_v30 }
 0x1b4   :  { %v6912_v35 = vpack.i.bf16 %v327_v33, %v321_v31  ;;  %v6914_v36 = vpack.c.bf16 %v327_v33, %v321_v31 }
 0x1b6   :  { %v6916_v37 = vpop.f32.mrb[8].mxu1 }
 0x1b7   :  { %354 = vrot.lane.b32.xlu0 %v6900_v30, %s6748_s1  ;;  %350 = vrot.lane.b32.xlu1 %v6916_v37, %s6747_s16  ;;  %v333_v38 = vpop.f32.mrb[9].mxu1 }
 0x1ba   :  { %v6922_v39 = vpop.f32.mrb[10].mxu1 }
 0x1bb   :  { %362 = vrot.lane.b32.xlu0 %v6900_v30, %s6749_s17  ;;  %352 = vrot.lane.b32.xlu1 %v6922_v39, %s6747_s16  ;;  %v339_v40 = vpop.f32.mrb[11].mxu1  ;;  %v6304_v41 = vpack.i.bf16 %v6922_v39, %v6916_v37 }
 0x1bc   :  { %v6930_v42 = vpack.c.bf16 %v339_v40, %v333_v38  ;;  %v6932_v43 = vpack.i.bf16 %v339_v40, %v333_v38 }
 0x1bf   :  { %358 = vrot.lane.b32.xlu0 %v6916_v37, %s6748_s1  ;;  %356 = vrot.lane.b32.xlu1 %v6906_v32, %s6748_s1 }
 0x1c3   :  { %366 = vrot.lane.b32.xlu0 %v6916_v37, %s6749_s17  ;;  %364 = vrot.lane.b32.xlu1 %v6906_v32, %s6749_s17 }
 0x1c7   :  { %6295 = vrot.lane.b32.xlu0 %v6294_v34, %s6750_s18  ;;  %360 = vrot.lane.b32.xlu1 %v6922_v39, %s6748_s1 }
 0x1cb   :  { %6305 = vrot.lane.b32.xlu0 %v6304_v41, %s6750_s18  ;;  %368 = vrot.lane.b32.xlu1 %v6922_v39, %s6749_s17 }
 0x221   :  { %v347_v44 = vpop.permute.xlu0 %346 }
 0x222   :  { %5476 = vmatprep.mubr.msk.f32.mxu1 %vm418_vm3, %v347_v44 }
 0x225   :  { %v6949_v45 = vpop.permute.xlu0 %348 }
 0x226   :  { %v6299_v46 = vpack.i.bf16 %v6949_v45, %v347_v44 }
 0x228   :  { %6300 = vrot.lane.b32.xlu1 %v6299_v46, %s6750_s18 }
 0x229   :  { %v355_v47 = vpop.permute.xlu0 %354  ;;  %v6953_v48 = vpop.permute.xlu1 %350 }
 0x22d   :  { %v6955_v49 = vpop.permute.xlu0 %362  ;;  %v6957_v50 = vpop.permute.xlu1 %352 }
 0x22e   :  { %v6309_v51 = vpack.i.bf16 %v6957_v50, %v6953_v48 }
 0x230   :  { %6310 = vrot.lane.b32.xlu1 %v6309_v51, %s6750_s18 }
 0x231   :  { %v6962_v52 = vpop.permute.xlu0 %358  ;;  %v6964_v53 = vpop.permute.xlu1 %356 }
 0x232   :  { %v6314_v54 = vpack.i.bf16 %v6964_v53, %v355_v47 }
 0x234   :  { %6315 = vrot.lane.b32.xlu0 %v6314_v54, %s6750_s18 }
 0x235   :  { %v6968_v55 = vpop.permute.xlu0 %366  ;;  %v6970_v56 = vpop.permute.xlu1 %364 }
 0x236   :  { %v6319_v57 = vpack.i.bf16 %v6970_v56, %v6955_v49 }
 0x238   :  { %6320 = vrot.lane.b32.xlu1 %v6319_v57, %s6750_s18 }
 0x239   :  { %v6296_v58 = vpop.permute.xlu0 %6295  ;;  %v6975_v59 = vpop.permute.xlu1 %360 }
 0x23a   :  { %v6324_v60 = vpack.i.bf16 %v6975_v59, %v6962_v52  ;;  %v6298_v61 = vunpack.i.h.bf16 %v6296_v58  ;;  %v6297_v62 = vunpack.i.l.bf16 %v6296_v58 }
 0x23c   :  { %6325 = vrot.lane.b32.xlu0 %v6324_v60, %s6750_s18  ;;  %v5930_v0 = vpack.c.bf16 %v6298_v61, %v6297_v62 }
 0x23d   :  { %v6306_v1 = vpop.permute.xlu0 %6305  ;;  %v6986_v2 = vpop.permute.xlu1 %368 }
 0x23e   :  { %v6308_v3 = vunpack.i.h.bf16 %v6306_v1  ;;  %v6307_v4 = vunpack.i.l.bf16 %v6306_v1  ;;  %5932 = vmatprep.subr.msk.bf16.mxu0 %vm6981_vm4, %v5930_v0  ;;  %v6329_v5 = vpack.i.bf16 %v6986_v2, %v6968_v55 }
 0x23f   :  { %5935 = vmatpush3.bf16.xpose.msk.msra.mxu0 %vm6981_vm4, %v5930_v0 }
 0x240   :  { %v5936_v6 = vpack.c.bf16 %v6308_v3, %v6307_v4  ;;  %6335 = vrot.lane.b32.xlu0 %v6294_v34, %s6751_s19  ;;  %6330 = vrot.lane.b32.xlu1 %v6329_v5, %s6750_s18 }
 0x242   :  { %5938 = vmatprep.subr.msk.bf16.mxu0 %vm6981_vm4, %v5936_v6 }
 0x244   :  { %6345 = vrot.lane.b32.xlu0 %v6304_v41, %s6751_s19  ;;  %6340 = vrot.lane.b32.xlu1 %v6299_v46, %s6751_s19 }
 0x247   :  { %5941 = vmatpush3.bf16.xpose.msk.msra.mxu0 %vm6981_vm4, %v5936_v6 }
 0x248   :  { %6350 = vrot.lane.b32.xlu0 %v6314_v54, %s6751_s19  ;;  %6355 = vrot.lane.b32.xlu1 %v6319_v57, %s6751_s19 }
 0x24c   :  { %847 = vrot.lane.b32.xlu0 %v6900_v30, %s6752_s20  ;;  %6360 = vrot.lane.b32.xlu1 %v6309_v51, %s6751_s19 }
 0x24e   :  { %5463 = vmatmul.mubr.msk.f32.vlgmr.msra.gmra.mrb[0].mxu0 %vm418_vm3, %v6906_v32 }
 0x24f   :  { %5465 = vmatprep.mubr.msk.f32.mxu0 %vm418_vm3, %v6916_v37 }
 0x250   :  { %964 = vrot.lane.b32.xlu0 %v347_v44, %s6752_s20  ;;  %849 = vrot.lane.b32.xlu1 %v6906_v32, %s6752_s20 }
 0x252   :  { %5466 = vmatmul.mubr.msk.f32.gmra.mrb[2].mxu0 %vm418_vm3, %v6922_v39 }
 0x253   :  { %5490 = vmatprep.mubr.msk.f32.mxu0 %vm418_vm3, %v355_v47 }
 0x254   :  { %851 = vrot.lane.b32.xlu0 %v6916_v37, %s6752_s20  ;;  %966 = vrot.lane.b32.xlu1 %v6949_v45, %s6752_s20 }
 0x258   :  { %6365 = vrot.lane.b32.xlu0 %v6324_v60, %s6751_s19  ;;  %853 = vrot.lane.b32.xlu1 %v6922_v39, %s6752_s20 }
 0x25c   :  { %968 = vrot.lane.b32.xlu0 %v6953_v48, %s6752_s20  ;;  %6370 = vrot.lane.b32.xlu1 %v6329_v5, %s6751_s19 }
 0x260   :  { %1081 = vrot.lane.b32.xlu0 %v355_v47, %s6752_s20  ;;  %1083 = vrot.lane.b32.xlu1 %v6964_v53, %s6752_s20 }
 0x264   :  { %1198 = vrot.lane.b32.xlu0 %v6955_v49, %s6752_s20  ;;  %970 = vrot.lane.b32.xlu1 %v6957_v50, %s6752_s20 }
 0x268   :  { %1085 = vrot.lane.b32.xlu0 %v6962_v52, %s6752_s20  ;;  %1200 = vrot.lane.b32.xlu1 %v6970_v56, %s6752_s20 }
 0x26c   :  { %1202 = vrot.lane.b32.xlu0 %v6968_v55, %s6752_s20  ;;  %1087 = vrot.lane.b32.xlu1 %v6975_v59, %s6752_s20 }
 0x270   :  { %1204 = vrot.lane.b32.xlu1 %v6986_v2, %s6752_s20 }
 0x274   :  { %6375 = vrot.lane.b32.xlu1 %v6912_v35, %s6747_s16 }
 0x29a   :  { %v6301_v7 = vpop.permute.xlu1 %6300 }
 0x29b   :  { %v6303_v8 = vunpack.i.h.bf16 %v6301_v7  ;;  %v6302_v9 = vunpack.i.l.bf16 %v6301_v7 }
 0x29d   :  { %v5942_v10 = vpack.c.bf16 %v6303_v8, %v6302_v9 }
 0x29f   :  { %5944 = vmatprep.subr.msk.bf16.mxu1 %vm6981_vm4, %v5942_v10 }
 0x2a0   :  { %5947 = vmatpush3.bf16.xpose.msk.msra.mxu1 %vm6981_vm4, %v5942_v10 }
 0x2a2   :  { %v6311_v11 = vpop.permute.xlu1 %6310 }
 0x2a3   :  { %v6313_v12 = vunpack.i.h.bf16 %v6311_v11  ;;  %v6312_v13 = vunpack.i.l.bf16 %v6311_v11 }
 0x2a5   :  { %v5948_v14 = vpack.c.bf16 %v6313_v12, %v6312_v13 }
 0x2a6   :  { %v6316_v15 = vpop.permute.xlu0 %6315 }
 0x2a7   :  { %v6318_v16 = vunpack.i.h.bf16 %v6316_v15  ;;  %v6317_v18 = vunpack.i.l.bf16 %v6316_v15  ;;  %5950 = vmatprep.subr.msk.bf16.mxu1 %vm6981_vm4, %v5948_v14 }
 0x2a8   :  { %5953 = vmatpush3.bf16.xpose.msk.msra.mxu1 %vm6981_vm4, %v5948_v14 }
 0x2a9   :  { %v5954_v19 = vpack.c.bf16 %v6318_v16, %v6317_v18 }
 0x2aa   :  { %v6321_v20 = vpop.permute.xlu1 %6320 }
 0x2ab   :  { %v6323_v22 = vunpack.i.h.bf16 %v6321_v20  ;;  %v6322_v23 = vunpack.i.l.bf16 %v6321_v20  ;;  %5956 = vmatprep.subr.msk.bf16.mxu0 %vm6981_vm4, %v5954_v19 }
 0x2ac   :  { %5959 = vmatpush3.bf16.xpose.msk.msra.mxu0 %vm6981_vm4, %v5954_v19 }
 0x2ad   :  { %v5966_v24 = vpack.c.bf16 %v6323_v22, %v6322_v23 }
 0x2ae   :  { %v6326_v25 = vpop.permute.xlu0 %6325 }
 0x2af   :  { %v6328_v28 = vunpack.i.h.bf16 %v6326_v25  ;;  %v6327_v30 = vunpack.i.l.bf16 %v6326_v25  ;;  %5477 = vmatmul.mubr.msk.f32.vlgmr.msra.gmra.mrb[12].mxu1 %vm418_vm3, %v6949_v45  ;;  %5968 = vmatprep.subr.msk.bf16.mxu1 %vm6981_vm4, %v5966_v24 }
 0x2b0   :  { %5479 = vmatprep.mubr.msk.f32.mxu1 %vm418_vm3, %v6953_v48  ;;  %5971 = vmatpush3.bf16.xpose.msk.msra.mxu1 %vm6981_vm4, %v5966_v24 }
 0x2b1   :  { %v5960_v31 = vpack.c.bf16 %v6328_v28, %v6327_v30 }
 0x2b2   :  { %v6336_v32 = vpop.permute.xlu0 %6335  ;;  %v6331_v33 = vpop.permute.xlu1 %6330 }
 0x2b3   :  { %v6338_v34 = vunpack.i.h.bf16 %v6336_v32  ;;  %v6337_v37 = vunpack.i.l.bf16 %v6336_v32  ;;  %v6333_v38 = vunpack.i.h.bf16 %v6331_v33  ;;  %v6332_v39 = vunpack.i.l.bf16 %v6331_v33  ;;  %5480 = vmatmul.mubr.msk.f32.gmra.mrb[14].mxu1 %vm418_vm3, %v6957_v50  ;;  %5962 = vmatprep.subr.msk.bf16.mxu0 %vm6981_vm4, %v5960_v31 }
 0x2b4   :  { %5965 = vmatpush3.bf16.xpose.msk.msra.mxu0 %vm6981_vm4, %v5960_v31  ;;  %5504 = vmatprep.mubr.msk.f32.mxu1 %vm418_vm3, %v6955_v49 }
 0x2b5   :  { %v5978_v40 = vpack.c.bf16 %v6338_v34, %v6337_v37  ;;  %v5972_v41 = vpack.c.bf16 %v6333_v38, %v6332_v39 }
 0x2b6   :  { %v6346_v44 = vpop.permute.xlu0 %6345  ;;  %v6341_v45 = vpop.permute.xlu1 %6340 }
 0x2b7   :  { %v6348_v46 = vunpack.i.h.bf16 %v6346_v44  ;;  %v6347_v47 = vunpack.i.l.bf16 %v6346_v44  ;;  %v6343_v48 = vunpack.i.h.bf16 %v6341_v45  ;;  %v6342_v51 = vunpack.i.l.bf16 %v6341_v45  ;;  %5974 = vmatprep.subr.msk.bf16.mxu1 %vm6981_vm4, %v5972_v41  ;;  %5980 = vmatprep.subr.msk.bf16.mxu0 %vm6981_vm4, %v5978_v40 }
 0x2b8   :  { %5977 = vmatpush3.bf16.xpose.msk.msra.mxu1 %vm6981_vm4, %v5972_v41  ;;  %v152_v44 = vlaneseq }
 0x2b9   :  { %v5990_v50 = vpack.c.bf16 %v6343_v48, %v6342_v51  ;;  %v5984_v57 = vpack.c.bf16 %v6348_v46, %v6347_v47 }
 0x2ba   :  { %v6351_v54 = vpop.permute.xlu0 %6350  ;;  %v6356_v49 = vpop.permute.xlu1 %6355  ;;  %v7148_v47 = vshrl.u32 %v152_v44, 7 }
 0x2bb   :  { %5491 = vmatmul.mubr.msk.f32.vlgmr.msra.gmra.mrb[4].mxu0 %vm418_vm3, %v6964_v53  ;;  %5992 = vmatprep.subr.msk.bf16.mxu1 %vm6981_vm4, %v5990_v50  ;;  %v6353_v61 = vunpack.i.h.bf16 %v6351_v54  ;;  %v6352_v62 = vunpack.i.l.bf16 %v6351_v54 }
 0x2bc   :  { %5493 = vmatprep.mubr.msk.f32.mxu0 %vm418_vm3, %v6962_v52  ;;  %5983 = vmatpush3.bf16.xpose.msk.msra.mxu0 %vm6981_vm4, %v5978_v40 }
 0x2bd   :  { %5986 = vmatprep.subr.msk.bf16.mxu0 %vm6981_vm4, %v5984_v57  ;;  %v6002_v4 = vpack.c.bf16 %v6353_v61, %v6352_v62 }
 0x2be   :  { %v848_v58 = vpop.permute.xlu0 %847  ;;  %v6361_v60 = vpop.permute.xlu1 %6360 }
 0x2bf   :  { %v6363_v0 = vunpack.i.h.bf16 %v6361_v60  ;;  %v6362_v1 = vunpack.i.l.bf16 %v6361_v60  ;;  %5494 = vmatmul.mubr.msk.f32.gmra.mrb[6].mxu0 %vm418_vm3, %v6975_v59  ;;  %5505 = vmatmul.mubr.msk.f32.vlgmr.msra.gmra.mrb[16].mxu1 %vm418_vm3, %v6970_v56  ;;  %v6358_v59 = vunpack.i.h.bf16 %v6356_v49  ;;  %v6357_v56 = vunpack.i.l.bf16 %v6356_v49 }
 0x2c0   :  { %5507 = vmatprep.mubr.msk.f32.mxu1 %vm418_vm3, %v6968_v55  ;;  %5518 = vmatprep.mubr.msk.f32.mxu0 %vm418_vm3, %v848_v58  ;;  %v154_v49 = vadd.s32 8, %v7148_v47 }
 0x2c1   :  { %v5996_v52 = vpack.c.bf16 %v6363_v0, %v6362_v1  ;;  %5995 = vmatpush3.bf16.xpose.msk.msra.mxu1 %vm6981_vm4, %v5990_v50  ;;  %v6014_v6 = vpack.c.bf16 %v6358_v59, %v6357_v56  ;;  %v156_v0 = vadd.s32 24, %v7148_v47  ;;  %v161_v1 = vand.u32 3, %v7148_v47 }
 0x2c2   :  { %v965_v53 = vpop.permute.xlu0 %964  ;;  %v850_v3 = vpop.permute.xlu1 %849  ;;  %v168_v61 = vand.u32 3, %v154_v49 }
 0x2c3   :  { %5508 = vmatmul.mubr.msk.f32.gmra.mrb[18].mxu1 %vm418_vm3, %v6986_v2  ;;  %5998 = vmatprep.subr.msk.bf16.mxu1 %vm6981_vm4, %v5996_v52 }
 0x2c4   :  { %5989 = vmatpush3.bf16.xpose.msk.msra.mxu0 %vm6981_vm4, %v5984_v57  ;;  %5532 = vmatprep.mubr.msk.f32.mxu1 %vm418_vm3, %v965_v53  ;;  %v206_v57 = vand.u32 127, %v152_v44 }
 0x2c5   :  { %6004 = vmatprep.subr.msk.bf16.mxu0 %vm6981_vm4, %v6002_v4 }
 0x2c6   :  { %v852_v55 = vpop.permute.xlu0 %851  ;;  %v967_v5 = vpop.permute.xlu1 %966  ;;  %v211_v62 = vand.u32 3, %v206_v57 }
 0x2c8   :  { %vm7166_vm5 = vcmp.eq.s32.totalorder %v168_v61, %v211_v62  ;;  %vm7170_vm6 = vcmp.eq.s32.totalorder %v161_v1, %v211_v62 }
 0x2c9   :  { %6001 = vmatpush3.bf16.xpose.msk.msra.mxu1 %vm6981_vm4, %v5996_v52  ;;  %v155_v52 = vadd.s32 16, %v7148_v47 }
 0x2ca   :  { %6016 = vmatprep.subr.msk.bf16.mxu1 %vm6981_vm4, %v6014_v6  ;;  %v6366_v2 = vpop.permute.xlu0 %6365  ;;  %v854_v7 = vpop.permute.xlu1 %853 }
 0x2cb   :  { %v6368_v8 = vunpack.i.h.bf16 %v6366_v2  ;;  %v6367_v9 = vunpack.i.l.bf16 %v6366_v2  ;;  %5519 = vmatmul.mubr.msk.f32.vlgmr.msra.gmra.mrb[8].mxu0 %vm418_vm3, %v850_v3  ;;  %v182_v3 = vand.u32 3, %v156_v0  ;;  %v175_v59 = vand.u32 3, %v155_v52 }
 0x2cc   :  { %5521 = vmatprep.mubr.msk.f32.mxu0 %vm418_vm3, %v852_v55  ;;  %6007 = vmatpush3.bf16.xpose.msk.msra.mxu0 %vm6981_vm4, %v6002_v4 }
 0x2cd   :  { %v6008_v10 = vpack.c.bf16 %v6368_v8, %v6367_v9  ;;  %vm7180_vm7 = vcmp.eq.s32.totalorder %v182_v3, %v211_v62  ;;  %vm7186_vm8 = vcmp.eq.s32.totalorder %v175_v59, %v211_v62 }
 0x2ce   :  { %v969_v11 = vpop.permute.xlu0 %968  ;;  %v6371_v12 = vpop.permute.xlu1 %6370 }
 0x2cf   :  { %v6373_v13 = vunpack.i.h.bf16 %v6371_v12  ;;  %v6372_v14 = vunpack.i.l.bf16 %v6371_v12  ;;  %5522 = vmatmul.mubr.msk.f32.gmra.mrb[10].mxu0 %vm418_vm3, %v854_v7  ;;  %6010 = vmatprep.subr.msk.bf16.mxu0 %vm6981_vm4, %v6008_v10 }
 0x2d0   :  { %5533 = vmatmul.mubr.msk.f32.vlgmr.msra.gmra.mrb[20].mxu1 %vm418_vm3, %v967_v5 }
 0x2d1   :  { %v6020_v15 = vpack.c.bf16 %v6373_v13, %v6372_v14  ;;  %5535 = vmatprep.mubr.msk.f32.mxu1 %vm418_vm3, %v969_v11  ;;  %6019 = vmatpush3.bf16.xpose.msk.msra.mxu1 %vm6981_vm4, %v6014_v6 }
 0x2d2   :  { %v1082_v16 = vpop.permute.xlu0 %1081  ;;  %v1084_v18 = vpop.permute.xlu1 %1083 }
 0x2d3   :  { %5546 = vmatprep.mubr.msk.f32.mxu0 %vm418_vm3, %v1082_v16  ;;  %6022 = vmatprep.subr.msk.bf16.mxu1 %vm6981_vm4, %v6020_v15 }
 0x2d4   :  { %6013 = vmatpush3.bf16.xpose.msk.msra.mxu0 %vm6981_vm4, %v6008_v10 }
 0x2d5   :  { %6027 = vmatprep.subr.bf16.mxu0 %v6914_v36 }
 0x2d6   :  { %v1199_v19 = vpop.permute.xlu0 %1198  ;;  %v971_v20 = vpop.permute.xlu1 %970 }
 0x2d7   :  { %5536 = vmatmul.mubr.msk.f32.gmra.mrb[22].mxu1 %vm418_vm3, %v971_v20 }
 0x2d8   :  { %5560 = vmatprep.mubr.msk.f32.mxu1 %vm418_vm3, %v1199_v19 }
 0x2d9   :  { %6025 = vmatpush3.bf16.xpose.msk.msra.mxu1 %vm6981_vm4, %v6020_v15 }
 0x2da   :  { %v1086_v22 = vpop.permute.xlu0 %1085  ;;  %v1201_v23 = vpop.permute.xlu1 %1200 }
 0x2db   :  { %5547 = vmatmul.mubr.msk.f32.vlgmr.msra.gmra.mrb[12].mxu0 %vm418_vm3, %v1084_v18 }
 0x2dc   :  { %5549 = vmatprep.mubr.msk.f32.mxu0 %vm418_vm3, %v1086_v22  ;;  %6029 = vmatpush3.bf16.msra.mxu0 %v6914_v36 }
 0x2dd   :  { %6031 = vmatprep.subr.bf16.mxu0 %v6930_v42 }
 0x2de   :  { %v1203_v24 = vpop.permute.xlu0 %1202  ;;  %v1088_v25 = vpop.permute.xlu1 %1087 }
 0x2df   :  { %5550 = vmatmul.mubr.msk.f32.gmra.mrb[14].mxu0 %vm418_vm3, %v1088_v25 }
 0x2e0   :  { %5561 = vmatmul.mubr.msk.f32.vlgmr.msra.gmra.mrb[24].mxu1 %vm418_vm3, %v1201_v23  ;;  %6033 = vmatpush3.bf16.msra.mxu0 %v6930_v42 }
 0x2e1   :  { %5563 = vmatprep.mubr.msk.f32.mxu1 %vm418_vm3, %v1203_v24 }
 0x2e2   :  { %v1205_v28 = vpop.permute.xlu1 %1204 }
 0x2e4   :  { %5564 = vmatmul.mubr.msk.f32.gmra.mrb[26].mxu1 %vm418_vm3, %v1205_v28 }
 0x2e6   :  { %v6376_v30 = vpop.permute.xlu1 %6375 }
 0x2e7   :  { %v6378_v31 = vunpack.i.h.bf16 %v6376_v30  ;;  %v6377_v32 = vunpack.i.l.bf16 %v6376_v30 }
 0x2e9   :  { %v6034_v33 = vpack.c.bf16 %v6378_v31, %v6377_v32 }
 0x2eb   :  { %6035 = vmatprep.subr.bf16.mxu1 %v6034_v33 }
 0x2ec   :  { %6037 = vmatpush3.bf16.msra.mxu1 %v6034_v33 }
 0x321   :  { %v5464_v36 = vpop.f32.mrb[0].mxu0 }
 0x322   :  { %v501_v34 = vpop.f32.mrb[1].mxu0 }
 0x325   :  { %v5467_v37 = vpop.f32.mrb[2].mxu0 }
 0x326   :  { %v511_v38 = vpop.f32.mrb[3].mxu0 }
 0x382   :  { %v5478_v39 = vpop.f32.mrb[12].mxu1 }
 0x383   :  { %v7142_v40 = vpop.f32.mrb[13].mxu1 }
 0x386   :  { %v7144_v41 = vpop.f32.mrb[14].mxu1 }
 0x387   :  { %v7146_v42 = vpop.f32.mrb[15].mxu1 }
 0x38e   :  { %v5492_v45 = vpop.f32.mrb[4].mxu0 }
 0x38f   :  { %v719_v46 = vpop.f32.mrb[5].mxu0 }
 0x392   :  { %v7150_v48 = vpop.f32.mrb[6].mxu0  ;;  %v7152_v51 = vpop.f32.mrb[16].mxu1 }
 0x393   :  { %v7154_v50 = vpop.f32.mrb[7].mxu0  ;;  %v7156_v54 = vpop.f32.mrb[17].mxu1 }
 0x396   :  { %v7159_v58 = vpop.f32.mrb[18].mxu1 }
 0x397   :  { %v7161_v60 = vpop.f32.mrb[19].mxu1 }
 0x39e   :  { %v5520_v56 = vpop.f32.mrb[8].mxu0 }
 0x39f   :  { %v1316_v55 = vsel %vm7166_vm5, %v5464_v36, %v5520_v56  ;;  %v945_v5 = vpop.f32.mrb[9].mxu0 }
 0x3a0   :  { %v7176_v6 = vmul.f32 0.35355338, %v1316_v55  ;;  %v1315_v2 = vsel %vm7170_vm6, %v501_v34, %v945_v5 }
 0x3a1   :  { %v7184_v8 = vmul.f32 0.35355338, %v1315_v2 }
 0x3a2   :  { %v5523_v10 = vpop.f32.mrb[10].mxu0  ;;  %v1350_v11 = vsel %vm240_vm2, %v7176_v6, -inf }
 0x3a3   :  { %v1318_v12 = vsel %vm7180_vm7, %v5467_v37, %v5523_v10  ;;  %v5534_v13 = vpop.f32.mrb[20].mxu1  ;;  %1351 = vmax.xlane.f32.xlu1 %v1350_v11  ;;  %v955_v14 = vpop.f32.mrb[11].mxu0  ;;  %v1347_v15 = vsel %vm240_vm2, %v7184_v8, -inf }
 0x3a4   :  { %v7196_v16 = vmul.f32 0.35355338, %v1318_v12  ;;  %v1320_v18 = vsel %vm7166_vm5, %v5478_v39, %v5534_v13  ;;  %v1317_v19 = vsel %vm7186_vm8, %v511_v38, %v955_v14  ;;  %v1062_v20 = vpop.f32.mrb[21].mxu1  ;;  %1348 = vmax.xlane.f32.xlu0 %v1347_v15 }
 0x3a5   :  { %v7202_v22 = vmul.f32 0.35355338, %v1317_v19  ;;  %v1319_v23 = vsel %vm7170_vm6, %v7142_v40, %v1062_v20  ;;  %v7209_v25 = vmul.f32 0.35355338, %v1320_v18 }
 0x3a6   :  { %v1356_v24 = vsel %vm240_vm2, %v7196_v16, -inf  ;;  %v7229_v44 = vmul.f32 0.35355338, %v1319_v23 }
 0x3a7   :  { %v1353_v28 = vsel %vm240_vm2, %v7202_v22, -inf  ;;  %v1362_v33 = vsel %vm240_vm2, %v7209_v25, -inf }
 0x3a8   :  { %1357 = vmax.xlane.f32.xlu0 %v1356_v24  ;;  %1354 = vmax.xlane.f32.xlu1 %v1353_v28  ;;  %v1359_v59 = vsel %vm240_vm2, %v7229_v44, -inf }
 0x3aa   :  { %v5537_v30 = vpop.f32.mrb[22].mxu1 }
 0x3ab   :  { %v1322_v31 = vsel %vm7180_vm7, %v7144_v41, %v5537_v30  ;;  %v1072_v32 = vpop.f32.mrb[23].mxu1 }
 0x3ac   :  { %v1321_v36 = vsel %vm7186_vm8, %v7146_v42, %v1072_v32  ;;  %1363 = vmax.xlane.f32.xlu0 %v1362_v33  ;;  %v7249_v3 = vmul.f32 0.35355338, %v1322_v31 }
 0x3ad   :  { %v7233_v42 = vmul.f32 0.35355338, %v1321_v36 }
 0x3ae   :  { %v5548_v34 = vpop.f32.mrb[12].mxu0  ;;  %v1368_v10 = vsel %vm240_vm2, %v7249_v3, -inf }
 0x3af   :  { %v1324_v37 = vsel %vm7166_vm5, %v5492_v45, %v5548_v34  ;;  %v1179_v38 = vpop.f32.mrb[13].mxu0 }
 0x3b0   :  { %v7223_v39 = vmul.f32 0.35355338, %v1324_v37  ;;  %v1323_v40 = vsel %vm7170_vm6, %v719_v46, %v1179_v38 }
 0x3b1   :  { %v7227_v41 = vmul.f32 0.35355338, %v1323_v40 }
 0x3b2   :  { %v5551_v49 = vpop.f32.mrb[14].mxu0  ;;  %v1374_v57 = vsel %vm240_vm2, %v7223_v39, -inf }
 0x3b3   :  { %v1326_v45 = vsel %vm7180_vm7, %v7150_v48, %v5551_v49  ;;  %v5562_v61 = vpop.f32.mrb[24].mxu1  ;;  %v1189_v62 = vpop.f32.mrb[15].mxu0  ;;  %1375 = vmax.xlane.f32.xlu0 %v1374_v57  ;;  %v1371_v46 = vsel %vm240_vm2, %v7227_v41, -inf }
 0x3b4   :  { %v1328_v0 = vsel %vm7166_vm5, %v7152_v51, %v5562_v61  ;;  %v1325_v1 = vsel %vm7186_vm8, %v7154_v50, %v1189_v62  ;;  %v1296_v52 = vpop.f32.mrb[25].mxu1  ;;  %1372 = vmax.xlane.f32.xlu1 %v1371_v46  ;;  %v1365_v51 = vsel %vm240_vm2, %v7233_v42, -inf  ;;  %v7263_v2 = vmul.f32 0.35355338, %v1326_v45 }
 0x3b5   :  { %v1327_v48 = vsel %vm7170_vm6, %v7156_v54, %v1296_v52  ;;  %v7253_v56 = vmul.f32 0.35355338, %v1325_v1  ;;  %v7271_v13 = vmul.f32 0.35355338, %v1328_v0 }
 0x3b6   :  { %v7267_v11 = vmul.f32 0.35355338, %v1327_v48 }
 0x3b7   :  { %v5565_v55 = vpop.f32.mrb[26].mxu1  ;;  %1360 = vmax.xlane.f32.xlu0 %v1359_v59  ;;  %v1377_v12 = vsel %vm240_vm2, %v7253_v56, -inf  ;;  %v1386_v15 = vsel %vm240_vm2, %v7271_v13, -inf }
 0x3b8   :  { %v1330_v50 = vsel %vm7180_vm7, %v7159_v58, %v5565_v55  ;;  %v1306_v5 = vpop.f32.mrb[27].mxu1  ;;  %1366 = vmax.xlane.f32.xlu1 %v1365_v51  ;;  %v1380_v58 = vsel %vm240_vm2, %v7263_v2, -inf }
 0x3b9   :  { %v1329_v54 = vsel %vm7186_vm8, %v7161_v60, %v1306_v5  ;;  %v1383_v60 = vsel %vm240_vm2, %v7267_v11, -inf  ;;  %v7277_v14 = vmul.f32 0.35355338, %v1330_v50 }
 0x3ba   :  { %v7287_v19 = vmul.f32 0.35355338, %v1329_v54 }
 0x3bb   :  { %1369 = vmax.xlane.f32.xlu0 %v1368_v10  ;;  %v1392_v18 = vsel %vm240_vm2, %v7277_v14, -inf }
 0x3bc   :  { %1378 = vmax.xlane.f32.xlu1 %v1377_v12  ;;  %v1389_v20 = vsel %vm240_vm2, %v7287_v19, -inf }
 0x3bf   :  { %1381 = vmax.xlane.f32.xlu0 %v1380_v58 }
 0x3c0   :  { %1384 = vmax.xlane.f32.xlu1 %v1383_v60 }
 0x3c3   :  { %1387 = vmax.xlane.f32.xlu0 %v1386_v15 }
 0x3c7   :  { %1393 = vmax.xlane.f32.xlu0 %v1392_v18 }
 0x3d1   :  { %6385 = vrot.lane.b32.xlu1 %v6912_v35, %s6748_s1 }
 0x3dd   :  { %6380 = vrot.lane.b32.xlu0 %v6932_v43, %s6747_s16 }
 0x3f5   :  { %1390 = vmax.xlane.f32.xlu1 %v1389_v20 }
 0x406   :  { %6390 = vrot.lane.b32.xlu1 %v6912_v35, %s6749_s17 }
 0x430   :  { %v1352_v23 = vpop.xlane.xlu1 %1351 }
 0x431   :  { %v1396_v24 = vsub.f32 %v7176_v6, %v1352_v23  ;;  %v1349_v28 = vpop.xlane.xlu0 %1348 }
 0x432   :  { %v1395_v30 = vsub.f32 %v7184_v8, %v1349_v28 }
 0x433   :  { %v1413_v31 = vmul.f32 1.442695, %v1396_v24 }
 0x434   :  { %v1411_v32 = vmul.f32 1.442695, %v1395_v30 }
 0x435   :  { %6554 = vpow2.f32 %v1413_v31  ;;  %v1358_v33 = vpop.xlane.xlu0 %1357  ;;  %v1355_v36 = vpop.xlane.xlu1 %1354 }
 0x436   :  { %6556 = vpow2.f32 %v1411_v32  ;;  %v1398_v34 = vsub.f32 %v7196_v16, %v1358_v33  ;;  %v1397_v37 = vsub.f32 %v7202_v22, %v1355_v36 }
 0x438   :  { %v1417_v38 = vmul.f32 1.442695, %v1398_v34  ;;  %v1415_v40 = vmul.f32 1.442695, %v1397_v37 }
 0x439   :  { %v1364_v49 = vpop.xlane.xlu0 %1363 }
 0x43a   :  { %6558 = vpow2.f32 %v1417_v38  ;;  %v1400_v35 = vsub.f32 %v7209_v25, %v1364_v49 }
 0x43b   :  { %6560 = vpow2.f32 %v1415_v40 }
 0x43c   :  { %v1421_v6 = vmul.f32 1.442695, %v1400_v35 }
 0x43e   :  { %6562 = vpow2.f32 %v1421_v6 }
 0x43f   :  { %v7298_v8 = vpop.eup %6554 }
 0x440   :  { %v7300_v57 = vpop.eup %6556  ;;  %v1376_v45 = vpop.xlane.xlu0 %1375  ;;  %v1446_v61 = vsel %vm240_vm2, %v7298_v8, 0.0 }
 0x441   :  { %v1404_v16 = vsub.f32 %v7223_v39, %v1376_v45  ;;  %v1373_v22 = vpop.xlane.xlu1 %1372  ;;  %1447 = vadd.xlane.f32.xlu0 %v1446_v61  ;;  %v1443_v62 = vsel %vm240_vm2, %v7300_v57, 0.0 }
 0x442   :  { %1444 = vadd.xlane.f32.xlu1 %v1443_v62  ;;  %v1403_v46 = vsub.f32 %v7227_v41, %v1373_v22 }
 0x443   :  { %v1429_v25 = vmul.f32 1.442695, %v1404_v16 }
 0x444   :  { %v7308_v0 = vpop.eup %6558  ;;  %v1361_v1 = vpop.xlane.xlu0 %1360  ;;  %v1427_v51 = vmul.f32 1.442695, %v1403_v46 }
 0x445   :  { %v7310_v52 = vpop.eup %6560  ;;  %6564 = vpow2.f32 %v1429_v25  ;;  %v1399_v48 = vsub.f32 %v7229_v44, %v1361_v1  ;;  %v1367_v59 = vpop.xlane.xlu1 %1366  ;;  %v1452_v39 = vsel %vm240_vm2, %v7308_v0, 0.0 }
 0x446   :  { %1453 = vadd.xlane.f32.xlu0 %v1452_v39  ;;  %v1449_v55 = vsel %vm240_vm2, %v7310_v52, 0.0  ;;  %v1401_v5 = vsub.f32 %v7233_v42, %v1367_v59 }
 0x447   :  { %v1419_v50 = vmul.f32 1.442695, %v1399_v48  ;;  %1450 = vadd.xlane.f32.xlu1 %v1449_v55 }
 0x448   :  { %v7317_v41 = vpop.eup %6562  ;;  %v1370_v54 = vpop.xlane.xlu0 %1369  ;;  %v1423_v60 = vmul.f32 1.442695, %v1401_v5 }
 0x449   :  { %6566 = vpow2.f32 %v1419_v50  ;;  %v1402_v10 = vsub.f32 %v7249_v3, %v1370_v54  ;;  %v1379_v44 = vpop.xlane.xlu1 %1378  ;;  %v1458_v12 = vsel %vm240_vm2, %v7317_v41, 0.0 }
 0x44a   :  { %1459 = vadd.xlane.f32.xlu0 %v1458_v12  ;;  %6568 = vpow2.f32 %v1427_v51  ;;  %v1405_v15 = vsub.f32 %v7253_v56, %v1379_v44 }
 0x44b   :  { %v1425_v58 = vmul.f32 1.442695, %v1402_v10 }
 0x44c   :  { %v1382_v18 = vpop.xlane.xlu0 %1381  ;;  %v1431_v3 = vmul.f32 1.442695, %v1405_v15 }
 0x44d   :  { %6570 = vpow2.f32 %v1425_v58  ;;  %v1406_v20 = vsub.f32 %v7263_v2, %v1382_v18  ;;  %v1385_v23 = vpop.xlane.xlu1 %1384 }
 0x44e   :  { %6572 = vpow2.f32 %v1423_v60  ;;  %v1407_v28 = vsub.f32 %v7267_v11, %v1385_v23 }
 0x44f   :  { %v7325_v42 = vpop.eup %6564  ;;  %v1433_v24 = vmul.f32 1.442695, %v1406_v20 }
 0x450   :  { %v1388_v30 = vpop.xlane.xlu0 %1387  ;;  %v1470_v31 = vsel %vm240_vm2, %v7325_v42, 0.0  ;;  %v1435_v37 = vmul.f32 1.442695, %v1407_v28 }
 0x451   :  { %6574 = vpow2.f32 %v1433_v24  ;;  %v1408_v32 = vsub.f32 %v7271_v13, %v1388_v30  ;;  %v6386_v56 = vpop.permute.xlu1 %6385  ;;  %1471 = vadd.xlane.f32.xlu0 %v1470_v31 }
 0x452   :  { %v6388_v33 = vunpack.i.h.bf16 %v6386_v56  ;;  %v6387_v36 = vunpack.i.l.bf16 %v6386_v56  ;;  %6576 = vpow2.f32 %v1431_v3 }
 0x453   :  { %v7331_v2 = vpop.eup %6566  ;;  %v1437_v34 = vmul.f32 1.442695, %v1408_v32 }
 0x454   :  { %v1394_v38 = vpop.xlane.xlu0 %1393  ;;  %v1455_v11 = vsel %vm240_vm2, %v7331_v2, 0.0  ;;  %v7335_v40 = vpack.c.bf16 %v6388_v33, %v6387_v36  ;;  %v7337_v49 = vpop.eup %6568 }
 0x455   :  { %6578 = vpow2.f32 %v1437_v34  ;;  %v1410_v13 = vsub.f32 %v7277_v14, %v1394_v38  ;;  %1456 = vadd.xlane.f32.xlu1 %v1455_v11  ;;  %v1467_v16 = vsel %vm240_vm2, %v7337_v49, 0.0 }
 0x456   :  { %6043 = vmatprep.subr.bf16.mxu0 %v7335_v40  ;;  %6580 = vpow2.f32 %v1435_v37 }
 0x457   :  { %v7341_v35 = vpop.eup %6570  ;;  %v1441_v6 = vmul.f32 1.442695, %v1410_v13 }
 0x458   :  { %v6381_v45 = vpop.permute.xlu0 %6380  ;;  %v1464_v61 = vsel %vm240_vm2, %v7341_v35, 0.0  ;;  %v7347_v14 = vpop.eup %6572 }
 0x459   :  { %6582 = vpow2.f32 %v1441_v6  ;;  %v6383_v22 = vunpack.i.h.bf16 %v6381_v45  ;;  %v6382_v62 = vunpack.i.l.bf16 %v6381_v45  ;;  %1465 = vadd.xlane.f32.xlu0 %v1464_v61  ;;  %1468 = vadd.xlane.f32.xlu1 %v1467_v16  ;;  %v1461_v48 = vsel %vm240_vm2, %v7347_v14, 0.0 }
 0x45b   :  { %v7349_v25 = vpop.eup %6574  ;;  %v6038_v46 = vpack.c.bf16 %v6383_v22, %v6382_v62 }
 0x45c   :  { %v1476_v1 = vsel %vm240_vm2, %v7349_v25, 0.0  ;;  %v7355_v59 = vpop.eup %6576 }
 0x45d   :  { %1477 = vadd.xlane.f32.xlu0 %v1476_v1  ;;  %6039 = vmatprep.subr.bf16.mxu1 %v6038_v46  ;;  %v1473_v51 = vsel %vm240_vm2, %v7355_v59, 0.0 }
 0x45e   :  { %1462 = vadd.xlane.f32.xlu1 %v1461_v48  ;;  %6041 = vmatpush3.bf16.msra.mxu1 %v6038_v46 }
 0x45f   :  { %v7357_v39 = vpop.eup %6578 }
 0x460   :  { %v1482_v55 = vsel %vm240_vm2, %v7357_v39, 0.0  ;;  %v7363_v50 = vpop.eup %6580 }
 0x461   :  { %1483 = vadd.xlane.f32.xlu0 %v1482_v55  ;;  %v1479_v10 = vsel %vm240_vm2, %v7363_v50, 0.0 }
 0x462   :  { %1474 = vadd.xlane.f32.xlu1 %v1473_v51 }
 0x463   :  { %v7365_v5 = vpop.eup %6582 }
 0x464   :  { %v1488_v54 = vsel %vm240_vm2, %v7365_v5, 0.0 }
 0x465   :  { %1489 = vadd.xlane.f32.xlu0 %v1488_v54 }
 0x466   :  { %1480 = vadd.xlane.f32.xlu1 %v1479_v10 }
 0x47b   :  { %6395 = vrot.lane.b32.xlu0 %v6932_v43, %s6748_s1 }
 0x482   :  { %v1391_v44 = vpop.xlane.xlu1 %1390 }
 0x483   :  { %v1409_v12 = vsub.f32 %v7287_v19, %v1391_v44 }
 0x485   :  { %v1439_v58 = vmul.f32 1.442695, %v1409_v12 }
 0x486   :  { %v6391_v60 = vpop.permute.xlu1 %6390 }
 0x487   :  { %6584 = vpow2.f32 %v1439_v58  ;;  %v6393_v15 = vunpack.i.h.bf16 %v6391_v60  ;;  %v6392_v18 = vunpack.i.l.bf16 %v6391_v60 }
 0x489   :  { %v6050_v20 = vpack.c.bf16 %v6393_v15, %v6392_v18 }
 0x48b   :  { %6051 = vmatprep.subr.bf16.mxu1 %v6050_v20 }
 0x491   :  { %v7374_v23 = vpop.eup %6584 }
 0x492   :  { %v1485_v24 = vsel %vm240_vm2, %v7374_v23, 0.0 }
 0x493   :  { %1486 = vadd.xlane.f32.xlu1 %v1485_v24 }
 0x4a4   :  { %6400 = vrot.lane.b32.xlu1 %v6932_v43, %s6749_s17 }
 0x4ce   :  { %v1448_v3 = vpop.xlane.xlu0 %1447 }
 0x4cf   :  { %6586 = vrcp.f32 %v1448_v3  ;;  %v1445_v28 = vpop.xlane.xlu1 %1444 }
 0x4d0   :  { %6588 = vrcp.f32 %v1445_v28 }
 0x4d3   :  { %v1454_v19 = vpop.xlane.xlu0 %1453 }
 0x4d4   :  { %6590 = vrcp.f32 %v1454_v19  ;;  %v1451_v30 = vpop.xlane.xlu1 %1450 }
 0x4d5   :  { %6592 = vrcp.f32 %v1451_v30 }
 0x4d7   :  { %v1460_v34 = vpop.xlane.xlu0 %1459 }
 0x4d8   :  { %6594 = vrcp.f32 %v1460_v34 }
 0x4d9   :  { %v6587_v31 = vpop.eup %6586 }
 0x4da   :  { %v6589_v32 = vpop.eup %6588  ;;  %v1508_v33 = vmul.f32 %v6587_v31, %v7298_v8 }
 0x4db   :  { %v1507_v56 = vmul.f32 %v6589_v32, %v7300_v57 }
 0x4dd   :  { %5574 = vmatprep.mubr.msk.f32.mxu0 %vm240_vm2, %v1507_v56  ;;  %v6714_v56 = vld [vmem:[%s8335_s3 + $0x28] sm:$0xff] }
 0x4de   :  { %v6591_v36 = vpop.eup %6590  ;;  %5575 = vmatmul.mubr.msk.f32.vlgmr.msra.gmra.mrb[16].mxu0 %vm240_vm2, %v1508_v33  ;;  %v1472_v11 = vpop.xlane.xlu0 %1471  ;;  %v6715_v33 = vld [vmem:[%s8335_s3 + $0x38] sm:$0xff] }
 0x4df   :  { %v6593_v43 = vpop.eup %6592  ;;  %6045 = vmatpush3.bf16.msra.mxu0 %v7335_v40  ;;  %v1510_v37 = vmul.f32 %v6591_v36, %v7308_v0 }
 0x4e0   :  { %v1509_v38 = vmul.f32 %v6593_v43, %v7310_v52 }
 0x4e2   :  { %5577 = vmatprep.mubr.msk.f32.mxu0 %vm240_vm2, %v1509_v38  ;;  %v1457_v57 = vpop.xlane.xlu1 %1456  ;;  %v6595_v61 = vpop.eup %6594 }
 0x4e3   :  { %5578 = vmatmul.mubr.msk.f32.gmra.mrb[18].mxu0 %vm240_vm2, %v1510_v37  ;;  %6596 = vrcp.f32 %v1457_v57  ;;  %v1512_v16 = vmul.f32 %v6595_v61, %v7317_v41 }
 0x4e6   :  { %v1466_v8 = vpop.xlane.xlu0 %1465  ;;  %v1469_v13 = vpop.xlane.xlu1 %1468 }
 0x4e7   :  { %6598 = vrcp.f32 %v1469_v13 }
 0x4e8   :  { %6600 = vrcp.f32 %v1466_v8 }
 0x4ea   :  { %v1478_v6 = vpop.xlane.xlu0 %1477 }
 0x4eb   :  { %v1463_v45 = vpop.xlane.xlu1 %1462 }
 0x4ec   :  { %6602 = vrcp.f32 %v1463_v45 }
 0x4ed   :  { %v6597_v40 = vpop.eup %6596  ;;  %6604 = vrcp.f32 %v1472_v11 }
 0x4ee   :  { %v1484_v0 = vpop.xlane.xlu0 %1483  ;;  %v1511_v52 = vmul.f32 %v6597_v40, %v7331_v2 }
 0x4ef   :  { %v1475_v22 = vpop.xlane.xlu1 %1474 }
 0x4f0   :  { %5588 = vmatprep.mubr.msk.f32.mxu1 %vm240_vm2, %v1511_v52  ;;  %6606 = vrcp.f32 %v1475_v22 }
 0x4f1   :  { %5589 = vmatmul.mubr.msk.f32.vlgmr.msra.gmra.mrb[28].mxu1 %vm240_vm2, %v1512_v16  ;;  %v6599_v62 = vpop.eup %6598  ;;  %6608 = vrcp.f32 %v1478_v6 }
 0x4f2   :  { %6053 = vmatpush3.bf16.msra.mxu1 %v6050_v20  ;;  %v1490_v46 = vpop.xlane.xlu0 %1489  ;;  %v1515_v48 = vmul.f32 %v6599_v62, %v7337_v49  ;;  %v6601_v55 = vpop.eup %6600 }
 0x4f3   :  { %v1481_v1 = vpop.xlane.xlu1 %1480  ;;  %v1514_v44 = vmul.f32 %v6601_v55, %v7341_v35 }
 0x4f4   :  { %6610 = vrcp.f32 %v1481_v1  ;;  %5602 = vmatprep.mubr.msk.f32.mxu0 %vm240_vm2, %v1515_v48 }
 0x4f5   :  { %6612 = vrcp.f32 %v1484_v0 }
 0x4f6   :  { %v6603_v2 = vpop.eup %6602  ;;  %v6396_v41 = vpop.permute.xlu0 %6395 }
 0x4f7   :  { %v6398_v51 = vunpack.i.h.bf16 %v6396_v41  ;;  %v6397_v54 = vunpack.i.l.bf16 %v6396_v41  ;;  %v1513_v10 = vmul.f32 %v6603_v2, %v7347_v14  ;;  %v6605_v58 = vpop.eup %6604 }
 0x4f8   :  { %v1516_v15 = vmul.f32 %v6605_v58, %v7325_v42 }
 0x4f9   :  { %5591 = vmatprep.mubr.msk.f32.mxu1 %vm240_vm2, %v1513_v10  ;;  %v6046_v12 = vpack.c.bf16 %v6398_v51, %v6397_v54 }
 0x4fa   :  { %5592 = vmatmul.mubr.msk.f32.gmra.mrb[30].mxu1 %vm240_vm2, %v1514_v44  ;;  %v6607_v60 = vpop.eup %6606 }
 0x4fb   :  { %6047 = vmatprep.subr.bf16.mxu0 %v6046_v12  ;;  %v6609_v49 = vpop.eup %6608  ;;  %v1517_v20 = vmul.f32 %v6607_v60, %v7355_v59 }
 0x4fc   :  { %6049 = vmatpush3.bf16.msra.mxu0 %v6046_v12  ;;  %v1518_v35 = vmul.f32 %v6609_v49, %v7349_v25 }
 0x4fe   :  { %v6611_v18 = vpop.eup %6610 }
 0x4ff   :  { %5603 = vmatmul.mubr.msk.f32.vlgmr.msra.gmra.mrb[20].mxu0 %vm240_vm2, %v1516_v15  ;;  %v1519_v14 = vmul.f32 %v6611_v18, %v7363_v50  ;;  %v6613_v19 = vpop.eup %6612 }
 0x500   :  { %5605 = vmatprep.mubr.msk.f32.mxu0 %vm240_vm2, %v1517_v20  ;;  %v1520_v30 = vmul.f32 %v6613_v19, %v7357_v39  ;;  %v7419_v39 = vpack.i.bf16 %v6715_v33, %v6714_v56 }
 0x501   :  { %5616 = vmatprep.mubr.msk.f32.mxu1 %vm240_vm2, %v1519_v14 }
 0x502   :  { %6410 = vrot.lane.b32.xlu1 %v7419_v39, %s6750_s18 }
 0x503   :  { %5606 = vmatmul.mubr.msk.f32.gmra.mrb[22].mxu0 %vm240_vm2, %v1518_v35 }
 0x520   :  { %v1487_v24 = vpop.xlane.xlu1 %1486 }
 0x521   :  { %6614 = vrcp.f32 %v1487_v24 }
 0x522   :  { %6616 = vrcp.f32 %v1490_v46 }
 0x524   :  { %v6401_v42 = vpop.permute.xlu1 %6400 }
 0x525   :  { %v6403_v3 = vunpack.i.h.bf16 %v6401_v42  ;;  %v6402_v28 = vunpack.i.l.bf16 %v6401_v42 }
 0x527   :  { %v6054_v59 = vpack.c.bf16 %v6403_v3, %v6402_v28 }
 0x529   :  { %6055 = vmatprep.subr.bf16.mxu1 %v6054_v59 }
 0x52a   :  { %6057 = vmatpush3.bf16.msra.mxu1 %v6054_v59 }
 0x52b   :  { %v6615_v50 = vpop.eup %6614 }
 0x52c   :  { %v6617_v31 = vpop.eup %6616  ;;  %v1521_v32 = vmul.f32 %v6615_v50, %v7374_v23  ;;  %v6716_v23 = vld [vmem:[%s8335_s3 + $0x8] sm:$0xff] }
 0x52d   :  { %5617 = vmatmul.mubr.msk.f32.vlgmr.msra.gmra.mrb[32].mxu1 %vm240_vm2, %v1520_v30  ;;  %v1522_v25 = vmul.f32 %v6617_v31, %v7365_v5  ;;  %v6717_v5 = vld [vmem:[%s8335_s3 + $0x18] sm:$0xff] }
 0x52e   :  { %5619 = vmatprep.mubr.msk.f32.mxu1 %vm240_vm2, %v1521_v32  ;;  %v7427_v36 = vpack.i.bf16 %v6717_v5, %v6716_v23 }
 0x530   :  { %6405 = vrot.lane.b32.xlu0 %v7427_v36, %s6750_s18 }
 0x531   :  { %5620 = vmatmul.mubr.msk.f32.gmra.mrb[34].mxu1 %vm240_vm2, %v1522_v25 }
 0x574   :  { %v6411_v8 = vpop.permute.xlu1 %6410 }
 0x575   :  { %v6413_v6 = vunpack.i.h.bf16 %v6411_v8  ;;  %v6412_v45 = vunpack.i.l.bf16 %v6411_v8 }
 0x577   :  { %v6062_v52 = vpack.c.bf16 %v6413_v6, %v6412_v45 }
 0x5a2   :  { %v6406_v13 = vpop.permute.xlu0 %6405 }
 0x5a3   :  { %v6408_v61 = vunpack.i.h.bf16 %v6406_v13  ;;  %v6407_v40 = vunpack.i.l.bf16 %v6406_v13 }
 0x5a5   :  { %v6058_v0 = vpack.c.bf16 %v6408_v61, %v6407_v40 }
 0x5a7   :  { %6059 = vmatprep.subr.bf16.mxu0 %v6058_v0 }
 0x5a8   :  { %6061 = vmatpush3.bf16.msra.mxu0 %v6058_v0 }
 0x5a9   :  { %6063 = vmatprep.subr.bf16.mxu0 %v6062_v52 }
 0x5ac   :  { %6065 = vmatpush3.bf16.msra.mxu0 %v6062_v52 }
 0x5b1   :  { %v5576_v34 = vpop.f32.mrb[16].mxu0 }
 0x5b2   :  { %v1601_v43 = vpop.f32.mrb[17].mxu0 }
 0x5b6   :  { %v7433_v37 = vpop.f32.mrb[18].mxu0 }
 0x5b7   :  { %v1611_v38 = vpop.f32.mrb[19].mxu0 }
 0x5c4   :  { %v5590_v11 = vpop.f32.mrb[28].mxu1 }
 0x5c5   :  { %1917 = vrot.lane.b32.xlu1 %v5590_v11, %s6753_s28  ;;  %v1698_v57 = vpop.f32.mrb[29].mxu1 }
 0x5c6   :  { %1915 = vrot.lane.b32.xlu0 %v1698_v57, %s6753_s28 }
 0x5cd   :  { %v5593_v16 = vpop.f32.mrb[30].mxu1 }
 0x5ce   :  { %v1708_v22 = vpop.f32.mrb[31].mxu1 }
 0x5d2   :  { %v5604_v62 = vpop.f32.mrb[20].mxu0 }
 0x5d3   :  { %1933 = vrot.lane.b32.xlu1 %v5604_v62, %s6754_s29  ;;  %v1795_v46 = vpop.f32.mrb[21].mxu0 }
 0x5d4   :  { %1931 = vrot.lane.b32.xlu0 %v1795_v46, %s6754_s29 }
 0x5d6   :  { %v5607_v1 = vpop.f32.mrb[22].mxu0 }
 0x5d7   :  { %1921 = vrot.lane.b32.xlu1 %v5593_v16, %s6753_s28  ;;  %v1805_v48 = vpop.f32.mrb[23].mxu0 }
 0x5d8   :  { %1919 = vrot.lane.b32.xlu0 %v1708_v22, %s6753_s28 }
 0x600   :  { %v5618_v55 = vpop.f32.mrb[32].mxu1 }
 0x601   :  { %1949 = vrot.lane.b32.xlu1 %v5618_v55, %s6755_s2  ;;  %v1892_v2 = vpop.f32.mrb[33].mxu1 }
 0x602   :  { %1947 = vrot.lane.b32.xlu0 %v1892_v2, %s6755_s2 }
 0x604   :  { %v5621_v41 = vpop.f32.mrb[34].mxu1 }
 0x605   :  { %1937 = vrot.lane.b32.xlu1 %v5607_v1, %s6754_s29  ;;  %v1902_v51 = vpop.f32.mrb[35].mxu1 }
 0x606   :  { %1935 = vrot.lane.b32.xlu0 %v1805_v48, %s6754_s29 }
 0x609   :  { %1953 = vrot.lane.b32.xlu1 %v5621_v41, %s6755_s2 }
 0x60a   :  { %1951 = vrot.lane.b32.xlu0 %v1902_v51, %s6755_s2 }
 0x637   :  { %v1918_v54 = vpop.permute.xlu1 %1917 }
 0x638   :  { %v1916_v10 = vpop.permute.xlu0 %1915  ;;  %v1960_v18 = vsel %vm418_vm3, %v5576_v34, %v1918_v54 }
 0x639   :  { %v1959_v49 = vsel %vm418_vm3, %v1601_v43, %v1916_v10 }
 0x645   :  { %v1934_v44 = vpop.permute.xlu1 %1933 }
 0x646   :  { %v1932_v12 = vpop.permute.xlu0 %1931  ;;  %v1965_v35 = vsel %vm1963_vm9, %v1960_v18, %v1934_v44  ;;  %v2277_v18 = vld [vmem:[%s8336_s4 + $0x8] sm:$0xff] }
 0x647   :  { %v1964_v20 = vsel %vm1963_vm9, %v1959_v49, %v1932_v12 }
 0x649   :  { %v1922_v58 = vpop.permute.xlu1 %1921 }
 0x64a   :  { %v1920_v60 = vpop.permute.xlu0 %1919  ;;  %v1962_v50 = vsel %vm418_vm3, %v7433_v37, %v1922_v58  ;;  %v7495_v58 = vsub.s32 1, %v7148_v47 }
 0x64b   :  { %v1961_v59 = vsel %vm418_vm3, %v1611_v38, %v1920_v60  ;;  %v7500_v60 = vld [vmem:[%s8337_s5] sm:$0xf] }
 0x64c   :  { %v2146_v49 = vrot.slane %v7500_v60, %v7495_v58 }
 0x673   :  { %v1950_v15 = vpop.permute.xlu1 %1949 }
 0x674   :  { %v1948_v14 = vpop.permute.xlu0 %1947  ;;  %v1970_v42 = vsel %vm1968_vm10, %v1965_v35, %v1950_v15  ;;  %v2276_v15 = vld [vmem:[%s8336_s4] sm:$0xff]  ;;  %v2279_v35 = vld [vmem:[%s8336_s4 + $0x18] sm:$0xff] }
 0x675   :  { %v1969_v24 = vsel %vm1968_vm10, %v1964_v20, %v1948_v14  ;;  %v2278_v20 = vld [vmem:[%s8336_s4 + $0x10] sm:$0xff]  ;;  %v6074_v14 = vpack.c.bf16 %v2277_v18, %v2276_v15 }
 0x676   :  { %5630 = vmatprep.mubr.msk.f32.mxu0 %vm240_vm2, %v1969_v24  ;;  %v6078_v24 = vpack.c.bf16 %v2279_v35, %v2278_v20  ;;  %v7550_v35 = vsub.s32 3, %v7148_v47 }
 0x677   :  { %v1938_v3 = vpop.permute.xlu1 %1937  ;;  %5631 = vmatmul.mubr.msk.f32.vlgmr.msra.gmra.mrb[24].mxu0 %vm240_vm2, %v1970_v42  ;;  %v2281_v42 = vld [vmem:[%s8336_s4 + $0x28] sm:$0xff]  ;;  %6075 = vmatprep.subr.bf16.mxu0 %v6074_v14 }
 0x678   :  { %v1936_v28 = vpop.permute.xlu0 %1935  ;;  %v1967_v32 = vsel %vm1963_vm9, %v1962_v50, %v1938_v3  ;;  %6077 = vmatpush3.bf16.msra.mxu0 %v6074_v14 }
 0x679   :  { %v1966_v30 = vsel %vm1963_vm9, %v1961_v59, %v1936_v28  ;;  %6079 = vmatprep.subr.bf16.mxu0 %v6078_v24 }
 0x67b   :  { %v1954_v19 = vpop.permute.xlu1 %1953 }
 0x67c   :  { %v1952_v31 = vpop.permute.xlu0 %1951  ;;  %v1972_v56 = vsel %vm1968_vm10, %v1967_v32, %v1954_v19  ;;  %6081 = vmatpush3.bf16.msra.mxu0 %v6078_v24  ;;  %v2389_v24 = vrot.slane %v7500_v60, %v7550_v35 }
 0x67d   :  { %v1971_v25 = vsel %vm1968_vm10, %v1966_v30, %v1952_v31 }
 0x67e   :  { %5633 = vmatprep.mubr.msk.f32.mxu0 %vm240_vm2, %v1971_v25 }
 0x67f   :  { %5634 = vmatmul.mubr.msk.f32.gmra.mrb[26].mxu0 %vm240_vm2, %v1972_v56 }
 0x74a   :  { %v5632_v33 = vpop.f32.mrb[24].mxu0 }
 0x74b   :  { %v2087_v23 = vadd.f32 %v5632_v33, %v6883_v26  ;;  %v2067_v5 = vpop.f32.mrb[25].mxu0 }
 0x74c   :  { %v2086_v34 = vadd.f32 %v2067_v5, %v6872_v21 }
 0x74d   :  { %v2093_v43 = vsel %vm240_vm2, %v2087_v23, 0.0 }
 0x74e   :  { %2094 = vadd.xlane.f32.xlu1 %v2093_v43  ;;  %v2090_v37 = vsel %vm240_vm2, %v2086_v34, 0.0 }
 0x74f   :  { %2091 = vadd.xlane.f32.xlu0 %v2090_v37 }
 0x752   :  { %v5635_v38 = vpop.f32.mrb[26].mxu0 }
 0x753   :  { %v2077_v11 = vpop.f32.mrb[27].mxu0  ;;  %v2089_v8 = vadd.f32 %v5635_v38, %v6896_v29 }
 0x754   :  { %v2088_v57 = vadd.f32 %v2077_v11, %v6885_v27 }
 0x755   :  { %v2099_v26 = vsel %vm240_vm2, %v2089_v8, 0.0 }
 0x756   :  { %v2096_v13 = vsel %vm240_vm2, %v2088_v57, 0.0 }
 0x757   :  { %2097 = vadd.xlane.f32.xlu0 %v2096_v13 }
 0x75b   :  { %2100 = vadd.xlane.f32.xlu0 %v2099_v26 }
 0x75f   :  { %6415 = vrot.lane.b32.xlu1 %v7427_v36, %s6752_s20 }
 0x7db   :  { %v2095_v21 = vpop.xlane.xlu1 %2094 }
 0x7dc   :  { %v2104_v6 = vmul.f32 0.03125, %v2095_v21  ;;  %v2092_v45 = vpop.xlane.xlu0 %2091 }
 0x7dd   :  { %v2103_v61 = vmul.f32 0.03125, %v2092_v45 }
 0x7de   :  { %v7474_v40 = vsub.f32 %v2087_v23, %v2104_v6 }
 0x7df   :  { %v7476_v0 = vsub.f32 %v2086_v34, %v2103_v61  ;;  %v6416_v27 = vpop.permute.xlu1 %6415 }
 0x7e0   :  { %v2112_v29 = vmul.f32 %v7474_v40, %v7474_v40  ;;  %v6418_v52 = vunpack.i.h.bf16 %v6416_v27  ;;  %v6417_v16 = vunpack.i.l.bf16 %v6416_v27 }
 0x7e1   :  { %v2111_v22 = vmul.f32 %v7476_v0, %v7476_v0 }
 0x7e2   :  { %v2118_v62 = vsel %vm240_vm2, %v2112_v29, 0.0  ;;  %v6066_v36 = vpack.c.bf16 %v6418_v52, %v6417_v16 }
 0x7e3   :  { %2119 = vadd.xlane.f32.xlu0 %v2118_v62  ;;  %v2115_v46 = vsel %vm240_vm2, %v2111_v22, 0.0 }
 0x7e4   :  { %2116 = vadd.xlane.f32.xlu1 %v2115_v46  ;;  %v2098_v1 = vpop.xlane.xlu0 %2097  ;;  %6067 = vmatprep.subr.bf16.mxu1 %v6066_v36  ;;  %v2283_v46 = vld [vmem:[%s8336_s4 + $0x38] sm:$0xff] }
 0x7e5   :  { %v2105_v48 = vmul.f32 0.03125, %v2098_v1  ;;  %6069 = vmatpush3.bf16.msra.mxu1 %v6066_v36  ;;  %v2282_v36 = vld [vmem:[%s8336_s4 + $0x30] sm:$0xff] }
 0x7e6   :  { %v6086_v1 = vpack.c.bf16 %v2283_v46, %v2282_v36  ;;  %v7563_v36 = vsub.s32 2, %v7148_v47  ;;  %v5058_v46 = vld [vmem:[%s8335_s3 + $0x48] sm:$0xff] }
 0x7e7   :  { %v7484_v55 = vsub.f32 %v2088_v57, %v2105_v48  ;;  %v7541_v48 = vsub.s32 0, %v7148_v47 }
 0x7e8   :  { %v2101_v2 = vpop.xlane.xlu0 %2100  ;;  %v2449_v47 = vrot.slane %v7500_v60, %v7563_v36 }
 0x7e9   :  { %v2106_v41 = vmul.f32 0.03125, %v2101_v2  ;;  %v2113_v51 = vmul.f32 %v7484_v55, %v7484_v55 }
 0x7eb   :  { %v7488_v54 = vsub.f32 %v2089_v8, %v2106_v41  ;;  %v2121_v10 = vsel %vm240_vm2, %v2113_v51, 0.0 }
 0x7ec   :  { %2122 = vadd.xlane.f32.xlu1 %v2121_v10 }
 0x7ed   :  { %v2114_v44 = vmul.f32 %v7488_v54, %v7488_v54 }
 0x7ef   :  { %v2124_v12 = vsel %vm240_vm2, %v2114_v44, 0.0 }
 0x7f0   :  { %2125 = vadd.xlane.f32.xlu0 %v2124_v12 }
 0x7fd   :  { %2152 = vrot.lane.b32.xlu1 %v2146_v49, %s6750_s18 }
 0x806   :  { %6420 = vrot.lane.b32.xlu0 %v7419_v39, %s6752_s20  ;;  %v2280_v39 = vld [vmem:[%s8336_s4 + $0x20] sm:$0xff] }
 0x807   :  { %v6082_v3 = vpack.c.bf16 %v2281_v42, %v2280_v39 }
 0x809   :  { %6083 = vmatprep.subr.bf16.mxu0 %v6082_v3 }
 0x80a   :  { %6085 = vmatpush3.bf16.msra.mxu0 %v6082_v3 }
 0x80b   :  { %6087 = vmatprep.subr.bf16.mxu0 %v6086_v1 }
 0x80e   :  { %6089 = vmatpush3.bf16.msra.mxu0 %v6086_v1  ;;  %v5060_v1 = vld [vmem:[%s8335_s3 + $0x58] sm:$0xff] }
 0x870   :  { %v2120_v28 = vpop.xlane.xlu0 %2119 }
 0x871   :  { %v2128_v59 = vmul.f32 0.03125, %v2120_v28  ;;  %v2117_v19 = vpop.xlane.xlu1 %2116 }
 0x872   :  { %v2127_v50 = vmul.f32 0.03125, %v2117_v19 }
 0x873   :  { %v2132_v30 = vadd.f32 1e-05, %v2128_v59 }
 0x874   :  { %v2131_v31 = vadd.f32 1e-05, %v2127_v50 }
 0x875   :  { %6618 = vrsqrt.f32 %v2132_v30 }
 0x876   :  { %6620 = vrsqrt.f32 %v2131_v31 }
 0x879   :  { %v2123_v32 = vpop.xlane.xlu1 %2122 }
 0x87a   :  { %v2129_v25 = vmul.f32 0.03125, %v2123_v32 }
 0x87c   :  { %v2133_v56 = vadd.f32 1e-05, %v2129_v25 }
 0x87d   :  { %v2126_v33 = vpop.xlane.xlu0 %2125  ;;  %v2153_v13 = vpop.permute.xlu1 %2152 }
 0x87e   :  { %6622 = vrsqrt.f32 %v2133_v56  ;;  %v2130_v23 = vmul.f32 0.03125, %v2126_v33 }
 0x87f   :  { %v6619_v5 = vpop.eup %6618 }
 0x880   :  { %v6621_v34 = vpop.eup %6620  ;;  %v2134_v43 = vadd.f32 1e-05, %v2130_v23  ;;  %v2140_v37 = vmul.f32 %v6619_v5, %v7474_v40 }
 0x881   :  { %v6421_v38 = vpop.permute.xlu0 %6420  ;;  %v2139_v11 = vmul.f32 %v6621_v34, %v7476_v0 }
 0x882   :  { %6624 = vrsqrt.f32 %v2134_v43  ;;  %v6423_v57 = vunpack.i.h.bf16 %v6421_v38  ;;  %v6422_v8 = vunpack.i.l.bf16 %v6421_v38  ;;  %v2148_v21 = vmul.f32 %v2146_v49, %v2140_v37 }
 0x883   :  { %v2147_v26 = vmul.f32 %v2146_v49, %v2139_v11 }
 0x884   :  { %v6070_v6 = vpack.c.bf16 %v6423_v57, %v6422_v8  ;;  %v2156_v27 = vadd.f32 %v2153_v13, %v2148_v21 }
 0x885   :  { %v2155_v45 = vadd.f32 %v2153_v13, %v2147_v26 }
 0x886   :  { %6071 = vmatprep.subr.bf16.mxu1 %v6070_v6 }
 0x887   :  { %6073 = vmatpush3.bf16.msra.mxu1 %v6070_v6  ;;  %5644 = vmatprep.mubr.msk.f32.mxu1 %vm240_vm2, %v2155_v45 }
 0x888   :  { %v6623_v61 = vpop.eup %6622 }
 0x889   :  { %v2141_v29 = vmul.f32 %v6623_v61, %v7484_v55  ;;  %v2162_v55 = vrot.slane %v7500_v60, %v7541_v48  ;;  %v5063_v60 = vld [vmem:[%s8335_s3 + $0x70] sm:$0xff] }
 0x88a   :  { %5645 = vmatmul.mubr.msk.f32.vlgmr.msra.gmra.mrb[36].mxu1 %vm240_vm2, %v2156_v27 }
 0x88b   :  { %v2149_v40 = vmul.f32 %v2146_v49, %v2141_v29 }
 0x88c   :  { %v6625_v0 = vpop.eup %6624 }
 0x88d   :  { %v2157_v52 = vadd.f32 %v2153_v13, %v2149_v40  ;;  %v2142_v16 = vmul.f32 %v6625_v0, %v7488_v54 }
 0x88f   :  { %5647 = vmatprep.mubr.msk.f32.mxu1 %vm240_vm2, %v2157_v52  ;;  %v2150_v22 = vmul.f32 %v2146_v49, %v2142_v16 }
 0x891   :  { %v2158_v62 = vadd.f32 %v2153_v13, %v2150_v22 }
 0x893   :  { %5648 = vmatmul.mubr.msk.f32.gmra.mrb[38].mxu1 %vm240_vm2, %v2158_v62 }
 0x894   :  { %2549 = vmatprep.mubr.f32.mxu1 %v6746_v17 }
 0x95d   :  { %v5646_v2 = vpop.f32.mrb[36].mxu1 }
 0x95e   :  { %v2259_v41 = vadd.f32 %v5646_v2, %v2162_v55  ;;  %v2253_v51 = vpop.f32.mrb[37].mxu1  ;;  %v5057_v2 = vld [vmem:[%s8335_s3 + $0x40] sm:$0xff] }
 0x95f   :  { %v2254_v54 = vadd.f32 %v2253_v51, %v2162_v55 }
 0x960   :  { %v2273_v44 = vmax.f32 %v2259_v41, 0.0  ;;  %v5059_v41 = vld [vmem:[%s8335_s3 + $0x50] sm:$0xff] }
 0x961   :  { %v2272_v10 = vmax.f32 %v2254_v54, 0.0  ;;  %v6092_v51 = vpack.c.bf16 %v5059_v41, %v5057_v2  ;;  %v5062_v54 = vld [vmem:[%s8335_s3 + $0x68] sm:$0xff] }
 0x963   :  { %5666 = vmatprep.mubr.msk.f32.mxu0 %vm2284_vm11, %v2272_v10  ;;  %v5064_v10 = vld [vmem:[%s8335_s3 + $0x78] sm:$0xff] }
 0x964   :  { %5667 = vmatmul.mubr.msk.f32.vlgmr.msra.gmra.mrb[28].mxu0 %vm2284_vm11, %v2273_v44  ;;  %v6094_v44 = vpack.c.bf16 %v5064_v10, %v5062_v54 }
 0x966   :  { %v5649_v12 = vpop.f32.mrb[38].mxu1 }
 0x967   :  { %v2269_v49 = vadd.f32 %v5649_v12, %v2162_v55  ;;  %v2263_v15 = vpop.f32.mrb[39].mxu1  ;;  %v5061_v12 = vld [vmem:[%s8335_s3 + $0x60] sm:$0xff] }
 0x968   :  { %v2264_v18 = vadd.f32 %v2263_v15, %v2162_v55  ;;  %v6090_v55 = vpack.c.bf16 %v5060_v1, %v5058_v46 }
 0x969   :  { %v2275_v14 = vmax.f32 %v2269_v49, 0.0  ;;  %v6096_v49 = vpack.c.bf16 %v5063_v60, %v5061_v12 }
 0x96a   :  { %v2274_v20 = vmax.f32 %v2264_v18, 0.0  ;;  %6091 = vmatprep.subr.bf16.mxu1 %v6090_v55 }
 0x96b   :  { %6093 = vmatpush1.bf16.msra.mxu1 %v6092_v51 }
 0x96c   :  { %5669 = vmatprep.mubr.msk.f32.mxu0 %vm2284_vm11, %v2274_v20  ;;  %6095 = vmatprep.subr.bf16.mxu1 %v6094_v44 }
 0x96d   :  { %5670 = vmatmul.mubr.msk.f32.gmra.mrb[30].mxu0 %vm2284_vm11, %v2275_v14 }
 0x96f   :  { %6097 = vmatpush1.bf16.msra.mxu1 %v6096_v49 }
 0xa37   :  { %v5668_v39 = vpop.f32.mrb[28].mxu0 }
 0xa38   :  { %v2383_v42 = vadd.f32 %v5668_v39, %v2156_v27  ;;  %v2363_v3 = vpop.f32.mrb[29].mxu0 }
 0xa39   :  { %v2382_v28 = vadd.f32 %v2363_v3, %v2155_v45 }
 0xa3a   :  { %v2391_v59 = vadd.f32 %v2389_v24, %v2383_v42 }
 0xa3b   :  { %v2390_v19 = vadd.f32 %v2389_v24, %v2382_v28 }
 0xa3c   :  { %v2397_v50 = vsel %vm240_vm2, %v2391_v59, 0.0 }
 0xa3d   :  { %2398 = vadd.xlane.f32.xlu0 %v2397_v50  ;;  %v2394_v30 = vsel %vm240_vm2, %v2390_v19, 0.0 }
 0xa3e   :  { %2395 = vadd.xlane.f32.xlu1 %v2394_v30 }
 0xa40   :  { %v5671_v31 = vpop.f32.mrb[30].mxu0 }
 0xa41   :  { %v2385_v32 = vadd.f32 %v5671_v31, %v2158_v62  ;;  %v2373_v25 = vpop.f32.mrb[31].mxu0 }
 0xa42   :  { %v2384_v56 = vadd.f32 %v2373_v25, %v2157_v52 }
 0xa43   :  { %v2393_v33 = vadd.f32 %v2389_v24, %v2385_v32 }
 0xa44   :  { %v2392_v23 = vadd.f32 %v2389_v24, %v2384_v56 }
 0xa45   :  { %v2403_v5 = vsel %vm240_vm2, %v2393_v33, 0.0 }
 0xa46   :  { %2404 = vadd.xlane.f32.xlu1 %v2403_v5  ;;  %v2400_v34 = vsel %vm240_vm2, %v2392_v23, 0.0 }
 0xa47   :  { %2401 = vadd.xlane.f32.xlu0 %v2400_v34 }
 0xaca   :  { %v2399_v43 = vpop.xlane.xlu0 %2398 }
 0xacb   :  { %v2407_v37 = vmul.f32 0.03125, %v2399_v43  ;;  %v2396_v38 = vpop.xlane.xlu1 %2395 }
 0xacc   :  { %v2406_v11 = vmul.f32 0.03125, %v2396_v38 }
 0xacd   :  { %v2411_v57 = vsub.f32 %v2391_v59, %v2407_v37 }
 0xace   :  { %v2410_v8 = vsub.f32 %v2390_v19, %v2406_v11 }
 0xacf   :  { %v2415_v13 = vmul.f32 %v2411_v57, %v2411_v57 }
 0xad0   :  { %v2414_v26 = vmul.f32 %v2410_v8, %v2410_v8 }
 0xad1   :  { %v2421_v21 = vsel %vm240_vm2, %v2415_v13, 0.0 }
 0xad2   :  { %2422 = vadd.xlane.f32.xlu1 %v2421_v21  ;;  %v2418_v6 = vsel %vm240_vm2, %v2414_v26, 0.0 }
 0xad3   :  { %v2405_v45 = vpop.xlane.xlu1 %2404  ;;  %2419 = vadd.xlane.f32.xlu0 %v2418_v6 }
 0xad4   :  { %v2409_v61 = vmul.f32 0.03125, %v2405_v45  ;;  %v2402_v27 = vpop.xlane.xlu0 %2401 }
 0xad5   :  { %v2408_v29 = vmul.f32 0.03125, %v2402_v27 }
 0xad6   :  { %v2413_v40 = vsub.f32 %v2393_v33, %v2409_v61 }
 0xad7   :  { %v2412_v0 = vsub.f32 %v2392_v23, %v2408_v29 }
 0xad8   :  { %v2417_v52 = vmul.f32 %v2413_v40, %v2413_v40 }
 0xad9   :  { %v2416_v16 = vmul.f32 %v2412_v0, %v2412_v0 }
 0xada   :  { %v2427_v22 = vsel %vm240_vm2, %v2417_v52, 0.0 }
 0xadb   :  { %2428 = vadd.xlane.f32.xlu1 %v2427_v22  ;;  %v2424_v62 = vsel %vm240_vm2, %v2416_v16, 0.0 }
 0xadc   :  { %2425 = vadd.xlane.f32.xlu0 %v2424_v62 }
 0xaf2   :  { %2455 = vrot.lane.b32.xlu0 %v2449_v47, %s6750_s18 }
 0xb5f   :  { %v2423_v15 = vpop.xlane.xlu1 %2422 }
 0xb60   :  { %v2431_v18 = vmul.f32 0.03125, %v2423_v15  ;;  %v2420_v20 = vpop.xlane.xlu0 %2419 }
 0xb61   :  { %v2430_v14 = vmul.f32 0.03125, %v2420_v20 }
 0xb62   :  { %v2435_v24 = vadd.f32 1e-05, %v2431_v18 }
 0xb63   :  { %v2434_v39 = vadd.f32 1e-05, %v2430_v14 }
 0xb64   :  { %6626 = vrsqrt.f32 %v2435_v24 }
 0xb65   :  { %6628 = vrsqrt.f32 %v2434_v39 }
 0xb68   :  { %v2429_v42 = vpop.xlane.xlu1 %2428 }
 0xb69   :  { %v2433_v3 = vmul.f32 0.03125, %v2429_v42  ;;  %v2426_v28 = vpop.xlane.xlu0 %2425 }
 0xb6a   :  { %v2432_v59 = vmul.f32 0.03125, %v2426_v28 }
 0xb6b   :  { %v2437_v19 = vadd.f32 1e-05, %v2433_v3 }
 0xb6c   :  { %v2436_v50 = vadd.f32 1e-05, %v2432_v59 }
 0xb6d   :  { %6630 = vrsqrt.f32 %v2437_v19  ;;  %v2456_v56 = vpop.permute.xlu0 %2455 }
 0xb6e   :  { %v6627_v30 = vpop.eup %6626  ;;  %6632 = vrsqrt.f32 %v2436_v50 }
 0xb6f   :  { %v6629_v31 = vpop.eup %6628  ;;  %v2443_v25 = vmul.f32 %v6627_v30, %v2411_v57 }
 0xb70   :  { %v2442_v32 = vmul.f32 %v6629_v31, %v2410_v8 }
 0xb71   :  { %v2451_v5 = vmul.f32 %v2449_v47, %v2443_v25 }
 0xb72   :  { %v2450_v33 = vmul.f32 %v2449_v47, %v2442_v32 }
 0xb73   :  { %v7597_v37 = vadd.f32 %v2456_v56, %v2451_v5 }
 0xb74   :  { %v7592_v23 = vadd.f32 %v2456_v56, %v2450_v33 }
 0xb76   :  { %5066 = vmatmul.mubr.msk.f32.vlgmr.msra.gmra.mrb[40].mxu1 %vm240_vm2, %v7592_v23 }
 0xb77   :  { %v6631_v34 = vpop.eup %6630  ;;  %2555 = vmatprep.mubr.f32.mxu1 %v6746_v17 }
 0xb78   :  { %v6633_v43 = vpop.eup %6632  ;;  %v2445_v11 = vmul.f32 %v6631_v34, %v2413_v40 }
 0xb79   :  { %v2444_v38 = vmul.f32 %v6633_v43, %v2412_v0 }
 0xb7a   :  { %5067 = vmatmul.mubr.msk.f32.gmra.mrb[42].mxu1 %vm240_vm2, %v7597_v37  ;;  %v2453_v13 = vmul.f32 %v2449_v47, %v2445_v11 }
 0xb7b   :  { %2561 = vmatprep.mubr.f32.mxu1 %v6746_v17  ;;  %v2452_v57 = vmul.f32 %v2449_v47, %v2444_v38 }
 0xb7c   :  { %v7607_v26 = vadd.f32 %v2456_v56, %v2453_v13 }
 0xb7d   :  { %v7602_v8 = vadd.f32 %v2456_v56, %v2452_v57 }
 0xb7f   :  { %5068 = vmatmul.mubr.msk.f32.gmra.mrb[44].mxu1 %vm240_vm2, %v7602_v8 }
 0xb80   :  { %2567 = vmatprep.mubr.f32.mxu1 %v6746_v17 }
 0xb83   :  { %5069 = vmatmul.mubr.msk.f32.gmra.mrb[46].mxu1 %vm240_vm2, %v7607_v26 }
 0xc49   :  { %v7611_v21 = vpop.f32.mrb[40].mxu1 }
 0xc4a   :  { %2578 = vrot.lane.b32.xlu1 %v7611_v21, %s6747_s16  ;;  %v2553_v6 = vpop.f32.mrb[41].mxu1  ;;  %5680 = vmatprep.mubr.msk.f32.mxu1 %vm418_vm3, %v7611_v21 }
 0xc4d   :  { %v7617_v45 = vpop.f32.mrb[42].mxu1 }
 0xc4e   :  { %2580 = vrot.lane.b32.xlu1 %v7617_v45, %s6747_s16  ;;  %v2559_v17 = vpop.f32.mrb[43].mxu1  ;;  %v6424_v61 = vpack.i.bf16 %v7617_v45, %v7611_v21 }
 0xc4f   :  { %v7623_v27 = vpack.i.bf16 %v2559_v17, %v2553_v6  ;;  %v7625_v29 = vpack.c.bf16 %v2559_v17, %v2553_v6 }
 0xc52   :  { %v7627_v40 = vpop.f32.mrb[44].mxu1 }
 0xc53   :  { %2582 = vrot.lane.b32.xlu0 %v7627_v40, %s6747_s16  ;;  %v2565_v0 = vpop.f32.mrb[45].mxu1 }
 0xc56   :  { %v7631_v52 = vpop.f32.mrb[46].mxu1 }
 0xc57   :  { %2586 = vrot.lane.b32.xlu0 %v7611_v21, %s6748_s1  ;;  %2584 = vrot.lane.b32.xlu1 %v7631_v52, %s6747_s16  ;;  %v2571_v16 = vpop.f32.mrb[47].mxu1  ;;  %v6434_v22 = vpack.i.bf16 %v7631_v52, %v7627_v40 }
 0xc58   :  { %v7639_v62 = vpack.i.bf16 %v2571_v16, %v2565_v0  ;;  %v7641_v46 = vpack.c.bf16 %v2571_v16, %v2565_v0 }
 0xc5b   :  { %2594 = vrot.lane.b32.xlu0 %v7611_v21, %s6749_s17  ;;  %2588 = vrot.lane.b32.xlu1 %v7617_v45, %s6748_s1 }
 0xc5f   :  { %2590 = vrot.lane.b32.xlu0 %v7627_v40, %s6748_s1  ;;  %2596 = vrot.lane.b32.xlu1 %v7617_v45, %s6749_s17 }
 0xc63   :  { %2598 = vrot.lane.b32.xlu0 %v7627_v40, %s6749_s17  ;;  %2592 = vrot.lane.b32.xlu1 %v7631_v52, %s6748_s1 }
 0xc67   :  { %6425 = vrot.lane.b32.xlu0 %v6424_v61, %s6750_s18  ;;  %2600 = vrot.lane.b32.xlu1 %v7631_v52, %s6749_s17 }
 0xc6b   :  { %6435 = vrot.lane.b32.xlu0 %v6434_v22, %s6750_s18 }
 0xcbc   :  { %v2579_v1 = vpop.permute.xlu1 %2578 }
 0xcbd   :  { %5694 = vmatprep.mubr.msk.f32.mxu0 %vm418_vm3, %v2579_v1 }
 0xcc0   :  { %v7660_v55 = vpop.permute.xlu1 %2580 }
 0xcc1   :  { %v6429_v2 = vpack.i.bf16 %v7660_v55, %v2579_v1 }
 0xcc3   :  { %6430 = vrot.lane.b32.xlu1 %v6429_v2, %s6750_s18 }
 0xcc5   :  { %v7664_v41 = vpop.permute.xlu0 %2582 }
 0xcc9   :  { %v2587_v47 = vpop.permute.xlu0 %2586  ;;  %v7666_v51 = vpop.permute.xlu1 %2584 }
 0xcca   :  { %v6439_v54 = vpack.i.bf16 %v7666_v51, %v7664_v41 }
 0xccc   :  { %6440 = vrot.lane.b32.xlu1 %v6439_v54, %s6750_s18 }
 0xccd   :  { %v7671_v10 = vpop.permute.xlu0 %2594  ;;  %v7673_v44 = vpop.permute.xlu1 %2588 }
 0xcce   :  { %v6444_v12 = vpack.i.bf16 %v7673_v44, %v2587_v47 }
 0xcd0   :  { %6445 = vrot.lane.b32.xlu0 %v6444_v12, %s6750_s18 }
 0xcd1   :  { %v7677_v60 = vpop.permute.xlu0 %2590  ;;  %v7679_v49 = vpop.permute.xlu1 %2596 }
 0xcd2   :  { %v6449_v15 = vpack.i.bf16 %v7679_v49, %v7671_v10 }
 0xcd4   :  { %6450 = vrot.lane.b32.xlu1 %v6449_v15, %s6750_s18 }
 0xcd5   :  { %v7684_v18 = vpop.permute.xlu0 %2598  ;;  %v7686_v20 = vpop.permute.xlu1 %2592 }
 0xcd6   :  { %v6454_v14 = vpack.i.bf16 %v7686_v20, %v7677_v60 }
 0xcd8   :  { %6455 = vrot.lane.b32.xlu0 %v6454_v14, %s6750_s18 }
 0xcd9   :  { %v6426_v24 = vpop.permute.xlu0 %6425  ;;  %v7691_v39 = vpop.permute.xlu1 %2600 }
 0xcda   :  { %v6428_v42 = vunpack.i.h.bf16 %v6426_v24  ;;  %v6427_v3 = vunpack.i.l.bf16 %v6426_v24  ;;  %v6464_v28 = vpack.i.bf16 %v7691_v39, %v7684_v18 }
 0xcdc   :  { %v6098_v59 = vpack.c.bf16 %v6428_v42, %v6427_v3  ;;  %6460 = vrot.lane.b32.xlu0 %v6424_v61, %s6751_s19  ;;  %6465 = vrot.lane.b32.xlu1 %v6464_v28, %s6750_s18 }
 0xcdd   :  { %v6436_v19 = vpop.permute.xlu0 %6435 }
 0xcde   :  { %v6438_v50 = vunpack.i.h.bf16 %v6436_v19  ;;  %v6437_v30 = vunpack.i.l.bf16 %v6436_v19  ;;  %6100 = vmatprep.subr.msk.bf16.mxu1 %vm6981_vm4, %v6098_v59 }
 0xcdf   :  { %6103 = vmatpush3.bf16.xpose.msk.msra.mxu1 %vm6981_vm4, %v6098_v59 }
 0xce0   :  { %v6104_v31 = vpack.c.bf16 %v6438_v50, %v6437_v30  ;;  %6475 = vrot.lane.b32.xlu0 %v6434_v22, %s6751_s19  ;;  %6470 = vrot.lane.b32.xlu1 %v6429_v2, %s6751_s19 }
 0xce2   :  { %6106 = vmatprep.subr.msk.bf16.mxu1 %vm6981_vm4, %v6104_v31 }
 0xce4   :  { %6480 = vrot.lane.b32.xlu0 %v6444_v12, %s6751_s19  ;;  %6485 = vrot.lane.b32.xlu1 %v6449_v15, %s6751_s19 }
 0xce7   :  { %6109 = vmatpush3.bf16.xpose.msk.msra.mxu1 %vm6981_vm4, %v6104_v31 }
 0xce8   :  { %3078 = vrot.lane.b32.xlu0 %v7611_v21, %s6752_s20  ;;  %3080 = vrot.lane.b32.xlu1 %v7617_v45, %s6752_s20 }
 0xcec   :  { %3195 = vrot.lane.b32.xlu0 %v2579_v1, %s6752_s20  ;;  %6490 = vrot.lane.b32.xlu1 %v6439_v54, %s6751_s19 }
 0xcee   :  { %5681 = vmatmul.mubr.msk.f32.vlgmr.msra.gmra.mrb[48].mxu1 %vm418_vm3, %v7617_v45 }
 0xcef   :  { %5683 = vmatprep.mubr.msk.f32.mxu1 %vm418_vm3, %v7627_v40 }
 0xcf0   :  { %3082 = vrot.lane.b32.xlu0 %v7627_v40, %s6752_s20  ;;  %3197 = vrot.lane.b32.xlu1 %v7660_v55, %s6752_s20 }
 0xcf2   :  { %5684 = vmatmul.mubr.msk.f32.gmra.mrb[50].mxu1 %vm418_vm3, %v7631_v52 }
 0xcf3   :  { %5708 = vmatprep.mubr.msk.f32.mxu1 %vm418_vm3, %v2587_v47 }
 0xcf4   :  { %3199 = vrot.lane.b32.xlu0 %v7664_v41, %s6752_s20  ;;  %3084 = vrot.lane.b32.xlu1 %v7631_v52, %s6752_s20 }
 0xcf8   :  { %6495 = vrot.lane.b32.xlu0 %v6454_v14, %s6751_s19  ;;  %3314 = vrot.lane.b32.xlu1 %v7673_v44, %s6752_s20 }
 0xcfc   :  { %3312 = vrot.lane.b32.xlu0 %v2587_v47, %s6752_s20  ;;  %6500 = vrot.lane.b32.xlu1 %v6464_v28, %s6751_s19 }
 0xd00   :  { %3429 = vrot.lane.b32.xlu0 %v7671_v10, %s6752_s20  ;;  %3431 = vrot.lane.b32.xlu1 %v7679_v49, %s6752_s20 }
 0xd04   :  { %3316 = vrot.lane.b32.xlu0 %v7677_v60, %s6752_s20  ;;  %3201 = vrot.lane.b32.xlu1 %v7666_v51, %s6752_s20 }
 0xd08   :  { %3433 = vrot.lane.b32.xlu0 %v7684_v18, %s6752_s20  ;;  %3318 = vrot.lane.b32.xlu1 %v7686_v20, %s6752_s20 }
 0xd0c   :  { %3435 = vrot.lane.b32.xlu1 %v7691_v39, %s6752_s20 }
 0xd10   :  { %6505 = vrot.lane.b32.xlu1 %v7623_v27, %s6747_s16 }
 0xd35   :  { %v6431_v32 = vpop.permute.xlu1 %6430 }
 0xd36   :  { %v6433_v25 = vunpack.i.h.bf16 %v6431_v32  ;;  %v6432_v56 = vunpack.i.l.bf16 %v6431_v32 }
 0xd38   :  { %v6110_v33 = vpack.c.bf16 %v6433_v25, %v6432_v56 }
 0xd3a   :  { %6112 = vmatprep.subr.msk.bf16.mxu0 %vm6981_vm4, %v6110_v33 }
 0xd3b   :  { %6115 = vmatpush3.bf16.xpose.msk.msra.mxu0 %vm6981_vm4, %v6110_v33 }
 0xd3e   :  { %v6441_v5 = vpop.permute.xlu1 %6440 }
 0xd3f   :  { %v6443_v34 = vunpack.i.h.bf16 %v6441_v5  ;;  %v6442_v43 = vunpack.i.l.bf16 %v6441_v5 }
 0xd41   :  { %v6116_v38 = vpack.c.bf16 %v6443_v34, %v6442_v43 }
 0xd42   :  { %v6446_v11 = vpop.permute.xlu0 %6445 }
 0xd43   :  { %v6448_v57 = vunpack.i.h.bf16 %v6446_v11  ;;  %v6447_v13 = vunpack.i.l.bf16 %v6446_v11  ;;  %6118 = vmatprep.subr.msk.bf16.mxu0 %vm6981_vm4, %v6116_v38 }
 0xd44   :  { %6121 = vmatpush3.bf16.xpose.msk.msra.mxu0 %vm6981_vm4, %v6116_v38 }
 0xd45   :  { %v6122_v21 = vpack.c.bf16 %v6448_v57, %v6447_v13 }
 0xd46   :  { %v6451_v6 = vpop.permute.xlu1 %6450 }
 0xd47   :  { %v6453_v45 = vunpack.i.h.bf16 %v6451_v6  ;;  %v6452_v17 = vunpack.i.l.bf16 %v6451_v6  ;;  %6124 = vmatprep.subr.msk.bf16.mxu1 %vm6981_vm4, %v6122_v21 }
 0xd48   :  { %6127 = vmatpush3.bf16.xpose.msk.msra.mxu1 %vm6981_vm4, %v6122_v21 }
 0xd49   :  { %v6134_v61 = vpack.c.bf16 %v6453_v45, %v6452_v17 }
 0xd4a   :  { %v6456_v40 = vpop.permute.xlu0 %6455 }
 0xd4b   :  { %v6458_v0 = vunpack.i.h.bf16 %v6456_v40  ;;  %v6457_v52 = vunpack.i.l.bf16 %v6456_v40  ;;  %5695 = vmatmul.mubr.msk.f32.vlgmr.msra.gmra.mrb[32].mxu0 %vm418_vm3, %v7660_v55  ;;  %6136 = vmatprep.subr.msk.bf16.mxu0 %vm6981_vm4, %v6134_v61 }
 0xd4c   :  { %5697 = vmatprep.mubr.msk.f32.mxu0 %vm418_vm3, %v7664_v41  ;;  %6139 = vmatpush3.bf16.xpose.msk.msra.mxu0 %vm6981_vm4, %v6134_v61 }
 0xd4d   :  { %v6128_v16 = vpack.c.bf16 %v6458_v0, %v6457_v52 }
 0xd4e   :  { %v6461_v22 = vpop.permute.xlu0 %6460  ;;  %v6466_v1 = vpop.permute.xlu1 %6465 }
 0xd4f   :  { %v6463_v2 = vunpack.i.h.bf16 %v6461_v22  ;;  %v6462_v47 = vunpack.i.l.bf16 %v6461_v22  ;;  %v6468_v54 = vunpack.i.h.bf16 %v6466_v1  ;;  %v6467_v12 = vunpack.i.l.bf16 %v6466_v1  ;;  %5698 = vmatmul.mubr.msk.f32.gmra.mrb[34].mxu0 %vm418_vm3, %v7666_v51  ;;  %6130 = vmatprep.subr.msk.bf16.mxu1 %vm6981_vm4, %v6128_v16 }
 0xd50   :  { %6133 = vmatpush3.bf16.xpose.msk.msra.mxu1 %vm6981_vm4, %v6128_v16  ;;  %5722 = vmatprep.mubr.msk.f32.mxu0 %vm418_vm3, %v7671_v10 }
 0xd51   :  { %v6146_v55 = vpack.c.bf16 %v6463_v2, %v6462_v47  ;;  %v6140_v41 = vpack.c.bf16 %v6468_v54, %v6467_v12 }
 0xd52   :  { %v6476_v15 = vpop.permute.xlu0 %6475  ;;  %v6471_v14 = vpop.permute.xlu1 %6470 }
 0xd53   :  { %v6478_v24 = vunpack.i.h.bf16 %v6476_v15  ;;  %v6477_v42 = vunpack.i.l.bf16 %v6476_v15  ;;  %v6473_v3 = vunpack.i.h.bf16 %v6471_v14  ;;  %v6472_v28 = vunpack.i.l.bf16 %v6471_v14  ;;  %6142 = vmatprep.subr.msk.bf16.mxu0 %vm6981_vm4, %v6140_v41  ;;  %6148 = vmatprep.subr.msk.bf16.mxu1 %vm6981_vm4, %v6146_v55 }
 0xd54   :  { %6145 = vmatpush3.bf16.xpose.msk.msra.mxu0 %vm6981_vm4, %v6140_v41 }
 0xd55   :  { %v6158_v51 = vpack.c.bf16 %v6473_v3, %v6472_v28  ;;  %v6152_v19 = vpack.c.bf16 %v6478_v24, %v6477_v42 }
 0xd56   :  { %v6481_v59 = vpop.permute.xlu0 %6480  ;;  %v6486_v10 = vpop.permute.xlu1 %6485 }
 0xd57   :  { %5709 = vmatmul.mubr.msk.f32.vlgmr.msra.gmra.mrb[52].mxu1 %vm418_vm3, %v7673_v44  ;;  %6160 = vmatprep.subr.msk.bf16.mxu0 %vm6981_vm4, %v6158_v51  ;;  %v6483_v31 = vunpack.i.h.bf16 %v6481_v59  ;;  %v6482_v32 = vunpack.i.l.bf16 %v6481_v59  ;;  %v6487_v5 = vunpack.i.l.bf16 %v6486_v10 }
 0xd58   :  { %5711 = vmatprep.mubr.msk.f32.mxu1 %vm418_vm3, %v7677_v60  ;;  %6151 = vmatpush3.bf16.xpose.msk.msra.mxu1 %vm6981_vm4, %v6146_v55 }
 0xd59   :  { %6154 = vmatprep.subr.msk.bf16.mxu1 %vm6981_vm4, %v6152_v19  ;;  %v6170_v25 = vpack.c.bf16 %v6483_v31, %v6482_v32 }
 0xd5a   :  { %v3079_v50 = vpop.permute.xlu0 %3078  ;;  %v3081_v30 = vpop.permute.xlu1 %3080 }
 0xd5b   :  { %5712 = vmatmul.mubr.msk.f32.gmra.mrb[54].mxu1 %vm418_vm3, %v7686_v20  ;;  %5723 = vmatmul.mubr.msk.f32.vlgmr.msra.gmra.mrb[36].mxu0 %vm418_vm3, %v7679_v49  ;;  %v6488_v20 = vunpack.i.h.bf16 %v6486_v10 }
 0xd5c   :  { %5725 = vmatprep.mubr.msk.f32.mxu0 %vm418_vm3, %v7684_v18  ;;  %5736 = vmatprep.mubr.msk.f32.mxu1 %vm418_vm3, %v3079_v50 }
 0xd5d   :  { %6163 = vmatpush3.bf16.xpose.msk.msra.mxu0 %vm6981_vm4, %v6158_v51  ;;  %v6182_v43 = vpack.c.bf16 %v6488_v20, %v6487_v5 }
 0xd5e   :  { %v3196_v44 = vpop.permute.xlu0 %3195  ;;  %v6491_v60 = vpop.permute.xlu1 %6490 }
 0xd5f   :  { %v6493_v56 = vunpack.i.h.bf16 %v6491_v60  ;;  %v6492_v33 = vunpack.i.l.bf16 %v6491_v60  ;;  %5726 = vmatmul.mubr.msk.f32.gmra.mrb[38].mxu0 %vm418_vm3, %v7691_v39 }
 0xd60   :  { %6157 = vmatpush3.bf16.xpose.msk.msra.mxu1 %vm6981_vm4, %v6152_v19  ;;  %5750 = vmatprep.mubr.msk.f32.mxu0 %vm418_vm3, %v3196_v44 }
 0xd61   :  { %v6164_v49 = vpack.c.bf16 %v6493_v56, %v6492_v33  ;;  %6172 = vmatprep.subr.msk.bf16.mxu1 %vm6981_vm4, %v6170_v25 }
 0xd62   :  { %v3083_v18 = vpop.permute.xlu0 %3082  ;;  %v3198_v34 = vpop.permute.xlu1 %3197 }
 0xd63   :  { %6166 = vmatprep.subr.msk.bf16.mxu0 %vm6981_vm4, %v6164_v49 }
 0xd65   :  { %6169 = vmatpush3.bf16.xpose.msk.msra.mxu0 %vm6981_vm4, %v6164_v49 }
 0xd66   :  { %6184 = vmatprep.subr.msk.bf16.mxu0 %vm6981_vm4, %v6182_v43  ;;  %v3200_v39 = vpop.permute.xlu0 %3199  ;;  %v3085_v38 = vpop.permute.xlu1 %3084 }
 0xd67   :  { %5737 = vmatmul.mubr.msk.f32.vlgmr.msra.gmra.mrb[56].mxu1 %vm418_vm3, %v3081_v30 }
 0xd68   :  { %5739 = vmatprep.mubr.msk.f32.mxu1 %vm418_vm3, %v3083_v18  ;;  %6175 = vmatpush3.bf16.xpose.msk.msra.mxu1 %vm6981_vm4, %v6170_v25 }
 0xd6a   :  { %v6496_v11 = vpop.permute.xlu0 %6495  ;;  %v3315_v57 = vpop.permute.xlu1 %3314 }
 0xd6b   :  { %v6498_v13 = vunpack.i.h.bf16 %v6496_v11  ;;  %v6497_v21 = vunpack.i.l.bf16 %v6496_v11  ;;  %5740 = vmatmul.mubr.msk.f32.gmra.mrb[58].mxu1 %vm418_vm3, %v3085_v38 }
 0xd6c   :  { %5751 = vmatmul.mubr.msk.f32.vlgmr.msra.gmra.mrb[40].mxu0 %vm418_vm3, %v3198_v34 }
 0xd6d   :  { %v6176_v6 = vpack.c.bf16 %v6498_v13, %v6497_v21  ;;  %5753 = vmatprep.mubr.msk.f32.mxu0 %vm418_vm3, %v3200_v39  ;;  %6187 = vmatpush3.bf16.xpose.msk.msra.mxu0 %vm6981_vm4, %v6182_v43 }
 0xd6e   :  { %v3313_v45 = vpop.permute.xlu0 %3312  ;;  %v6501_v17 = vpop.permute.xlu1 %6500 }
 0xd6f   :  { %v6503_v61 = vunpack.i.h.bf16 %v6501_v17  ;;  %v6502_v40 = vunpack.i.l.bf16 %v6501_v17  ;;  %6178 = vmatprep.subr.msk.bf16.mxu1 %vm6981_vm4, %v6176_v6  ;;  %5764 = vmatprep.mubr.msk.f32.mxu1 %vm418_vm3, %v3313_v45 }
 0xd70   :  { %6181 = vmatpush3.bf16.xpose.msk.msra.mxu1 %vm6981_vm4, %v6176_v6 }
 0xd71   :  { %v6188_v0 = vpack.c.bf16 %v6503_v61, %v6502_v40  ;;  %6195 = vmatprep.subr.bf16.mxu1 %v7625_v29 }
 0xd72   :  { %v3430_v52 = vpop.permute.xlu0 %3429  ;;  %v3432_v16 = vpop.permute.xlu1 %3431 }
 0xd73   :  { %6190 = vmatprep.subr.msk.bf16.mxu0 %vm6981_vm4, %v6188_v0 }
 0xd75   :  { %6193 = vmatpush3.bf16.xpose.msk.msra.mxu0 %vm6981_vm4, %v6188_v0 }
 0xd76   :  { %v3317_v22 = vpop.permute.xlu0 %3316  ;;  %v3202_v1 = vpop.permute.xlu1 %3201 }
 0xd77   :  { %5754 = vmatmul.mubr.msk.f32.gmra.mrb[42].mxu0 %vm418_vm3, %v3202_v1  ;;  %5765 = vmatmul.mubr.msk.f32.vlgmr.msra.gmra.mrb[60].mxu1 %vm418_vm3, %v3315_v57 }
 0xd78   :  { %5767 = vmatprep.mubr.msk.f32.mxu1 %vm418_vm3, %v3317_v22  ;;  %5778 = vmatprep.mubr.msk.f32.mxu0 %vm418_vm3, %v3430_v52 }
 0xd79   :  { %6197 = vmatpush3.bf16.msra.mxu1 %v7625_v29 }
 0xd7a   :  { %6199 = vmatprep.subr.bf16.mxu1 %v7641_v46  ;;  %v3434_v2 = vpop.permute.xlu0 %3433  ;;  %v3319_v47 = vpop.permute.xlu1 %3318 }
 0xd7b   :  { %5768 = vmatmul.mubr.msk.f32.gmra.mrb[62].mxu1 %vm418_vm3, %v3319_v47 }
 0xd7c   :  { %5779 = vmatmul.mubr.msk.f32.vlgmr.msra.gmra.mrb[44].mxu0 %vm418_vm3, %v3432_v16 }
 0xd7d   :  { %5781 = vmatprep.mubr.msk.f32.mxu0 %vm418_vm3, %v3434_v2  ;;  %6201 = vmatpush3.bf16.msra.mxu1 %v7641_v46 }
 0xd7e   :  { %v3436_v63 = vpop.permute.xlu1 %3435 }
 0xd80   :  { %5782 = vmatmul.mubr.msk.f32.gmra.mrb[46].mxu0 %vm418_vm3, %v3436_v63 }
 0xd82   :  { %v6506_v54 = vpop.permute.xlu1 %6505 }
 0xd83   :  { %v6508_v12 = vunpack.i.h.bf16 %v6506_v54  ;;  %v6507_v55 = vunpack.i.l.bf16 %v6506_v54 }
 0xd85   :  { %v6202_v41 = vpack.c.bf16 %v6508_v12, %v6507_v55 }
 0xd87   :  { %6203 = vmatprep.subr.bf16.mxu0 %v6202_v41 }
 0xd88   :  { %6205 = vmatpush3.bf16.msra.mxu0 %v6202_v41 }
 0xdc1   :  { %v5682_v29 = vpop.f32.mrb[48].mxu1 }
 0xdc2   :  { %v2732_v15 = vpop.f32.mrb[49].mxu1 }
 0xdc5   :  { %v5685_v14 = vpop.f32.mrb[50].mxu1 }
 0xdc6   :  { %v2742_v24 = vpop.f32.mrb[51].mxu1 }
 0xe1e   :  { %v5696_v42 = vpop.f32.mrb[32].mxu0 }
 0xe1f   :  { %v2841_v3 = vpop.f32.mrb[33].mxu0 }
 0xe22   :  { %v5699_v28 = vpop.f32.mrb[34].mxu0 }
 0xe23   :  { %v2851_v51 = vpop.f32.mrb[35].mxu0 }
 0xe2a   :  { %v5710_v59 = vpop.f32.mrb[52].mxu1 }
 0xe2b   :  { %v2950_v10 = vpop.f32.mrb[53].mxu1 }
 0xe2e   :  { %v7847_v46 = vpop.f32.mrb[54].mxu1  ;;  %v7849_v19 = vpop.f32.mrb[36].mxu0 }
 0xe2f   :  { %v2960_v50 = vpop.f32.mrb[55].mxu1  ;;  %v7851_v30 = vpop.f32.mrb[37].mxu0 }
 0xe32   :  { %v7853_v31 = vpop.f32.mrb[38].mxu0 }
 0xe33   :  { %v7855_v32 = vpop.f32.mrb[39].mxu0 }
 0xe3a   :  { %v5738_v44 = vpop.f32.mrb[56].mxu1 }
 0xe3b   :  { %v3547_v60 = vsel %vm7166_vm5, %v5682_v29, %v5738_v44  ;;  %v3176_v25 = vpop.f32.mrb[57].mxu1 }
 0xe3c   :  { %v7859_v56 = vmul.f32 0.35355338, %v3547_v60  ;;  %v3546_v33 = vsel %vm7170_vm6, %v2732_v15, %v3176_v25 }
 0xe3d   :  { %v7863_v20 = vmul.f32 0.35355338, %v3546_v33 }
 0xe3e   :  { %v5741_v5 = vpop.f32.mrb[58].mxu1  ;;  %v3581_v49 = vsel %vm240_vm2, %v7859_v56, -inf }
 0xe3f   :  { %v3549_v18 = vsel %vm7180_vm7, %v5685_v14, %v5741_v5  ;;  %v5752_v34 = vpop.f32.mrb[40].mxu0  ;;  %3582 = vmax.xlane.f32.xlu1 %v3581_v49  ;;  %v3186_v43 = vpop.f32.mrb[59].mxu1  ;;  %v3578_v39 = vsel %vm240_vm2, %v7863_v20, -inf }
 0xe40   :  { %v7871_v38 = vmul.f32 0.35355338, %v3549_v18  ;;  %v3551_v11 = vsel %vm7166_vm5, %v5696_v42, %v5752_v34  ;;  %v3293_v57 = vpop.f32.mrb[41].mxu0  ;;  %v3548_v13 = vsel %vm7186_vm8, %v2742_v24, %v3186_v43  ;;  %3579 = vmax.xlane.f32.xlu0 %v3578_v39 }
 0xe41   :  { %v3550_v21 = vsel %vm7170_vm6, %v2841_v3, %v3293_v57  ;;  %v7879_v6 = vmul.f32 0.35355338, %v3548_v13  ;;  %v7883_v17 = vmul.f32 0.35355338, %v3551_v11 }
 0xe42   :  { %v3587_v45 = vsel %vm240_vm2, %v7871_v38, -inf  ;;  %v7901_v55 = vmul.f32 0.35355338, %v3550_v21 }
 0xe43   :  { %v3584_v61 = vsel %vm240_vm2, %v7879_v6, -inf  ;;  %v3593_v40 = vsel %vm240_vm2, %v7883_v17, -inf }
 0xe44   :  { %3588 = vmax.xlane.f32.xlu0 %v3587_v45  ;;  %3585 = vmax.xlane.f32.xlu1 %v3584_v61  ;;  %v3590_v44 = vsel %vm240_vm2, %v7901_v55, -inf }
 0xe48   :  { %3594 = vmax.xlane.f32.xlu0 %v3593_v40 }
 0xe4a   :  { %v5755_v0 = vpop.f32.mrb[42].mxu0  ;;  %v5766_v52 = vpop.f32.mrb[60].mxu1 }
 0xe4b   :  { %v3553_v16 = vsel %vm7180_vm7, %v5699_v28, %v5755_v0  ;;  %v3555_v22 = vsel %vm7166_vm5, %v5710_v59, %v5766_v52  ;;  %v3303_v1 = vpop.f32.mrb[43].mxu0  ;;  %v3410_v2 = vpop.f32.mrb[61].mxu1 }
 0xe4c   :  { %v7893_v47 = vmul.f32 0.35355338, %v3555_v22  ;;  %v3552_v63 = vsel %vm7186_vm8, %v2851_v51, %v3303_v1  ;;  %v3554_v54 = vsel %vm7170_vm6, %v2950_v10, %v3410_v2 }
 0xe4d   :  { %v7899_v12 = vmul.f32 0.35355338, %v3554_v54  ;;  %v7905_v15 = vmul.f32 0.35355338, %v3552_v63 }
 0xe4e   :  { %v5769_v41 = vpop.f32.mrb[62].mxu1  ;;  %v3605_v29 = vsel %vm240_vm2, %v7893_v47, -inf }
 0xe4f   :  { %v3557_v14 = vsel %vm7180_vm7, %v7847_v46, %v5769_v41  ;;  %v5780_v24 = vpop.f32.mrb[44].mxu0  ;;  %3606 = vmax.xlane.f32.xlu0 %v3605_v29  ;;  %v3420_v42 = vpop.f32.mrb[63].mxu1  ;;  %v3602_v3 = vsel %vm240_vm2, %v7899_v12, -inf  ;;  %v7920_v46 = vmul.f32 0.35355338, %v3553_v16  ;;  %v3596_v53 = vsel %vm240_vm2, %v7905_v15, -inf }
 0xe50   :  { %v3559_v28 = vsel %vm7166_vm5, %v7849_v19, %v5780_v24  ;;  %v3527_v51 = vpop.f32.mrb[45].mxu0  ;;  %v3556_v59 = vsel %vm7186_vm8, %v2960_v50, %v3420_v42  ;;  %3603 = vmax.xlane.f32.xlu1 %v3602_v3 }
 0xe51   :  { %v3558_v10 = vsel %vm7170_vm6, %v7851_v30, %v3527_v51  ;;  %v7924_v60 = vmul.f32 0.35355338, %v3556_v59  ;;  %v7934_v30 = vmul.f32 0.35355338, %v3557_v14  ;;  %v3599_v33 = vsel %vm240_vm2, %v7920_v46, -inf }
 0xe52   :  { %v7938_v5 = vmul.f32 0.35355338, %v3558_v10  ;;  %v7942_v7 = vmul.f32 0.35355338, %v3559_v28 }
 0xe53   :  { %v5783_v25 = vpop.f32.mrb[46].mxu0  ;;  %3591 = vmax.xlane.f32.xlu0 %v3590_v44  ;;  %v3608_v49 = vsel %vm240_vm2, %v7924_v60, -inf }
 0xe54   :  { %v3561_v19 = vsel %vm7180_vm7, %v7853_v31, %v5783_v25  ;;  %v3537_v50 = vpop.f32.mrb[47].mxu0  ;;  %3597 = vmax.xlane.f32.xlu1 %v3596_v53  ;;  %v3611_v31 = vsel %vm240_vm2, %v7934_v30, -inf  ;;  %v3614_v9 = vsel %vm240_vm2, %v7938_v5, -inf  ;;  %v3617_v18 = vsel %vm240_vm2, %v7942_v7, -inf }
 0xe55   :  { %v3560_v4 = vsel %vm7186_vm8, %v7855_v32, %v3537_v50  ;;  %v7948_v32 = vmul.f32 0.35355338, %v3561_v19 }
 0xe56   :  { %v7958_v43 = vmul.f32 0.35355338, %v3560_v4 }
 0xe57   :  { %3600 = vmax.xlane.f32.xlu0 %v3599_v33  ;;  %v3623_v34 = vsel %vm240_vm2, %v7948_v32, -inf }
 0xe58   :  { %3609 = vmax.xlane.f32.xlu1 %v3608_v49  ;;  %v3620_v39 = vsel %vm240_vm2, %v7958_v43, -inf }
 0xe5b   :  { %3612 = vmax.xlane.f32.xlu0 %v3611_v31 }
 0xe5c   :  { %3615 = vmax.xlane.f32.xlu1 %v3614_v9 }
 0xe5f   :  { %3618 = vmax.xlane.f32.xlu0 %v3617_v18 }
 0xe63   :  { %3624 = vmax.xlane.f32.xlu0 %v3623_v34 }
 0xe6d   :  { %6515 = vrot.lane.b32.xlu1 %v7623_v27, %s6748_s1 }
 0xe79   :  { %6510 = vrot.lane.b32.xlu0 %v7639_v62, %s6747_s16 }
 0xe91   :  { %3621 = vmax.xlane.f32.xlu1 %v3620_v39 }
 0xea2   :  { %6520 = vrot.lane.b32.xlu1 %v7623_v27, %s6749_s17 }
 0xecc   :  { %v3583_v11 = vpop.xlane.xlu1 %3582 }
 0xecd   :  { %v3627_v57 = vsub.f32 %v7859_v56, %v3583_v11  ;;  %v3580_v13 = vpop.xlane.xlu0 %3579 }
 0xece   :  { %v3626_v21 = vsub.f32 %v7863_v20, %v3580_v13 }
 0xecf   :  { %v3644_v45 = vmul.f32 1.442695, %v3627_v57 }
 0xed0   :  { %v3642_v61 = vmul.f32 1.442695, %v3626_v21 }
 0xed1   :  { %6634 = vpow2.f32 %v3644_v45  ;;  %v3589_v40 = vpop.xlane.xlu0 %3588  ;;  %v3586_v0 = vpop.xlane.xlu1 %3585 }
 0xed2   :  { %6636 = vpow2.f32 %v3642_v61  ;;  %v3629_v52 = vsub.f32 %v7871_v38, %v3589_v40  ;;  %v3628_v16 = vsub.f32 %v7879_v6, %v3586_v0 }
 0xed4   :  { %v3648_v22 = vmul.f32 1.442695, %v3629_v52  ;;  %v3646_v1 = vmul.f32 1.442695, %v3628_v16 }
 0xed5   :  { %v3595_v2 = vpop.xlane.xlu0 %3594 }
 0xed6   :  { %6638 = vpow2.f32 %v3648_v22  ;;  %v3631_v27 = vsub.f32 %v7883_v17, %v3595_v2 }
 0xed7   :  { %6640 = vpow2.f32 %v3646_v1 }
 0xed8   :  { %v3652_v56 = vmul.f32 1.442695, %v3631_v27 }
 0xeda   :  { %6642 = vpow2.f32 %v3652_v56 }
 0xedb   :  { %v7969_v20 = vpop.eup %6634 }
 0xedc   :  { %v7971_v63 = vpop.eup %6636  ;;  %v3607_v54 = vpop.xlane.xlu0 %3606  ;;  %v3677_v41 = vsel %vm240_vm2, %v7969_v20, 0.0 }
 0xedd   :  { %v3635_v38 = vsub.f32 %v7893_v47, %v3607_v54  ;;  %v3604_v6 = vpop.xlane.xlu1 %3603  ;;  %3678 = vadd.xlane.f32.xlu0 %v3677_v41  ;;  %v3674_v29 = vsel %vm240_vm2, %v7971_v63, 0.0 }
 0xede   :  { %3675 = vadd.xlane.f32.xlu1 %v3674_v29  ;;  %v3634_v14 = vsub.f32 %v7899_v12, %v3604_v6 }
 0xedf   :  { %v3660_v17 = vmul.f32 1.442695, %v3635_v38 }
 0xee0   :  { %v7979_v24 = vpop.eup %6638  ;;  %v3592_v42 = vpop.xlane.xlu0 %3591  ;;  %v3658_v10 = vmul.f32 1.442695, %v3634_v14 }
 0xee1   :  { %v7981_v3 = vpop.eup %6640  ;;  %6644 = vpow2.f32 %v3660_v17  ;;  %v3630_v28 = vsub.f32 %v7901_v55, %v3592_v42  ;;  %v3598_v51 = vpop.xlane.xlu1 %3597  ;;  %v3683_v47 = vsel %vm240_vm2, %v7979_v24, 0.0 }
 0xee2   :  { %3684 = vadd.xlane.f32.xlu0 %v3683_v47  ;;  %v3680_v59 = vsel %vm240_vm2, %v7981_v3, 0.0  ;;  %v3632_v25 = vsub.f32 %v7905_v15, %v3598_v51 }
 0xee3   :  { %v3650_v44 = vmul.f32 1.442695, %v3630_v28  ;;  %3681 = vadd.xlane.f32.xlu1 %v3680_v59 }
 0xee4   :  { %v7988_v12 = vpop.eup %6642  ;;  %v3601_v53 = vpop.xlane.xlu0 %3600  ;;  %v3654_v33 = vmul.f32 1.442695, %v3632_v25 }
 0xee5   :  { %6646 = vpow2.f32 %v3650_v44  ;;  %v3633_v19 = vsub.f32 %v7920_v46, %v3601_v53  ;;  %v3610_v55 = vpop.xlane.xlu1 %3609  ;;  %v3689_v50 = vsel %vm240_vm2, %v7988_v12, 0.0 }
 0xee6   :  { %3690 = vadd.xlane.f32.xlu0 %v3689_v50  ;;  %6648 = vpow2.f32 %v3658_v10  ;;  %v3636_v49 = vsub.f32 %v7924_v60, %v3610_v55 }
 0xee7   :  { %v3656_v4 = vmul.f32 1.442695, %v3633_v19 }
 0xee8   :  { %v3613_v31 = vpop.xlane.xlu0 %3612  ;;  %v3662_v46 = vmul.f32 1.442695, %v3636_v49 }
 0xee9   :  { %6650 = vpow2.f32 %v3656_v4  ;;  %v3637_v9 = vsub.f32 %v7934_v30, %v3613_v31  ;;  %v3616_v18 = vpop.xlane.xlu1 %3615 }
 0xeea   :  { %6652 = vpow2.f32 %v3654_v33  ;;  %v3638_v39 = vsub.f32 %v7938_v5, %v3616_v18 }
 0xeeb   :  { %v7996_v15 = vpop.eup %6644  ;;  %v3664_v34 = vmul.f32 1.442695, %v3637_v9 }
 0xeec   :  { %v3619_v11 = vpop.xlane.xlu0 %3618  ;;  %v3701_v57 = vsel %vm240_vm2, %v7996_v15, 0.0  ;;  %v3666_v40 = vmul.f32 1.442695, %v3638_v39 }
 0xeed   :  { %6654 = vpow2.f32 %v3664_v34  ;;  %v3639_v13 = vsub.f32 %v7942_v7, %v3619_v11  ;;  %3702 = vadd.xlane.f32.xlu0 %v3701_v57  ;;  %v6516_v60 = vpop.permute.xlu1 %6515 }
 0xeee   :  { %v6518_v21 = vunpack.i.h.bf16 %v6516_v60  ;;  %v6517_v45 = vunpack.i.l.bf16 %v6516_v60  ;;  %6656 = vpow2.f32 %v3662_v46 }
 0xeef   :  { %v8002_v30 = vpop.eup %6646  ;;  %v3668_v61 = vmul.f32 1.442695, %v3639_v13 }
 0xef0   :  { %v8004_v0 = vpack.c.bf16 %v6518_v21, %v6517_v45  ;;  %v3625_v52 = vpop.xlane.xlu0 %3624  ;;  %v3686_v5 = vsel %vm240_vm2, %v8002_v30, 0.0  ;;  %v8008_v16 = vpop.eup %6648 }
 0xef1   :  { %6658 = vpow2.f32 %v3668_v61  ;;  %v3641_v7 = vsub.f32 %v7948_v32, %v3625_v52  ;;  %3687 = vadd.xlane.f32.xlu1 %v3686_v5  ;;  %v3698_v56 = vsel %vm240_vm2, %v8008_v16, 0.0 }
 0xef2   :  { %6211 = vmatprep.subr.bf16.mxu1 %v8004_v0  ;;  %6660 = vpow2.f32 %v3666_v40 }
 0xef3   :  { %v8012_v22 = vpop.eup %6650  ;;  %v3672_v1 = vmul.f32 1.442695, %v3641_v7 }
 0xef4   :  { %v6511_v2 = vpop.permute.xlu0 %6510  ;;  %v3695_v27 = vsel %vm240_vm2, %v8012_v22, 0.0  ;;  %v8018_v32 = vpop.eup %6652 }
 0xef5   :  { %6662 = vpow2.f32 %v3672_v1  ;;  %v6513_v54 = vunpack.i.h.bf16 %v6511_v2  ;;  %v6512_v41 = vunpack.i.l.bf16 %v6511_v2  ;;  %3696 = vadd.xlane.f32.xlu0 %v3695_v27  ;;  %3699 = vadd.xlane.f32.xlu1 %v3698_v56  ;;  %v3692_v17 = vsel %vm240_vm2, %v8018_v32, 0.0 }
 0xef7   :  { %v8020_v38 = vpop.eup %6654  ;;  %v6206_v6 = vpack.c.bf16 %v6513_v54, %v6512_v41 }
 0xef8   :  { %v3707_v29 = vsel %vm240_vm2, %v8020_v38, 0.0  ;;  %v8026_v14 = vpop.eup %6656 }
 0xef9   :  { %3708 = vadd.xlane.f32.xlu0 %v3707_v29  ;;  %6207 = vmatprep.subr.bf16.mxu0 %v6206_v6  ;;  %v3704_v51 = vsel %vm240_vm2, %v8026_v14, 0.0 }
 0xefa   :  { %3693 = vadd.xlane.f32.xlu1 %v3692_v17  ;;  %6209 = vmatpush3.bf16.msra.mxu0 %v6206_v6 }
 0xefb   :  { %v8028_v42 = vpop.eup %6658 }
 0xefc   :  { %v3713_v28 = vsel %vm240_vm2, %v8028_v42, 0.0  ;;  %v8034_v47 = vpop.eup %6660 }
 0xefd   :  { %3714 = vadd.xlane.f32.xlu0 %v3713_v28  ;;  %v3710_v44 = vsel %vm240_vm2, %v8034_v47, 0.0 }
 0xefe   :  { %3705 = vadd.xlane.f32.xlu1 %v3704_v51 }
 0xeff   :  { %v8036_v59 = vpop.eup %6662 }
 0xf00   :  { %v3719_v10 = vsel %vm240_vm2, %v8036_v59, 0.0 }
 0xf01   :  { %3720 = vadd.xlane.f32.xlu0 %v3719_v10 }
 0xf02   :  { %3711 = vadd.xlane.f32.xlu1 %v3710_v44 }
 0xf17   :  { %6525 = vrot.lane.b32.xlu0 %v7639_v62, %s6748_s1 }
 0xf1e   :  { %v3622_v25 = vpop.xlane.xlu1 %3621 }
 0xf1f   :  { %v3640_v53 = vsub.f32 %v7958_v43, %v3622_v25 }
 0xf21   :  { %v3670_v19 = vmul.f32 1.442695, %v3640_v53 }
 0xf22   :  { %v6521_v55 = vpop.permute.xlu1 %6520 }
 0xf23   :  { %6664 = vpow2.f32 %v3670_v19  ;;  %v6523_v50 = vunpack.i.h.bf16 %v6521_v55  ;;  %v6522_v4 = vunpack.i.l.bf16 %v6521_v55 }
 0xf25   :  { %v6218_v33 = vpack.c.bf16 %v6523_v50, %v6522_v4 }
 0xf27   :  { %6219 = vmatprep.subr.bf16.mxu0 %v6218_v33 }
 0xf2d   :  { %v8045_v49 = vpop.eup %6664 }
 0xf2e   :  { %v3716_v31 = vsel %vm240_vm2, %v8045_v49, 0.0 }
 0xf2f   :  { %3717 = vadd.xlane.f32.xlu1 %v3716_v31 }
 0xf40   :  { %6530 = vrot.lane.b32.xlu1 %v7639_v62, %s6749_s17 }
 0xf6a   :  { %v3679_v9 = vpop.xlane.xlu0 %3678 }
 0xf6b   :  { %6666 = vrcp.f32 %v3679_v9  ;;  %v3676_v18 = vpop.xlane.xlu1 %3675 }
 0xf6c   :  { %6668 = vrcp.f32 %v3676_v18 }
 0xf6f   :  { %v3685_v43 = vpop.xlane.xlu0 %3684 }
 0xf70   :  { %6670 = vrcp.f32 %v3685_v43  ;;  %v3682_v34 = vpop.xlane.xlu1 %3681 }
 0xf71   :  { %6672 = vrcp.f32 %v3682_v34  ;;  %v6718_v34 = vld [vmem:[%s8335_s3 + $0x68] sm:$0xff] }
 0xf73   :  { %v3691_v60 = vpop.xlane.xlu0 %3690 }
 0xf74   :  { %6674 = vrcp.f32 %v3691_v60 }
 0xf75   :  { %v6667_v46 = vpop.eup %6666 }
 0xf76   :  { %v6669_v39 = vpop.eup %6668  ;;  %v3739_v57 = vmul.f32 %v6667_v46, %v7969_v20  ;;  %v6719_v46 = vld [vmem:[%s8335_s3 + $0x78] sm:$0xff] }
 0xf77   :  { %v3738_v11 = vmul.f32 %v6669_v39, %v7971_v63 }
 0xf79   :  { %5792 = vmatprep.mubr.msk.f32.mxu1 %vm240_vm2, %v3738_v11 }
 0xf7a   :  { %v6671_v13 = vpop.eup %6670  ;;  %5793 = vmatmul.mubr.msk.f32.vlgmr.msra.gmra.mrb[64].mxu1 %vm240_vm2, %v3739_v57  ;;  %v3703_v61 = vpop.xlane.xlu0 %3702 }
 0xf7b   :  { %v6673_v62 = vpop.eup %6672  ;;  %6213 = vmatpush3.bf16.msra.mxu1 %v8004_v0  ;;  %v3741_v21 = vmul.f32 %v6671_v13, %v7979_v24 }
 0xf7c   :  { %v3740_v45 = vmul.f32 %v6673_v62, %v7981_v3 }
 0xf7e   :  { %5795 = vmatprep.mubr.msk.f32.mxu1 %vm240_vm2, %v3740_v45  ;;  %v3688_v63 = vpop.xlane.xlu1 %3687  ;;  %v6675_v7 = vpop.eup %6674 }
 0xf7f   :  { %5796 = vmatmul.mubr.msk.f32.gmra.mrb[66].mxu1 %vm240_vm2, %v3741_v21  ;;  %6676 = vrcp.f32 %v3688_v63  ;;  %v3743_v1 = vmul.f32 %v6675_v7, %v7988_v12 }
 0xf82   :  { %v3697_v20 = vpop.xlane.xlu0 %3696  ;;  %v3700_v40 = vpop.xlane.xlu1 %3699 }
 0xf83   :  { %6678 = vrcp.f32 %v3700_v40 }
 0xf84   :  { %6680 = vrcp.f32 %v3697_v20 }
 0xf86   :  { %v3709_v52 = vpop.xlane.xlu0 %3708 }
 0xf87   :  { %v3694_v5 = vpop.xlane.xlu1 %3693 }
 0xf88   :  { %6682 = vrcp.f32 %v3694_v5 }
 0xf89   :  { %v6677_v0 = vpop.eup %6676  ;;  %6684 = vrcp.f32 %v3703_v61 }
 0xf8a   :  { %v3715_v24 = vpop.xlane.xlu0 %3714  ;;  %v3742_v3 = vmul.f32 %v6677_v0, %v8002_v30 }
 0xf8b   :  { %v3706_v2 = vpop.xlane.xlu1 %3705 }
 0xf8c   :  { %5806 = vmatprep.mubr.msk.f32.mxu0 %vm240_vm2, %v3742_v3  ;;  %6686 = vrcp.f32 %v3706_v2 }
 0xf8d   :  { %5807 = vmatmul.mubr.msk.f32.vlgmr.msra.gmra.mrb[48].mxu0 %vm240_vm2, %v3743_v1  ;;  %v6679_v27 = vpop.eup %6678  ;;  %6688 = vrcp.f32 %v3709_v52 }
 0xf8e   :  { %6221 = vmatpush3.bf16.msra.mxu0 %v6218_v33  ;;  %v3721_v56 = vpop.xlane.xlu0 %3720  ;;  %v3746_v41 = vmul.f32 %v6679_v27, %v8008_v16  ;;  %v6681_v6 = vpop.eup %6680 }
 0xf8f   :  { %v3712_v54 = vpop.xlane.xlu1 %3711  ;;  %v3745_v51 = vmul.f32 %v6681_v6, %v8012_v22 }
 0xf90   :  { %6690 = vrcp.f32 %v3712_v54  ;;  %5820 = vmatprep.mubr.msk.f32.mxu1 %vm240_vm2, %v3746_v41 }
 0xf91   :  { %6692 = vrcp.f32 %v3715_v24 }
 0xf92   :  { %v6683_v30 = vpop.eup %6682  ;;  %v6526_v12 = vpop.permute.xlu0 %6525 }
 0xf93   :  { %v6528_v29 = vunpack.i.h.bf16 %v6526_v12  ;;  %v6527_v17 = vunpack.i.l.bf16 %v6526_v12  ;;  %v3744_v28 = vmul.f32 %v6683_v30, %v8018_v32  ;;  %v6685_v44 = vpop.eup %6684 }
 0xf94   :  { %v3747_v53 = vmul.f32 %v6685_v44, %v7996_v15 }
 0xf95   :  { %v6214_v10 = vpack.c.bf16 %v6528_v29, %v6527_v17  ;;  %5809 = vmatprep.mubr.msk.f32.mxu0 %vm240_vm2, %v3744_v28 }
 0xf96   :  { %5810 = vmatmul.mubr.msk.f32.gmra.mrb[50].mxu0 %vm240_vm2, %v3745_v51  ;;  %v6687_v25 = vpop.eup %6686 }
 0xf97   :  { %6215 = vmatprep.subr.bf16.mxu1 %v6214_v10  ;;  %v6689_v16 = vpop.eup %6688  ;;  %v3748_v55 = vmul.f32 %v6687_v25, %v8026_v14 }
 0xf98   :  { %6217 = vmatpush3.bf16.msra.mxu1 %v6214_v10  ;;  %v3749_v22 = vmul.f32 %v6689_v16, %v8020_v38 }
 0xf9a   :  { %v6691_v19 = vpop.eup %6690 }
 0xf9b   :  { %5821 = vmatmul.mubr.msk.f32.vlgmr.msra.gmra.mrb[68].mxu1 %vm240_vm2, %v3747_v53  ;;  %v3750_v32 = vmul.f32 %v6691_v19, %v8034_v47  ;;  %v6693_v31 = vpop.eup %6692 }
 0xf9c   :  { %5823 = vmatprep.mubr.msk.f32.mxu1 %vm240_vm2, %v3748_v55  ;;  %v3751_v9 = vmul.f32 %v6693_v31, %v8028_v42  ;;  %v8090_v42 = vpack.i.bf16 %v6719_v46, %v6718_v34 }
 0xf9d   :  { %5834 = vmatprep.mubr.msk.f32.mxu0 %vm240_vm2, %v3750_v32 }
 0xf9e   :  { %6540 = vrot.lane.b32.xlu1 %v8090_v42, %s6750_s18 }
 0xf9f   :  { %5824 = vmatmul.mubr.msk.f32.gmra.mrb[70].mxu1 %vm240_vm2, %v3749_v22 }
 0xfbc   :  { %v3718_v50 = vpop.xlane.xlu1 %3717 }
 0xfbd   :  { %6694 = vrcp.f32 %v3718_v50 }
 0xfbe   :  { %6696 = vrcp.f32 %v3721_v56 }
 0xfc0   :  { %v6531_v15 = vpop.permute.xlu1 %6530 }
 0xfc1   :  { %v6533_v4 = vunpack.i.h.bf16 %v6531_v15  ;;  %v6532_v33 = vunpack.i.l.bf16 %v6531_v15 }
 0xfc3   :  { %v6222_v14 = vpack.c.bf16 %v6533_v4, %v6532_v33 }
 0xfc5   :  { %6223 = vmatprep.subr.bf16.mxu0 %v6222_v14 }
 0xfc6   :  { %6225 = vmatpush3.bf16.msra.mxu0 %v6222_v14 }
 0xfc7   :  { %v6695_v47 = vpop.eup %6694 }
 0xfc8   :  { %v6697_v18 = vpop.eup %6696  ;;  %v3752_v43 = vmul.f32 %v6695_v47, %v8045_v49  ;;  %v6720_v49 = vld [vmem:[%s8335_s3 + $0x48] sm:$0xff] }
 0xfc9   :  { %5835 = vmatmul.mubr.msk.f32.vlgmr.msra.gmra.mrb[52].mxu0 %vm240_vm2, %v3751_v9  ;;  %v3753_v38 = vmul.f32 %v6697_v18, %v8036_v59  ;;  %v6721_v59 = vld [vmem:[%s8335_s3 + $0x58] sm:$0xff]  ;;  %s6756_s3 = smov [#allocation2]  }
 0xfca   :  { %5837 = vmatprep.mubr.msk.f32.mxu0 %vm240_vm2, %v3752_v43  ;;  %v8098_v39 = vpack.i.bf16 %v6721_v59, %v6720_v49 }
 0xfcc   :  { %6535 = vrot.lane.b32.xlu0 %v8098_v39, %s6750_s18 }
 0xfcd   :  { %5838 = vmatmul.mubr.msk.f32.gmra.mrb[54].mxu0 %vm240_vm2, %v3753_v38 }
0x1010   :  { %v6541_v11 = vpop.permute.xlu1 %6540 }
0x1011   :  { %v6543_v13 = vunpack.i.h.bf16 %v6541_v11  ;;  %v6542_v60 = vunpack.i.l.bf16 %v6541_v11 }
0x1013   :  { %v6230_v45 = vpack.c.bf16 %v6543_v13, %v6542_v60 }
0x103e   :  { %v6536_v57 = vpop.permute.xlu0 %6535 }
0x103f   :  { %v6538_v62 = vunpack.i.h.bf16 %v6536_v57  ;;  %v6537_v21 = vunpack.i.l.bf16 %v6536_v57 }
0x1041   :  { %v6226_v61 = vpack.c.bf16 %v6538_v62, %v6537_v21 }
0x1043   :  { %6227 = vmatprep.subr.bf16.mxu1 %v6226_v61 }
0x1044   :  { %6229 = vmatpush3.bf16.msra.mxu1 %v6226_v61 }
0x1045   :  { %6231 = vmatprep.subr.bf16.mxu1 %v6230_v45 }
0x1048   :  { %6233 = vmatpush3.bf16.msra.mxu1 %v6230_v45 }
0x104d   :  { %v5794_v63 = vpop.f32.mrb[64].mxu1 }
0x104e   :  { %v3832_v20 = vpop.f32.mrb[65].mxu1 }
0x1052   :  { %v5797_v40 = vpop.f32.mrb[66].mxu1 }
0x1053   :  { %v3842_v52 = vpop.f32.mrb[67].mxu1 }
0x1060   :  { %v5808_v5 = vpop.f32.mrb[48].mxu0 }
0x1061   :  { %4148 = vrot.lane.b32.xlu1 %v5808_v5, %s6753_s28  ;;  %v3929_v7 = vpop.f32.mrb[49].mxu0 }
0x1062   :  { %4146 = vrot.lane.b32.xlu0 %v3929_v7, %s6753_s28 }
0x1069   :  { %v5811_v0 = vpop.f32.mrb[50].mxu0 }
0x106a   :  { %v3939_v24 = vpop.f32.mrb[51].mxu0 }
0x106e   :  { %v5822_v3 = vpop.f32.mrb[68].mxu1 }
0x106f   :  { %4164 = vrot.lane.b32.xlu1 %v5822_v3, %s6754_s29  ;;  %v4026_v1 = vpop.f32.mrb[69].mxu1 }
0x1070   :  { %4162 = vrot.lane.b32.xlu0 %v4026_v1, %s6754_s29 }
0x1072   :  { %v5825_v2 = vpop.f32.mrb[70].mxu1 }
0x1073   :  { %4152 = vrot.lane.b32.xlu1 %v5811_v0, %s6753_s28  ;;  %v4036_v27 = vpop.f32.mrb[71].mxu1 }
0x1074   :  { %4150 = vrot.lane.b32.xlu0 %v3939_v24, %s6753_s28 }
0x1077   :  { %4168 = vrot.lane.b32.xlu1 %v5825_v2, %s6754_s29 }
0x1078   :  { %4166 = vrot.lane.b32.xlu0 %v4036_v27, %s6754_s29  ;;  %s4941_s29 = sshll.u32 %s6756_s3, 4  ;;  %s4942_s29 = int_to_ptr.vmem [resolvable:$true] %s4941_s29 }
0x1079   :  { %p6727_p1 = scmp.lt.s32.totalorder %s4942_s29, %s4942_s29 }
0x109c   :  { %v5836_v56 = vpop.f32.mrb[52].mxu0 }
0x109d   :  { %v4123_v54 = vpop.f32.mrb[53].mxu0  ;;  %4180 = vrot.lane.b32.xlu1 %v5836_v56, %s6755_s2 }
0x109e   :  { %4178 = vrot.lane.b32.xlu0 %v4123_v54, %s6755_s2 }
0x10a0   :  { %v5839_v41 = vpop.f32.mrb[54].mxu0 }
0x10a1   :  { %v4133_v6 = vpop.f32.mrb[55].mxu0  ;;  %4184 = vrot.lane.b32.xlu1 %v5839_v41, %s6755_s2 }
0x10a2   :  { %4182 = vrot.lane.b32.xlu0 %v4133_v6, %s6755_s2  ;;  %s6722_s2 = scalar_lea.vmem %s4942_s29, 512 }
0x10a3   :  { %p6723_p0 = scmp.ne.s32.totalorder %s4942_s29, %s6722_s2  ;;  %p6728_p2 = scmp.lt.s32.totalorder %s6722_s2, %s6722_s2 }
0x10a5   :  { %p6729_p3 = por %p6728_p2, %p6727_p1 }
0x10a7   :  { %p6730_p4 = pnand %p6729_p3, %p6723_p0 }
0x10d3   :  { %v4149_v30 = vpop.permute.xlu1 %4148 }
0x10d4   :  { %v4147_v12 = vpop.permute.xlu0 %4146  ;;  %v4191_v53 = vsel %vm418_vm3, %v5794_v63, %v4149_v30 }
0x10d5   :  { %v4190_v25 = vsel %vm418_vm3, %v3832_v20, %v4147_v12  ;;  %v8161_v12 = vld [vmem:[%s8337_s5 + $0x4] sm:$0xf] }
0x10e1   :  { %v4165_v29 = vpop.permute.xlu1 %4164 }
0x10e2   :  { %v4163_v17 = vpop.permute.xlu0 %4162  ;;  %v4195_v32 = vsel %vm1963_vm9, %v4191_v53, %v4165_v29  ;;  %v4374_v29 = vrot.slane %v8161_v12, %v7495_v58 }
0x10e3   :  { %v4194_v19 = vsel %vm1963_vm9, %v4190_v25, %v4163_v17  ;;  %v5158_v17 = vld [vmem:[%s8336_s4 + $0x40] sm:$0xff] }
0x10e5   :  { %v4153_v28 = vpop.permute.xlu1 %4152 }
0x10e6   :  { %v4151_v51 = vpop.permute.xlu0 %4150  ;;  %v4193_v33 = vsel %vm418_vm3, %v5797_v40, %v4153_v28  ;;  %v5159_v28 = vld [vmem:[%s8336_s4 + $0x48] sm:$0xff] }
0x10e7   :  { %v4192_v15 = vsel %vm418_vm3, %v3842_v52, %v4151_v51  ;;  %v5160_v51 = vld [vmem:[%s8336_s4 + $0x50] sm:$0xff] }
0x10e9   :  { %v4169_v10 = vpop.permute.xlu1 %4168 }
0x10ea   :  { %v4167_v44 = vpop.permute.xlu0 %4166  ;;  %v4197_v47 = vsel %vm1963_vm9, %v4193_v33, %v4169_v10  ;;  %v6242_v10 = vpack.c.bf16 %v5159_v28, %v5158_v17  ;;  %v4617_v17 = vrot.slane %v8161_v12, %v7550_v35 }
0x10eb   :  { %v4196_v14 = vsel %vm1963_vm9, %v4192_v15, %v4167_v44  ;;  %v5161_v44 = vld [vmem:[%s8336_s4 + $0x58] sm:$0xff] }
0x10ec   :  { %v6246_v25 = vpack.c.bf16 %v5161_v44, %v5160_v51  ;;  %6243 = vmatprep.subr.bf16.mxu1 %v6242_v10 }
0x110f   :  { %v4181_v16 = vpop.permute.xlu1 %4180 }
0x1110   :  { %v4179_v55 = vpop.permute.xlu0 %4178  ;;  %v4199_v50 = vsel %vm1968_vm10, %v4195_v32, %v4181_v16  ;;  %v5163_v16 = vld [vmem:[%s8336_s4 + $0x68] sm:$0xff] }
0x1111   :  { %v4198_v22 = vsel %vm1968_vm10, %v4194_v19, %v4179_v55 }
0x1112   :  { %5848 = vmatprep.mubr.msk.f32.mxu1 %vm240_vm2, %v4198_v22 }
0x1113   :  { %v4185_v4 = vpop.permute.xlu1 %4184  ;;  %5849 = vmatmul.mubr.msk.f32.vlgmr.msra.gmra.mrb[72].mxu1 %vm240_vm2, %v4199_v50 }
0x1114   :  { %v4183_v31 = vpop.permute.xlu0 %4182  ;;  %v4201_v18 = vsel %vm1968_vm10, %v4197_v47, %v4185_v4  ;;  %6245 = vmatpush3.bf16.msra.mxu1 %v6242_v10 }
0x1115   :  { %v4200_v9 = vsel %vm1968_vm10, %v4196_v14, %v4183_v31  ;;  %6247 = vmatprep.subr.bf16.mxu1 %v6246_v25 }
0x1116   :  { %5851 = vmatprep.mubr.msk.f32.mxu1 %vm240_vm2, %v4200_v9 }
0x1117   :  { %5852 = vmatmul.mubr.msk.f32.gmra.mrb[74].mxu1 %vm240_vm2, %v4201_v18 }
0x1118   :  { %6249 = vmatpush3.bf16.msra.mxu1 %v6246_v25 }
0x11e6   :  { %v5850_v43 = vpop.f32.mrb[72].mxu1 }
0x11e7   :  { %v4316_v38 = vadd.f32 %v5850_v43, %v7597_v37  ;;  %v4296_v34 = vpop.f32.mrb[73].mxu1 }
0x11e8   :  { %v4315_v46 = vadd.f32 %v4296_v34, %v7592_v23 }
0x11e9   :  { %v4322_v49 = vsel %vm240_vm2, %v4316_v38, 0.0 }
0x11ea   :  { %4323 = vadd.xlane.f32.xlu1 %v4322_v49  ;;  %v5853_v59 = vpop.f32.mrb[74].mxu1  ;;  %v4319_v11 = vsel %vm240_vm2, %v4315_v46, 0.0 }
0x11eb   :  { %4320 = vadd.xlane.f32.xlu0 %v4319_v11  ;;  %v4306_v57 = vpop.f32.mrb[75].mxu1  ;;  %v4318_v60 = vadd.f32 %v5853_v59, %v7607_v26 }
0x11ec   :  { %v4317_v13 = vadd.f32 %v4306_v57, %v7602_v8 }
0x11ed   :  { %v4328_v37 = vsel %vm240_vm2, %v4318_v60, 0.0 }
0x11ee   :  { %v4325_v62 = vsel %vm240_vm2, %v4317_v13, 0.0 }
0x11ef   :  { %4326 = vadd.xlane.f32.xlu0 %v4325_v62 }
0x11f3   :  { %4329 = vadd.xlane.f32.xlu0 %v4328_v37 }
0x11fb   :  { %6545 = vrot.lane.b32.xlu1 %v8098_v39, %s6752_s20 }
0x1277   :  { %v4324_v23 = vpop.xlane.xlu1 %4323 }
0x1278   :  { %v4332_v21 = vmul.f32 0.03125, %v4324_v23  ;;  %v4321_v45 = vpop.xlane.xlu0 %4320 }
0x1279   :  { %v4331_v61 = vmul.f32 0.03125, %v4321_v45 }
0x127a   :  { %v8142_v63 = vsub.f32 %v4316_v38, %v4332_v21 }
0x127b   :  { %v8144_v20 = vsub.f32 %v4315_v46, %v4331_v61  ;;  %v6546_v8 = vpop.permute.xlu1 %6545 }
0x127c   :  { %v4327_v40 = vpop.xlane.xlu0 %4326  ;;  %v4340_v26 = vmul.f32 %v8142_v63, %v8142_v63  ;;  %v6548_v52 = vunpack.i.h.bf16 %v6546_v8  ;;  %v6547_v5 = vunpack.i.l.bf16 %v6546_v8 }
0x127d   :  { %v4333_v7 = vmul.f32 0.03125, %v4327_v40  ;;  %v4339_v0 = vmul.f32 %v8144_v20, %v8144_v20 }
0x127e   :  { %v4346_v39 = vsel %vm240_vm2, %v4340_v26, 0.0  ;;  %v6234_v24 = vpack.c.bf16 %v6548_v52, %v6547_v5  ;;  %v5164_v26 = vld [vmem:[%s8336_s4 + $0x70] sm:$0xff]  ;;  %v5165_v52 = vld [vmem:[%s8336_s4 + $0x78] sm:$0xff] }
0x127f   :  { %v8151_v3 = vsub.f32 %v4317_v13, %v4333_v7  ;;  %4347 = vadd.xlane.f32.xlu0 %v4346_v39  ;;  %v4343_v1 = vsel %vm240_vm2, %v4339_v0, 0.0  ;;  %v6254_v5 = vpack.c.bf16 %v5165_v52, %v5164_v26  ;;  %v4390_v7 = vrot.slane %v8161_v12, %v7541_v48 }
0x1280   :  { %4344 = vadd.xlane.f32.xlu1 %v4343_v1  ;;  %v4330_v2 = vpop.xlane.xlu0 %4329  ;;  %6235 = vmatprep.subr.bf16.mxu0 %v6234_v24 }
0x1281   :  { %v4334_v27 = vmul.f32 0.03125, %v4330_v2  ;;  %v4341_v56 = vmul.f32 %v8151_v3, %v8151_v3  ;;  %6237 = vmatpush3.bf16.msra.mxu0 %v6234_v24 }
0x1283   :  { %v4338_v54 = vsub.f32 %v4318_v60, %v4334_v27  ;;  %v4349_v41 = vsel %vm240_vm2, %v4341_v56, 0.0 }
0x1284   :  { %4350 = vadd.xlane.f32.xlu1 %v4349_v41 }
0x1285   :  { %v4342_v6 = vmul.f32 %v4338_v54, %v4338_v54 }
0x1287   :  { %v4352_v30 = vsel %vm240_vm2, %v4342_v6, 0.0 }
0x1288   :  { %4353 = vadd.xlane.f32.xlu0 %v4352_v30 }
0x1295   :  { %4380 = vrot.lane.b32.xlu1 %v4374_v29, %s6750_s18 }
0x129e   :  { %6550 = vrot.lane.b32.xlu0 %v8090_v42, %s6752_s20  ;;  %v5162_v42 = vld [vmem:[%s8336_s4 + $0x60] sm:$0xff] }
0x129f   :  { %v6250_v53 = vpack.c.bf16 %v5163_v16, %v5162_v42 }
0x12a1   :  { %6251 = vmatprep.subr.bf16.mxu1 %v6250_v53 }
0x12a2   :  { %6253 = vmatpush3.bf16.msra.mxu1 %v6250_v53 }
0x12a3   :  { %6255 = vmatprep.subr.bf16.mxu1 %v6254_v5 }
0x12a6   :  { %6257 = vmatpush3.bf16.msra.mxu1 %v6254_v5 }
0x130c   :  { %v4348_v19 = vpop.xlane.xlu0 %4347 }
0x130d   :  { %v4356_v55 = vmul.f32 0.03125, %v4348_v19  ;;  %v4345_v32 = vpop.xlane.xlu1 %4344 }
0x130e   :  { %v4355_v22 = vmul.f32 0.03125, %v4345_v32  ;;  %v4694_v32 = vld [vmem:[%s8341_s9] sm:$0xf] }
0x130f   :  { %v4360_v50 = vadd.f32 1e-05, %v4356_v55 }
0x1310   :  { %v4359_v15 = vadd.f32 1e-05, %v4355_v22  ;;  %v4698_v22 = vrot.slane %v4694_v32, %v7541_v48 }
0x1311   :  { %6698 = vrsqrt.f32 %v4360_v50  ;;  %v4351_v4 = vpop.xlane.xlu1 %4350  ;;  %v4716_v50 = vrot.slane %v4694_v32, %v7563_v36 }
0x1312   :  { %6700 = vrsqrt.f32 %v4359_v15  ;;  %v4357_v33 = vmul.f32 0.03125, %v4351_v4  ;;  %v4725_v15 = vrot.slane %v4694_v32, %v7550_v35  ;;  %v4739_v35 = vld [vmem:[%s8338_s6] sm:$0xff] }
0x1314   :  { %v4361_v14 = vadd.f32 1e-05, %v4357_v33 }
0x1315   :  { %v4354_v31 = vpop.xlane.xlu0 %4353  ;;  %v4381_v57 = vpop.permute.xlu1 %4380 }
0x1316   :  { %6702 = vrsqrt.f32 %v4361_v14  ;;  %v4358_v47 = vmul.f32 0.03125, %v4354_v31 }
0x1318   :  { %v4362_v9 = vadd.f32 1e-05, %v4358_v47 }
0x1319   :  { %v6551_v18 = vpop.permute.xlu0 %6550 }
0x131a   :  { %6704 = vrsqrt.f32 %v4362_v9  ;;  %v6553_v43 = vunpack.i.h.bf16 %v6551_v18  ;;  %v6552_v38 = vunpack.i.l.bf16 %v6551_v18 }
0x131b   :  { %v6699_v34 = vpop.eup %6698 }
0x131c   :  { %v6701_v46 = vpop.eup %6700  ;;  %v6238_v49 = vpack.c.bf16 %v6553_v43, %v6552_v38  ;;  %v4368_v59 = vmul.f32 %v6699_v34, %v8142_v63  ;;  %v8225_v43 = vrot.slane %v8161_v12, %v7563_v36  ;;  %v4740_v38 = vld [vmem:[%s8338_s6 + $0x8] sm:$0xff]  ;;  %v4741_v36 = vld [vmem:[%s8338_s6 + $0x10] sm:$0xff]  ;;  %v4742_v12 = vld [vmem:[%s8338_s6 + $0x18] sm:$0xff] }
0x131d   :  { %v4367_v11 = vmul.f32 %v6701_v46, %v8144_v20  ;;  %v6258_v34 = vpack.c.bf16 %v4740_v38, %v4739_v35  ;;  %v4707_v46 = vrot.slane %v4694_v32, %v7495_v58 }
0x131e   :  { %v4376_v13 = vmul.f32 %v4374_v29, %v4368_v59  ;;  %6239 = vmatprep.subr.bf16.mxu0 %v6238_v49 }
0x131f   :  { %v4375_v60 = vmul.f32 %v4374_v29, %v4367_v11  ;;  %6241 = vmatpush3.bf16.msra.mxu0 %v6238_v49  ;;  %v6262_v49 = vpack.c.bf16 %v4742_v12, %v4741_v36  ;;  %v4743_v11 = vld [vmem:[%s8338_s6 + $0x20] sm:$0xff] }
0x1320   :  { %v6703_v62 = vpop.eup %6702  ;;  %v4384_v21 = vadd.f32 %v4381_v57, %v4376_v13  ;;  %6259 = vmatprep.subr.bf16.mxu0 %v6258_v34 }
0x1321   :  { %v4369_v37 = vmul.f32 %v6703_v62, %v8151_v3  ;;  %v4383_v23 = vadd.f32 %v4381_v57, %v4375_v60 }
0x1323   :  { %v4377_v45 = vmul.f32 %v4374_v29, %v4369_v37  ;;  %5862 = vmatprep.mubr.msk.f32.mxu0 %vm240_vm2, %v4383_v23 }
0x1324   :  { %v6705_v61 = vpop.eup %6704  ;;  %5863 = vmatmul.mubr.msk.f32.vlgmr.msra.gmra.mrb[56].mxu0 %vm240_vm2, %v4384_v21 }
0x1325   :  { %v4370_v8 = vmul.f32 %v6705_v61, %v4338_v54  ;;  %v4385_v63 = vadd.f32 %v4381_v57, %v4377_v45  ;;  %6261 = vmatpush3.bf16.msra.mxu0 %v6258_v34 }
0x1326   :  { %6263 = vmatprep.subr.bf16.mxu0 %v6262_v49 }
0x1327   :  { %v4378_v40 = vmul.f32 %v4374_v29, %v4370_v8  ;;  %5865 = vmatprep.mubr.msk.f32.mxu0 %vm240_vm2, %v4385_v63 }
0x1329   :  { %v4386_v20 = vadd.f32 %v4381_v57, %v4378_v40  ;;  %6265 = vmatpush3.bf16.msra.mxu0 %v6262_v49 }
0x132a   :  { %5898 = vmatprep.subr.mxu0 %v4743_v11 }
0x132b   :  { %5866 = vmatmul.mubr.msk.f32.gmra.mrb[58].mxu0 %vm240_vm2, %v4386_v20 }
0x132d   :  { %5899 = vmatpush3.msra.mxu0 %v4743_v11 }
0x13f7   :  { %v5864_v0 = vpop.f32.mrb[56].mxu0 }
0x13f8   :  { %v4487_v39 = vadd.f32 %v5864_v0, %v4390_v7  ;;  %v4481_v24 = vpop.f32.mrb[57].mxu0 }
0x13f9   :  { %v4482_v3 = vadd.f32 %v4481_v24, %v4390_v7 }
0x13fa   :  { %v4501_v2 = vmax.f32 %v4487_v39, 0.0 }
0x13fb   :  { %v4500_v1 = vmax.f32 %v4482_v3, 0.0 }
0x13fd   :  { %5884 = vmatprep.mubr.msk.f32.mxu1 %vm2284_vm11, %v4500_v1 }
0x13fe   :  { %v5867_v27 = vpop.f32.mrb[58].mxu0  ;;  %5885 = vmatmul.mubr.msk.f32.vlgmr.msra.gmra.mrb[76].mxu1 %vm2284_vm11, %v4501_v2 }
0x13ff   :  { %v4497_v56 = vadd.f32 %v5867_v27, %v4390_v7  ;;  %v4491_v54 = vpop.f32.mrb[59].mxu0 }
0x1400   :  { %v4492_v41 = vadd.f32 %v4491_v54, %v4390_v7 }
0x1401   :  { %v4503_v30 = vmax.f32 %v4497_v56, 0.0 }
0x1402   :  { %v4502_v6 = vmax.f32 %v4492_v41, 0.0 }
0x1404   :  { %5887 = vmatprep.mubr.msk.f32.mxu1 %vm2284_vm11, %v4502_v6 }
0x1405   :  { %5888 = vmatmul.mubr.msk.f32.gmra.mrb[78].mxu1 %vm2284_vm11, %v4503_v30 }
0x14d1   :  { %v5886_v29 = vpop.f32.mrb[76].mxu1 }
0x14d2   :  { %v4591_v28 = vpop.f32.mrb[77].mxu1  ;;  %v4611_v4 = vadd.f32 %v5886_v29, %v4384_v21 }
0x14d3   :  { %v4610_v51 = vadd.f32 %v4591_v28, %v4383_v23 }
0x14d4   :  { %v4619_v33 = vadd.f32 %v4617_v17, %v4611_v4  ;;  %v4835_v4 = vld [vmem:[%s8339_s7 + $0x10] sm:$0xff] }
0x14d5   :  { %v8207_v10 = vadd.f32 %v4617_v17, %v4610_v51 }
0x14d6   :  { %v4625_v14 = vsel %vm240_vm2, %v4619_v33, 0.0 }
0x14d7   :  { %v4622_v37 = vsel %vm240_vm2, %v8207_v10, 0.0 }
0x14d8   :  { %v5889_v44 = vpop.f32.mrb[78].mxu1 }
0x14d9   :  { %v4613_v25 = vadd.f32 %v5889_v44, %v4386_v20  ;;  %v4601_v42 = vpop.f32.mrb[79].mxu1 }
0x14da   :  { %v4612_v16 = vadd.f32 %v4601_v42, %v4385_v63 }
0x14db   :  { %v4621_v53 = vadd.f32 %v4617_v17, %v4613_v25 }
0x14dc   :  { %v8209_v19 = vadd.f32 %v4617_v17, %v4612_v16 }
0x14dd   :  { %v4631_v55 = vsel %vm240_vm2, %v4621_v53, 0.0 }
0x14de   :  { %4632 = vadd.xlane.f32.xlu1 %v4631_v55  ;;  %v4628_v45 = vsel %vm240_vm2, %v8209_v19, 0.0 }
0x14ef   :  { %4700 = vrot.lane.b32.xlu1 %v4698_v22, %s6751_s19 }
0x14f3   :  { %4718 = vrot.lane.b32.xlu1 %v4716_v50, %s6751_s19  ;;  %v4834_v50 = vld [vmem:[%s8339_s7 + $0x8] sm:$0xff] }
0x14f7   :  { %4727 = vrot.lane.b32.xlu1 %v4725_v15, %s6751_s19 }
0x151b   :  { %4626 = vadd.xlane.f32.xlu1 %v4625_v14 }
0x156b   :  { %v4633_v31 = vpop.xlane.xlu1 %4632 }
0x156c   :  { %v4637_v47 = vmul.f32 0.03125, %v4633_v31  ;;  %v4837_v31 = vld [vmem:[%s8339_s7 + $0x20] sm:$0xff] }
0x156e   :  { %v4641_v9 = vsub.f32 %v4621_v53, %v4637_v47  ;;  %v4838_v47 = vld [vmem:[%s8339_s7 + $0x28] sm:$0xff] }
0x156f   :  { %v4701_v59 = vpop.permute.xlu1 %4700 }
0x1570   :  { %v4645_v18 = vmul.f32 %v4641_v9, %v4641_v9 }
0x1572   :  { %v4655_v48 = vsel %vm240_vm2, %v4645_v18, 0.0  ;;  %v4839_v18 = vld [vmem:[%s8339_s7 + $0x30] sm:$0xff] }
0x1573   :  { %4656 = vadd.xlane.f32.xlu0 %v4655_v48  ;;  %v4719_v58 = vpop.permute.xlu1 %4718  ;;  %v4840_v48 = vld [vmem:[%s8339_s7 + $0x38] sm:$0xff] }
0x1574   :  { %v6278_v35 = vpack.c.bf16 %v4840_v48, %v4839_v18 }
0x1577   :  { %v4728_v57 = vpop.permute.xlu1 %4727 }
0x1589   :  { %4683 = vrot.lane.b32.xlu0 %v8225_v43, %s6750_s18 }
0x158d   :  { %4709 = vrot.lane.b32.xlu0 %v4707_v46, %s6751_s19 }
0x15a8   :  { %v4627_v13 = vpop.xlane.xlu1 %4626 }
0x15a9   :  { %v4635_v60 = vmul.f32 0.03125, %v4627_v13 }
0x15ab   :  { %v4639_v62 = vsub.f32 %v4619_v33, %v4635_v60  ;;  %v4836_v33 = vld [vmem:[%s8339_s7 + $0x18] sm:$0xff] }
0x15ac   :  { %4623 = vadd.xlane.f32.xlu0 %v4622_v37  ;;  %v6270_v14 = vpack.c.bf16 %v4836_v33, %v4835_v4 }
0x15ad   :  { %v4643_v23 = vmul.f32 %v4639_v62, %v4639_v62 }
0x15af   :  { %v4649_v21 = vsel %vm240_vm2, %v4643_v23, 0.0  ;;  %v5170_v23 = vld [vmem:[%s8340_s8] ss:$0 sm:$0xff] }
0x15b0   :  { %4650 = vadd.xlane.f32.xlu1 %v4649_v21  ;;  %4629 = vadd.xlane.f32.xlu0 %v4628_v45 }
0x1600   :  { %v4657_v61 = vpop.xlane.xlu0 %4656 }
0x1601   :  { %v4661_v8 = vmul.f32 0.03125, %v4657_v61 }
0x1603   :  { %v4665_v63 = vadd.f32 1e-05, %v4661_v8 }
0x1604   :  { %v8251_v20 = vpop.permute.xlu0 %4683 }
0x1605   :  { %6706 = vrsqrt.f32 %v4665_v63 }
0x1608   :  { %v4710_v7 = vpop.permute.xlu0 %4709 }
0x160f   :  { %v6707_v40 = vpop.eup %6706 }
0x1610   :  { %v4673_v26 = vmul.f32 %v6707_v40, %v4641_v9  ;;  %v6274_v9 = vpack.c.bf16 %v4838_v47, %v4837_v31 }
0x1612   :  { %v4681_v52 = vmul.f32 %v8225_v43, %v4673_v26 }
0x1614   :  { %v4689_v5 = vadd.f32 %v8251_v20, %v4681_v52 }
0x1616   :  { %4693 = vst.msk [vmem:[#allocation2 + $0x18] sm:$0xff] %vm240_vm2, %v4689_v5  ;;  %v4703_v0 = vsel %vm240_vm2, %v4689_v5, %v4701_v59  ;;  %v4721_v39 = vsel %vm240_vm2, %v4689_v5, %v4719_v58  ;;  %v4712_v1 = vsel %vm240_vm2, %v4689_v5, %v4710_v7  ;;  %v4730_v2 = vsel %vm240_vm2, %v4689_v5, %v4728_v57 }
0x1617   :  { %v4732_v24 = vrot.slane %v4703_v0, 4  ;;  %v4735_v3 = vrot.slane %v4721_v39, 4 }
0x1619   :  { %v4737_v27 = vsel %vm63_vm0, %v4732_v24, %v4712_v1  ;;  %v4738_v56 = vsel %vm63_vm0, %v4735_v3, %v4730_v2 }
0x161a   :  { %5900 = vmatprep.mubr.msk.f32.mxu0 %vm4749_vm12, %v4737_v27 }
0x161b   :  { %5901 = vmatmul.mubr.msk.f32.vlgmr.msra.gmra.mrb[60].mxu0 %vm4749_vm12, %v4738_v56 }
0x1639   :  { %v4624_v54 = vpop.xlane.xlu0 %4623 }
0x163a   :  { %v4634_v41 = vmul.f32 0.03125, %v4624_v54 }
0x163c   :  { %v4638_v6 = vsub.f32 %v8207_v10, %v4634_v41 }
0x163d   :  { %v4651_v30 = vpop.xlane.xlu1 %4650  ;;  %v4630_v29 = vpop.xlane.xlu0 %4629 }
0x163e   :  { %v4659_v17 = vmul.f32 0.03125, %v4651_v30  ;;  %v4636_v28 = vmul.f32 0.03125, %v4630_v29  ;;  %v4642_v51 = vmul.f32 %v4638_v6, %v4638_v6 }
0x1640   :  { %v4663_v44 = vadd.f32 1e-05, %v4659_v17  ;;  %v4640_v25 = vsub.f32 %v8209_v19, %v4636_v28  ;;  %v4646_v42 = vsel %vm240_vm2, %v4642_v51, 0.0  ;;  %v4833_v19 = vld [vmem:[%s8339_s7] sm:$0xff] }
0x1641   :  { %4647 = vadd.xlane.f32.xlu0 %v4646_v42  ;;  %v6266_v15 = vpack.c.bf16 %v4834_v50, %v4833_v19 }
0x1642   :  { %6708 = vrsqrt.f32 %v4663_v44  ;;  %v4644_v16 = vmul.f32 %v4640_v25, %v4640_v25 }
0x1643   :  { %6267 = vmatprep.subr.bf16.mxu0 %v6266_v15 }
0x1644   :  { %v4652_v53 = vsel %vm240_vm2, %v4644_v16, 0.0  ;;  %6269 = vmatpush3.bf16.msra.mxu0 %v6266_v15 }
0x1645   :  { %4653 = vadd.xlane.f32.xlu0 %v4652_v53  ;;  %6271 = vmatprep.subr.bf16.mxu0 %v6270_v14 }
0x1648   :  { %6273 = vmatpush3.bf16.msra.mxu0 %v6270_v14 }
0x1649   :  { %6275 = vmatprep.subr.bf16.mxu0 %v6274_v9 }
0x164c   :  { %v6709_v55 = vpop.eup %6708  ;;  %6277 = vmatpush3.bf16.msra.mxu0 %v6274_v9 }
0x164d   :  { %v4671_v32 = vmul.f32 %v6709_v55, %v4639_v62  ;;  %6279 = vmatprep.subr.bf16.mxu0 %v6278_v35 }
0x164f   :  { %v4679_v10 = vmul.f32 %v8225_v43, %v4671_v32 }
0x1650   :  { %6281 = vmatpush3.bf16.msra.mxu0 %v6278_v35 }
0x1651   :  { %v4687_v22 = vadd.f32 %v8251_v20, %v4679_v10 }
0x1653   :  { %4691 = vst.msk [vmem:[#allocation2 + $0x8] sm:$0xff] %vm240_vm2, %v4687_v22 }
0x16ce   :  { %v4648_v38 = vpop.xlane.xlu0 %4647 }
0x16cf   :  { %v4658_v34 = vmul.f32 0.03125, %v4648_v38 }
0x16d1   :  { %v4662_v46 = vadd.f32 1e-05, %v4658_v34 }
0x16d2   :  { %v4654_v36 = vpop.xlane.xlu0 %4653 }
0x16d3   :  { %6710 = vrsqrt.f32 %v4662_v46  ;;  %v4660_v12 = vmul.f32 0.03125, %v4654_v36 }
0x16d5   :  { %v4664_v49 = vadd.f32 1e-05, %v4660_v12 }
0x16d7   :  { %6712 = vrsqrt.f32 %v4664_v49 }
0x16dd   :  { %v6711_v59 = vpop.eup %6710 }
0x16de   :  { %v4670_v11 = vmul.f32 %v6711_v59, %v4638_v6 }
0x16e0   :  { %v4678_v58 = vmul.f32 %v8225_v43, %v4670_v11 }
0x16e1   :  { %v6713_v57 = vpop.eup %6712 }
0x16e2   :  { %v4686_v13 = vadd.f32 %v8251_v20, %v4678_v58  ;;  %v4672_v60 = vmul.f32 %v6713_v57, %v4640_v25 }
0x16e4   :  { %4690 = vst.msk [vmem:[#allocation2] sm:$0xff] %vm240_vm2, %v4686_v13  ;;  %v4680_v62 = vmul.f32 %v8225_v43, %v4672_v60 }
0x16e6   :  { %v4688_v37 = vadd.f32 %v8251_v20, %v4680_v62 }
0x16e8   :  { %4692 = vst.msk [vmem:[#allocation2 + $0x10] sm:$0xff] %vm240_vm2, %v4688_v37 }
0x16ee   :  { %v5902_v21 = vpop.f32.mrb[60].mxu0 }
0x16ef   :  { %v4828_v45 = vadd.f32 %v5902_v21, %v5170_v23  ;;  %v4822_v61 = vpop.f32.mrb[61].mxu0 }
0x16f0   :  { %v4823_v8 = vadd.f32 %v5170_v23, %v4822_v61 }
0x16f1   :  { %v4832_v40 = vmax.f32 %v4828_v45, 0.0 }
0x16f2   :  { %v4831_v63 = vmax.f32 %v4823_v8, 0.0 }
0x16f4   :  { %5919 = vmatprep.mubr.msk.f32.mxu0 %vm2284_vm11, %v4831_v63 }
0x16f5   :  { %5920 = vmatmul.mubr.msk.f32.vlgmr.msra.gmra.mrb[62].mxu0 %vm2284_vm11, %v4832_v40 }
0x16f6   :  { %6733 = shalt.err (!%p6730_p4)
}
0x16f7   :  { %s6734_s22 = scalar_lea.hbm %s8343_s11, 512 }
0x16f8   :  { %p6735_p5 = scmp.ne.s32.totalorder %s8343_s11, %s6734_s22  ;;  %p6738_p6 = scmp.lt.u32.totalorder %s6734_s22, %s8343_s11 }
0x16fa   :  { %p6740_p7 = pnand %p6738_p6, %p6735_p5 }
0x16fc   :  { %6743 = shalt.err (!%p6740_p7)
}
0x16fd   :  { %s6757_s19 = smov 128   ;;  %v4927_v43 = vld [vmem:[%s8342_s10] sm:$0xf] }
0x16fe   :  { %4947 = dma.vmem_to_hbm [thread:$0]  %s4942_s29, 512, %s8343_s11, [#allocation3], %s6757_s19, %s6757_s19, %s6753_s28   ;;  %v4929_v20 = vrot.slane %v4927_v43, 4 }
0x16ff   :  { %v5173_v26 = vld [vmem:[%s8340_s8 + $0x1] ss:$0 sm:$0xff] }
0x1700   :  { %v4931_v5 = vsel %vm63_vm0, %v4927_v43, %v4929_v20 }
0x17c8   :  { %v5921_v52 = vpop.f32.mrb[62].mxu0 }
0x17c9   :  { %v4924_v7 = vadd.f32 %v5921_v52, %v5173_v26  ;;  %v4918_v0 = vpop.f32.mrb[63].mxu0 }
0x17ca   :  { %v4919_v39 = vadd.f32 %v5173_v26, %v4918_v0 }
0x17cb   :  { %v4933_v24 = vadd.f32 %v4931_v5, %v4924_v7 }
0x17cc   :  { %v4932_v3 = vadd.f32 %v4931_v5, %v4919_v39 }
0x17cd   :  { %4935 = vst.msk [vmem:[%s8344_s12 + $0x8] sm:$0xff] %vm418_vm3, %v4933_v24 }
0x17ce   :  { %4934 = vst.msk [vmem:[%s8344_s12] sm:$0xff] %vm418_vm3, %v4932_v3 }
0x17cf   :  { %6744 = dma.done.wait [#allocation3], 512  }
0x17d0   :  { %6745 = vsyncadd [#allocation3], 4294966784 }
0x17d1   :  { %4955 = vsyncpa [#allocation3], 1 }

</bundles_post_ra>
